<compile_context>
chip_gen: v7x
topology: tpu7x:2x2x1
jax: 0.10.0
libtpu: 0.0.40
codegen_flags: <defaults>
</compile_context>

<pallas_src>
import functools

import jax
import jax.numpy as jnp
from jax.experimental import pallas as pl
from jax.experimental.pallas import tpu as pltpu


def _round_up(a, b):
    return pl.cdiv(a, b) * b


def conv_bn_relu(x, weight, gamma, beta, running_mean, running_var, *,
                 stride=1, padding=0, dilation=1, groups=1, eps=1e-5):
    """x: (N, C, H, W) f32, weight: (OC, C, KH, KW) f32 -> (N, OC, OH, OW) f32."""
    N, C, H, W = x.shape
    OC, ICg, KH, KW = weight.shape
    assert groups == 1, "groups != 1 not supported"  # TODO(synk): grouped conv
    assert ICg == C

    s, d, p = stride, dilation, padding
    PH, PW = H + 2 * p, W + 2 * p
    eKH, eKW = d * (KH - 1) + 1, d * (KW - 1) + 1       # effective (dilated) kernel
    OH1, OW1 = PH - eKH + 1, PW - eKW + 1               # stride-1 output extent
    OH, OW = (PH - eKH) // s + 1, (PW - eKW) // s + 1   # true output extent

    # Flattened-spatial GEMM (stride-1 phase):
    #   out1[n, oc, oh*PW + ow] = sum_{kh,kw,c} w[oc,c,kh,kw] *
    #                             x_pad_flat[n, c, (oh*PW + ow) + d*(kh*PW + kw)]
    # Columns with ow >= OW1 (and lane round-up) are garbage; only valid columns are
    # stored (in-kernel crop), so they never reach HBM.
    Q = OH1 * PW                               # flat stride-1 columns per image
    QP = _round_up(Q, 128)                     # lane-dense GEMM width per image
    OFF_MAX = d * ((KH - 1) * PW + (KW - 1))   # largest tap shift
    LIN = _round_up(QP + OFF_MAX, 128)         # padded flat slab length per image
    CP = _round_up(C, 16)                      # bf16-tile-aligned channel count
    KTOT = KH * KW * CP                        # single-dot contraction depth

    # Images folded into the GEMM lane dimension per grid step (divisor of N).
    NB = min(N, max(1, 1024 // QP))
    while N % NB:
        NB -= 1
    NBQP = NB * QP

    # --- fold BatchNorm (inference running stats) into the conv weights ---
    # TODO(synk): PyTorch BN in training mode uses batch statistics; inference
    # semantics are implemented so BN folds into the conv weights.
    bn_scale = gamma / jnp.sqrt(running_var + eps)                       # (OC,)
    w_folded = weight.astype(jnp.float32) * bn_scale[:, None, None, None]
    w_folded = jnp.pad(w_folded, ((0, 0), (0, CP - C), (0, 0), (0, 0)))  # (OC,CP,KH,KW)
    # im2col row order is (kh, kw, c) -> row = (kh*KW + kw)*CP + c
    w2 = jnp.transpose(w_folded, (0, 2, 3, 1)).reshape(OC, KTOT).astype(jnp.bfloat16)
    shift = (beta - running_mean * bn_scale).reshape(OC, 1).astype(jnp.float32)

    def kernel(x_ref, w_ref, b_ref, o_ref, xflat_ref, col_ref):
        # x_ref:    (NB, C, H, W)  f32   raw input block (no wrapper pre-pass)
        # w_ref:    (OC, KTOT)     bf16  BN-folded weights
        # b_ref:    (OC, 1)        f32   BN shift
        # o_ref:    (NB, OC, OH, OW) f32 exact NCHW output block
        # xflat_ref:(NB, CP, LIN)  bf16  zero-padded flattened input slab (scratch)
        # col_ref:  (KTOT, NBQP)   bf16  im2col slab (scratch)

        # 1) Zero the padded slab, then scatter the raw rows at their padded offsets
        #    (in-kernel padding + flatten + bf16 cast: input HBM traffic stays ~1x f32).
        xflat_ref[...] = jnp.zeros_like(xflat_ref)
        for h in range(H):
            dst = (h + p) * PW + p
            xflat_ref[:, :C, dst:dst + W] = x_ref[:, :, h, :].astype(jnp.bfloat16)

        # 2) im2col: each shifted window is lane-rotated ONCE into the scratch.
        for kh in range(KH):
            for kw in range(KW):
                t = kh * KW + kw
                off = d * (kh * PW + kw)
                for nb in range(NB):
                    col_ref[t * CP:(t + 1) * CP, nb * QP:(nb + 1) * QP] = \
                        xflat_ref[nb, :, off:off + QP]

        # 3) One MXU contraction (K = KH*KW*CP), f32 accumulate, fused BN shift + ReLU.
        y = jnp.dot(w_ref[...], col_ref[...], preferred_element_type=jnp.float32)
        y = jnp.maximum(y + b_ref[...], 0.0).astype(o_ref.dtype)

        # 4) In-kernel crop: store only the valid columns as exact NCHW rows.
        for nb in range(NB):
            for oh in range(OH):
                c0 = nb * QP + (oh * s) * PW
                if s == 1:
                    o_ref[nb, :, oh, :] = y[:, c0:c0 + OW]
                else:
                    # TODO(synk): stride>1 subsamples the stride-1 result (extra compute)
                    o_ref[nb, :, oh, :] = y[:, c0:c0 + s * (OW - 1) + 1:s]

    out = pl.pallas_call(
        kernel,
        out_shape=jax.ShapeDtypeStruct((N, OC, OH, OW), jnp.float32),
        grid_spec=pltpu.PrefetchScalarGridSpec(
            num_scalar_prefetch=0,
            grid=(N // NB,),
            in_specs=[
                pl.BlockSpec((NB, C, H, W), lambda n: (n, 0, 0, 0)),   # raw input block
                pl.BlockSpec((OC, KTOT), lambda n: (0, 0)),            # folded weights
                pl.BlockSpec((OC, 1), lambda n: (0, 0)),               # BN shift
            ],
            out_specs=pl.BlockSpec((NB, OC, OH, OW), lambda n: (n, 0, 0, 0)),
            scratch_shapes=[
                pltpu.VMEM((NB, CP, LIN), jnp.bfloat16),   # padded flat input slab
                pltpu.VMEM((KTOT, NBQP), jnp.bfloat16),    # im2col slab
            ],
        ),
        compiler_params=pltpu.CompilerParams(
            dimension_semantics=("parallel",)),
    )(x, w2, shift)
    return out


if __name__ == "__main__":
    # ConvBnRelu(in_channel=4, out_channel=8, kernel_size=3, stride=1, padding=1)
    N, C, H, W = 2, 4, 16, 16
    OC, KH, KW = 8, 3, 3
    stride, padding, eps = 1, 1, 1e-5

    key = jax.random.PRNGKey(0)
    kx, kwt, kg, kb, km, kv = jax.random.split(key, 6)
    x = jax.random.normal(kx, (N, C, H, W), dtype=jnp.float32)
    weight = jax.random.normal(kwt, (OC, C, KH, KW), dtype=jnp.float32) * 0.1
    gamma = 1.0 + 0.1 * jax.random.normal(kg, (OC,), dtype=jnp.float32)
    beta = 0.1 * jax.random.normal(kb, (OC,), dtype=jnp.float32)
    running_mean = 0.1 * jax.random.normal(km, (OC,), dtype=jnp.float32)
    running_var = 1.0 + 0.1 * jax.random.uniform(kv, (OC,), dtype=jnp.float32)

    fn = jax.jit(functools.partial(conv_bn_relu, stride=stride, padding=padding, eps=eps))
    y = jax.block_until_ready(fn(x, weight, gamma, beta, running_mean, running_var))

    # Reference: plain-JAX conv + BN(eval) + ReLU in NCHW (pure f32).
    conv_ref = jax.lax.conv_general_dilated(
        x, weight, window_strides=(stride, stride),
        padding=((padding, padding), (padding, padding)),
        dimension_numbers=("NCHW", "OIHW", "NCHW"))
    inv_std = 1.0 / jnp.sqrt(running_var + eps)
    bn_ref = (conv_ref - running_mean[None, :, None, None]) * \
        (gamma * inv_std)[None, :, None, None] + beta[None, :, None, None]
    ref = jnp.maximum(bn_ref, 0.0)

    assert y.shape == (N, OC, H, W), y.shape
    max_err = float(jnp.max(jnp.abs(y - ref)))
    # bf16 MXU inputs (f32 accumulate + f32 epilogue) -> tolerance loosened vs pure f32.
    assert jnp.allclose(y, ref, atol=2e-2, rtol=2e-2), max_err
    print("KERNEL_OK")
</pallas_src>

<mosaic_0001>
module attributes {stable_mosaic.version = 11 : i64} {
  func.func @kernel(%arg0: i32, %arg1: memref<2x4x16x16xf32, #tpu.memory_space<vmem>>, %arg2: memref<8x144xbf16, #tpu.memory_space<vmem>>, %arg3: memref<8x1xf32, #tpu.memory_space<vmem>>, %arg4: memref<2x8x16x16xf32, #tpu.memory_space<vmem>>, %arg5: memref<2x16x512xbf16, #tpu.memory_space<vmem>>, %arg6: memref<144x768xbf16, #tpu.memory_space<vmem>>) attributes {dimension_semantics = [#tpu.dimension_semantics<parallel>], iteration_bounds = array<i64: 1>, scalar_prefetch = 0 : i64, scratch_operands = 2 : i64, tpu.core_type = #tpu.core_type<tc>, window_params = [{transform_indices = @transform_0, window_bounds = array<i64: 2, 4, 16, 16>}, {pipeline_mode = #tpu.pipeline_mode<synchronous>, transform_indices = @transform_1, window_bounds = array<i64: 8, 144>}, {pipeline_mode = #tpu.pipeline_mode<synchronous>, transform_indices = @transform_2, window_bounds = array<i64: 8, 1>}, {transform_indices = @transform_3, window_bounds = array<i64: 2, 8, 16, 16>}]} {
    %cst = arith.constant 0.000000e+00 : bf16
    %0 = vector.broadcast %cst : bf16 to vector<2x16x512xbf16>
    %c0 = arith.constant 0 : index
    %c0_0 = arith.constant 0 : index
    %c0_1 = arith.constant 0 : index
    %1 = vector.load %arg5[%c0, %c0_0, %c0_1] : memref<2x16x512xbf16, #tpu.memory_space<vmem>>, vector<2x16x512xbf16>
    tpu.vector_store %arg5[%c0, %c0_0, %c0_1], %0 {strides = array<i32>} : memref<2x16x512xbf16, #tpu.memory_space<vmem>>, vector<2x16x512xbf16>,
    %c0_2 = arith.constant 0 : index
    %c0_3 = arith.constant 0 : index
    %c0_4 = arith.constant 0 : index
    %c0_5 = arith.constant 0 : index
    %2 = vector.load %arg1[%c0_2, %c0_3, %c0_4, %c0_5] : memref<2x4x16x16xf32, #tpu.memory_space<vmem>>, vector<2x4x1x16xf32>
    %3 = vector.shape_cast %2 : vector<2x4x1x16xf32> to vector<2x4x16xf32>
    %4 = arith.truncf %3 : vector<2x4x16xf32> to vector<2x4x16xbf16>
    %c0_6 = arith.constant 0 : index
    %c0_7 = arith.constant 0 : index
    %c19 = arith.constant 19 : index
    %5 = vector.load %arg5[%c0_6, %c0_7, %c19] : memref<2x16x512xbf16, #tpu.memory_space<vmem>>, vector<2x4x16xbf16>
    tpu.vector_store %arg5[%c0_6, %c0_7, %c19], %4 {strides = array<i32>} : memref<2x16x512xbf16, #tpu.memory_space<vmem>>, vector<2x4x16xbf16>,
    %c0_8 = arith.constant 0 : index
    %c0_9 = arith.constant 0 : index
    %c1 = arith.constant 1 : index
    %c0_10 = arith.constant 0 : index
    %6 = vector.load %arg1[%c0_8, %c0_9, %c1, %c0_10] : memref<2x4x16x16xf32, #tpu.memory_space<vmem>>, vector<2x4x1x16xf32>
    %7 = vector.shape_cast %6 : vector<2x4x1x16xf32> to vector<2x4x16xf32>
    %8 = arith.truncf %7 : vector<2x4x16xf32> to vector<2x4x16xbf16>
    %c0_11 = arith.constant 0 : index
    %c0_12 = arith.constant 0 : index
    %c37 = arith.constant 37 : index
    %9 = vector.load %arg5[%c0_11, %c0_12, %c37] : memref<2x16x512xbf16, #tpu.memory_space<vmem>>, vector<2x4x16xbf16>
    tpu.vector_store %arg5[%c0_11, %c0_12, %c37], %8 {strides = array<i32>} : memref<2x16x512xbf16, #tpu.memory_space<vmem>>, vector<2x4x16xbf16>,
    %c0_13 = arith.constant 0 : index
    %c0_14 = arith.constant 0 : index
    %c2 = arith.constant 2 : index
    %c0_15 = arith.constant 0 : index
    %10 = vector.load %arg1[%c0_13, %c0_14, %c2, %c0_15] : memref<2x4x16x16xf32, #tpu.memory_space<vmem>>, vector<2x4x1x16xf32>
    %11 = vector.shape_cast %10 : vector<2x4x1x16xf32> to vector<2x4x16xf32>
    %12 = arith.truncf %11 : vector<2x4x16xf32> to vector<2x4x16xbf16>
    %c0_16 = arith.constant 0 : index
    %c0_17 = arith.constant 0 : index
    %c55 = arith.constant 55 : index
    %13 = vector.load %arg5[%c0_16, %c0_17, %c55] : memref<2x16x512xbf16, #tpu.memory_space<vmem>>, vector<2x4x16xbf16>
    tpu.vector_store %arg5[%c0_16, %c0_17, %c55], %12 {strides = array<i32>} : memref<2x16x512xbf16, #tpu.memory_space<vmem>>, vector<2x4x16xbf16>,
    %c0_18 = arith.constant 0 : index
    %c0_19 = arith.constant 0 : index
    %c3 = arith.constant 3 : index
    %c0_20 = arith.constant 0 : index
    %14 = vector.load %arg1[%c0_18, %c0_19, %c3, %c0_20] : memref<2x4x16x16xf32, #tpu.memory_space<vmem>>, vector<2x4x1x16xf32>
    %15 = vector.shape_cast %14 : vector<2x4x1x16xf32> to vector<2x4x16xf32>
    %16 = arith.truncf %15 : vector<2x4x16xf32> to vector<2x4x16xbf16>
    %c0_21 = arith.constant 0 : index
    %c0_22 = arith.constant 0 : index
    %c73 = arith.constant 73 : index
    %17 = vector.load %arg5[%c0_21, %c0_22, %c73] : memref<2x16x512xbf16, #tpu.memory_space<vmem>>, vector<2x4x16xbf16>
    tpu.vector_store %arg5[%c0_21, %c0_22, %c73], %16 {strides = array<i32>} : memref<2x16x512xbf16, #tpu.memory_space<vmem>>, vector<2x4x16xbf16>,
    %c0_23 = arith.constant 0 : index
    %c0_24 = arith.constant 0 : index
    %c4 = arith.constant 4 : index
    %c0_25 = arith.constant 0 : index
    %18 = vector.load %arg1[%c0_23, %c0_24, %c4, %c0_25] : memref<2x4x16x16xf32, #tpu.memory_space<vmem>>, vector<2x4x1x16xf32>
    %19 = vector.shape_cast %18 : vector<2x4x1x16xf32> to vector<2x4x16xf32>
    %20 = arith.truncf %19 : vector<2x4x16xf32> to vector<2x4x16xbf16>
    %c0_26 = arith.constant 0 : index
    %c0_27 = arith.constant 0 : index
    %c91 = arith.constant 91 : index
    %21 = vector.load %arg5[%c0_26, %c0_27, %c91] : memref<2x16x512xbf16, #tpu.memory_space<vmem>>, vector<2x4x16xbf16>
    tpu.vector_store %arg5[%c0_26, %c0_27, %c91], %20 {strides = array<i32>} : memref<2x16x512xbf16, #tpu.memory_space<vmem>>, vector<2x4x16xbf16>,
    %c0_28 = arith.constant 0 : index
    %c0_29 = arith.constant 0 : index
    %c5 = arith.constant 5 : index
    %c0_30 = arith.constant 0 : index
    %22 = vector.load %arg1[%c0_28, %c0_29, %c5, %c0_30] : memref<2x4x16x16xf32, #tpu.memory_space<vmem>>, vector<2x4x1x16xf32>
    %23 = vector.shape_cast %22 : vector<2x4x1x16xf32> to vector<2x4x16xf32>
    %24 = arith.truncf %23 : vector<2x4x16xf32> to vector<2x4x16xbf16>
    %c0_31 = arith.constant 0 : index
    %c0_32 = arith.constant 0 : index
    %c109 = arith.constant 109 : index
    %25 = vector.load %arg5[%c0_31, %c0_32, %c109] : memref<2x16x512xbf16, #tpu.memory_space<vmem>>, vector<2x4x16xbf16>
    tpu.vector_store %arg5[%c0_31, %c0_32, %c109], %24 {strides = array<i32>} : memref<2x16x512xbf16, #tpu.memory_space<vmem>>, vector<2x4x16xbf16>,
    %c0_33 = arith.constant 0 : index
    %c0_34 = arith.constant 0 : index
    %c6 = arith.constant 6 : index
    %c0_35 = arith.constant 0 : index
    %26 = vector.load %arg1[%c0_33, %c0_34, %c6, %c0_35] : memref<2x4x16x16xf32, #tpu.memory_space<vmem>>, vector<2x4x1x16xf32>
    %27 = vector.shape_cast %26 : vector<2x4x1x16xf32> to vector<2x4x16xf32>
    %28 = arith.truncf %27 : vector<2x4x16xf32> to vector<2x4x16xbf16>
    %c0_36 = arith.constant 0 : index
    %c0_37 = arith.constant 0 : index
    %c127 = arith.constant 127 : index
    %29 = vector.load %arg5[%c0_36, %c0_37, %c127] : memref<2x16x512xbf16, #tpu.memory_space<vmem>>, vector<2x4x16xbf16>
    tpu.vector_store %arg5[%c0_36, %c0_37, %c127], %28 {strides = array<i32>} : memref<2x16x512xbf16, #tpu.memory_space<vmem>>, vector<2x4x16xbf16>,
    %c0_38 = arith.constant 0 : index
    %c0_39 = arith.constant 0 : index
    %c7 = arith.constant 7 : index
    %c0_40 = arith.constant 0 : index
    %30 = vector.load %arg1[%c0_38, %c0_39, %c7, %c0_40] : memref<2x4x16x16xf32, #tpu.memory_space<vmem>>, vector<2x4x1x16xf32>
    %31 = vector.shape_cast %30 : vector<2x4x1x16xf32> to vector<2x4x16xf32>
    %32 = arith.truncf %31 : vector<2x4x16xf32> to vector<2x4x16xbf16>
    %c0_41 = arith.constant 0 : index
    %c0_42 = arith.constant 0 : index
    %c145 = arith.constant 145 : index
    %33 = vector.load %arg5[%c0_41, %c0_42, %c145] : memref<2x16x512xbf16, #tpu.memory_space<vmem>>, vector<2x4x16xbf16>
    tpu.vector_store %arg5[%c0_41, %c0_42, %c145], %32 {strides = array<i32>} : memref<2x16x512xbf16, #tpu.memory_space<vmem>>, vector<2x4x16xbf16>,
    %c0_43 = arith.constant 0 : index
    %c0_44 = arith.constant 0 : index
    %c8 = arith.constant 8 : index
    %c0_45 = arith.constant 0 : index
    %34 = vector.load %arg1[%c0_43, %c0_44, %c8, %c0_45] : memref<2x4x16x16xf32, #tpu.memory_space<vmem>>, vector<2x4x1x16xf32>
    %35 = vector.shape_cast %34 : vector<2x4x1x16xf32> to vector<2x4x16xf32>
    %36 = arith.truncf %35 : vector<2x4x16xf32> to vector<2x4x16xbf16>
    %c0_46 = arith.constant 0 : index
    %c0_47 = arith.constant 0 : index
    %c163 = arith.constant 163 : index
    %37 = vector.load %arg5[%c0_46, %c0_47, %c163] : memref<2x16x512xbf16, #tpu.memory_space<vmem>>, vector<2x4x16xbf16>
    tpu.vector_store %arg5[%c0_46, %c0_47, %c163], %36 {strides = array<i32>} : memref<2x16x512xbf16, #tpu.memory_space<vmem>>, vector<2x4x16xbf16>,
    %c0_48 = arith.constant 0 : index
    %c0_49 = arith.constant 0 : index
    %c9 = arith.constant 9 : index
    %c0_50 = arith.constant 0 : index
    %38 = vector.load %arg1[%c0_48, %c0_49, %c9, %c0_50] : memref<2x4x16x16xf32, #tpu.memory_space<vmem>>, vector<2x4x1x16xf32>
    %39 = vector.shape_cast %38 : vector<2x4x1x16xf32> to vector<2x4x16xf32>
    %40 = arith.truncf %39 : vector<2x4x16xf32> to vector<2x4x16xbf16>
    %c0_51 = arith.constant 0 : index
    %c0_52 = arith.constant 0 : index
    %c181 = arith.constant 181 : index
    %41 = vector.load %arg5[%c0_51, %c0_52, %c181] : memref<2x16x512xbf16, #tpu.memory_space<vmem>>, vector<2x4x16xbf16>
    tpu.vector_store %arg5[%c0_51, %c0_52, %c181], %40 {strides = array<i32>} : memref<2x16x512xbf16, #tpu.memory_space<vmem>>, vector<2x4x16xbf16>,
    %c0_53 = arith.constant 0 : index
    %c0_54 = arith.constant 0 : index
    %c10 = arith.constant 10 : index
    %c0_55 = arith.constant 0 : index
    %42 = vector.load %arg1[%c0_53, %c0_54, %c10, %c0_55] : memref<2x4x16x16xf32, #tpu.memory_space<vmem>>, vector<2x4x1x16xf32>
    %43 = vector.shape_cast %42 : vector<2x4x1x16xf32> to vector<2x4x16xf32>
    %44 = arith.truncf %43 : vector<2x4x16xf32> to vector<2x4x16xbf16>
    %c0_56 = arith.constant 0 : index
    %c0_57 = arith.constant 0 : index
    %c199 = arith.constant 199 : index
    %45 = vector.load %arg5[%c0_56, %c0_57, %c199] : memref<2x16x512xbf16, #tpu.memory_space<vmem>>, vector<2x4x16xbf16>
    tpu.vector_store %arg5[%c0_56, %c0_57, %c199], %44 {strides = array<i32>} : memref<2x16x512xbf16, #tpu.memory_space<vmem>>, vector<2x4x16xbf16>,
    %c0_58 = arith.constant 0 : index
    %c0_59 = arith.constant 0 : index
    %c11 = arith.constant 11 : index
    %c0_60 = arith.constant 0 : index
    %46 = vector.load %arg1[%c0_58, %c0_59, %c11, %c0_60] : memref<2x4x16x16xf32, #tpu.memory_space<vmem>>, vector<2x4x1x16xf32>
    %47 = vector.shape_cast %46 : vector<2x4x1x16xf32> to vector<2x4x16xf32>
    %48 = arith.truncf %47 : vector<2x4x16xf32> to vector<2x4x16xbf16>
    %c0_61 = arith.constant 0 : index
    %c0_62 = arith.constant 0 : index
    %c217 = arith.constant 217 : index
    %49 = vector.load %arg5[%c0_61, %c0_62, %c217] : memref<2x16x512xbf16, #tpu.memory_space<vmem>>, vector<2x4x16xbf16>
    tpu.vector_store %arg5[%c0_61, %c0_62, %c217], %48 {strides = array<i32>} : memref<2x16x512xbf16, #tpu.memory_space<vmem>>, vector<2x4x16xbf16>,
    %c0_63 = arith.constant 0 : index
    %c0_64 = arith.constant 0 : index
    %c12 = arith.constant 12 : index
    %c0_65 = arith.constant 0 : index
    %50 = vector.load %arg1[%c0_63, %c0_64, %c12, %c0_65] : memref<2x4x16x16xf32, #tpu.memory_space<vmem>>, vector<2x4x1x16xf32>
    %51 = vector.shape_cast %50 : vector<2x4x1x16xf32> to vector<2x4x16xf32>
    %52 = arith.truncf %51 : vector<2x4x16xf32> to vector<2x4x16xbf16>
    %c0_66 = arith.constant 0 : index
    %c0_67 = arith.constant 0 : index
    %c235 = arith.constant 235 : index
    %53 = vector.load %arg5[%c0_66, %c0_67, %c235] : memref<2x16x512xbf16, #tpu.memory_space<vmem>>, vector<2x4x16xbf16>
    tpu.vector_store %arg5[%c0_66, %c0_67, %c235], %52 {strides = array<i32>} : memref<2x16x512xbf16, #tpu.memory_space<vmem>>, vector<2x4x16xbf16>,
    %c0_68 = arith.constant 0 : index
    %c0_69 = arith.constant 0 : index
    %c13 = arith.constant 13 : index
    %c0_70 = arith.constant 0 : index
    %54 = vector.load %arg1[%c0_68, %c0_69, %c13, %c0_70] : memref<2x4x16x16xf32, #tpu.memory_space<vmem>>, vector<2x4x1x16xf32>
    %55 = vector.shape_cast %54 : vector<2x4x1x16xf32> to vector<2x4x16xf32>
    %56 = arith.truncf %55 : vector<2x4x16xf32> to vector<2x4x16xbf16>
    %c0_71 = arith.constant 0 : index
    %c0_72 = arith.constant 0 : index
    %c253 = arith.constant 253 : index
    %57 = vector.load %arg5[%c0_71, %c0_72, %c253] : memref<2x16x512xbf16, #tpu.memory_space<vmem>>, vector<2x4x16xbf16>
    tpu.vector_store %arg5[%c0_71, %c0_72, %c253], %56 {strides = array<i32>} : memref<2x16x512xbf16, #tpu.memory_space<vmem>>, vector<2x4x16xbf16>,
    %c0_73 = arith.constant 0 : index
    %c0_74 = arith.constant 0 : index
    %c14 = arith.constant 14 : index
    %c0_75 = arith.constant 0 : index
    %58 = vector.load %arg1[%c0_73, %c0_74, %c14, %c0_75] : memref<2x4x16x16xf32, #tpu.memory_space<vmem>>, vector<2x4x1x16xf32>
    %59 = vector.shape_cast %58 : vector<2x4x1x16xf32> to vector<2x4x16xf32>
    %60 = arith.truncf %59 : vector<2x4x16xf32> to vector<2x4x16xbf16>
    %c0_76 = arith.constant 0 : index
    %c0_77 = arith.constant 0 : index
    %c271 = arith.constant 271 : index
    %61 = vector.load %arg5[%c0_76, %c0_77, %c271] : memref<2x16x512xbf16, #tpu.memory_space<vmem>>, vector<2x4x16xbf16>
    tpu.vector_store %arg5[%c0_76, %c0_77, %c271], %60 {strides = array<i32>} : memref<2x16x512xbf16, #tpu.memory_space<vmem>>, vector<2x4x16xbf16>,
    %c0_78 = arith.constant 0 : index
    %c0_79 = arith.constant 0 : index
    %c15 = arith.constant 15 : index
    %c0_80 = arith.constant 0 : index
    %62 = vector.load %arg1[%c0_78, %c0_79, %c15, %c0_80] : memref<2x4x16x16xf32, #tpu.memory_space<vmem>>, vector<2x4x1x16xf32>
    %63 = vector.shape_cast %62 : vector<2x4x1x16xf32> to vector<2x4x16xf32>
    %64 = arith.truncf %63 : vector<2x4x16xf32> to vector<2x4x16xbf16>
    %c0_81 = arith.constant 0 : index
    %c0_82 = arith.constant 0 : index
    %c289 = arith.constant 289 : index
    %65 = vector.load %arg5[%c0_81, %c0_82, %c289] : memref<2x16x512xbf16, #tpu.memory_space<vmem>>, vector<2x4x16xbf16>
    tpu.vector_store %arg5[%c0_81, %c0_82, %c289], %64 {strides = array<i32>} : memref<2x16x512xbf16, #tpu.memory_space<vmem>>, vector<2x4x16xbf16>,
    %c0_83 = arith.constant 0 : index
    %c0_84 = arith.constant 0 : index
    %c0_85 = arith.constant 0 : index
    %66 = vector.load %arg5[%c0_83, %c0_84, %c0_85] : memref<2x16x512xbf16, #tpu.memory_space<vmem>>, vector<1x16x384xbf16>
    %67 = vector.shape_cast %66 : vector<1x16x384xbf16> to vector<16x384xbf16>
    %c0_86 = arith.constant 0 : index
    %c0_87 = arith.constant 0 : index
    %68 = vector.load %arg6[%c0_86, %c0_87] : memref<144x768xbf16, #tpu.memory_space<vmem>>, vector<16x384xbf16>
    tpu.vector_store %arg6[%c0_86, %c0_87], %67 {strides = array<i32>} : memref<144x768xbf16, #tpu.memory_space<vmem>>, vector<16x384xbf16>,
    %c1_88 = arith.constant 1 : index
    %c0_89 = arith.constant 0 : index
    %c0_90 = arith.constant 0 : index
    %69 = vector.load %arg5[%c1_88, %c0_89, %c0_90] : memref<2x16x512xbf16, #tpu.memory_space<vmem>>, vector<1x16x384xbf16>
    %70 = vector.shape_cast %69 : vector<1x16x384xbf16> to vector<16x384xbf16>
    %c0_91 = arith.constant 0 : index
    %c384 = arith.constant 384 : index
    %71 = vector.load %arg6[%c0_91, %c384] : memref<144x768xbf16, #tpu.memory_space<vmem>>, vector<16x384xbf16>
    tpu.vector_store %arg6[%c0_91, %c384], %70 {strides = array<i32>} : memref<144x768xbf16, #tpu.memory_space<vmem>>, vector<16x384xbf16>,
    %c0_92 = arith.constant 0 : index
    %c0_93 = arith.constant 0 : index
    %c1_94 = arith.constant 1 : index
    %72 = vector.load %arg5[%c0_92, %c0_93, %c1_94] : memref<2x16x512xbf16, #tpu.memory_space<vmem>>, vector<1x16x384xbf16>
    %73 = vector.shape_cast %72 : vector<1x16x384xbf16> to vector<16x384xbf16>
    %c16 = arith.constant 16 : index
    %c0_95 = arith.constant 0 : index
    %74 = vector.load %arg6[%c16, %c0_95] : memref<144x768xbf16, #tpu.memory_space<vmem>>, vector<16x384xbf16>
    tpu.vector_store %arg6[%c16, %c0_95], %73 {strides = array<i32>} : memref<144x768xbf16, #tpu.memory_space<vmem>>, vector<16x384xbf16>,
    %c1_96 = arith.constant 1 : index
    %c0_97 = arith.constant 0 : index
    %c1_98 = arith.constant 1 : index
    %75 = vector.load %arg5[%c1_96, %c0_97, %c1_98] : memref<2x16x512xbf16, #tpu.memory_space<vmem>>, vector<1x16x384xbf16>
    %76 = vector.shape_cast %75 : vector<1x16x384xbf16> to vector<16x384xbf16>
    %c16_99 = arith.constant 16 : index
    %c384_100 = arith.constant 384 : index
    %77 = vector.load %arg6[%c16_99, %c384_100] : memref<144x768xbf16, #tpu.memory_space<vmem>>, vector<16x384xbf16>
    tpu.vector_store %arg6[%c16_99, %c384_100], %76 {strides = array<i32>} : memref<144x768xbf16, #tpu.memory_space<vmem>>, vector<16x384xbf16>,
    %c0_101 = arith.constant 0 : index
    %c0_102 = arith.constant 0 : index
    %c2_103 = arith.constant 2 : index
    %78 = vector.load %arg5[%c0_101, %c0_102, %c2_103] : memref<2x16x512xbf16, #tpu.memory_space<vmem>>, vector<1x16x384xbf16>
    %79 = vector.shape_cast %78 : vector<1x16x384xbf16> to vector<16x384xbf16>
    %c32 = arith.constant 32 : index
    %c0_104 = arith.constant 0 : index
    %80 = vector.load %arg6[%c32, %c0_104] : memref<144x768xbf16, #tpu.memory_space<vmem>>, vector<16x384xbf16>
    tpu.vector_store %arg6[%c32, %c0_104], %79 {strides = array<i32>} : memref<144x768xbf16, #tpu.memory_space<vmem>>, vector<16x384xbf16>,
    %c1_105 = arith.constant 1 : index
    %c0_106 = arith.constant 0 : index
    %c2_107 = arith.constant 2 : index
    %81 = vector.load %arg5[%c1_105, %c0_106, %c2_107] : memref<2x16x512xbf16, #tpu.memory_space<vmem>>, vector<1x16x384xbf16>
    %82 = vector.shape_cast %81 : vector<1x16x384xbf16> to vector<16x384xbf16>
    %c32_108 = arith.constant 32 : index
    %c384_109 = arith.constant 384 : index
    %83 = vector.load %arg6[%c32_108, %c384_109] : memref<144x768xbf16, #tpu.memory_space<vmem>>, vector<16x384xbf16>
    tpu.vector_store %arg6[%c32_108, %c384_109], %82 {strides = array<i32>} : memref<144x768xbf16, #tpu.memory_space<vmem>>, vector<16x384xbf16>,
    %c0_110 = arith.constant 0 : index
    %c0_111 = arith.constant 0 : index
    %c18 = arith.constant 18 : index
    %84 = vector.load %arg5[%c0_110, %c0_111, %c18] : memref<2x16x512xbf16, #tpu.memory_space<vmem>>, vector<1x16x384xbf16>
    %85 = vector.shape_cast %84 : vector<1x16x384xbf16> to vector<16x384xbf16>
    %c48 = arith.constant 48 : index
    %c0_112 = arith.constant 0 : index
    %86 = vector.load %arg6[%c48, %c0_112] : memref<144x768xbf16, #tpu.memory_space<vmem>>, vector<16x384xbf16>
    tpu.vector_store %arg6[%c48, %c0_112], %85 {strides = array<i32>} : memref<144x768xbf16, #tpu.memory_space<vmem>>, vector<16x384xbf16>,
    %c1_113 = arith.constant 1 : index
    %c0_114 = arith.constant 0 : index
    %c18_115 = arith.constant 18 : index
    %87 = vector.load %arg5[%c1_113, %c0_114, %c18_115] : memref<2x16x512xbf16, #tpu.memory_space<vmem>>, vector<1x16x384xbf16>
    %88 = vector.shape_cast %87 : vector<1x16x384xbf16> to vector<16x384xbf16>
    %c48_116 = arith.constant 48 : index
    %c384_117 = arith.constant 384 : index
    %89 = vector.load %arg6[%c48_116, %c384_117] : memref<144x768xbf16, #tpu.memory_space<vmem>>, vector<16x384xbf16>
    tpu.vector_store %arg6[%c48_116, %c384_117], %88 {strides = array<i32>} : memref<144x768xbf16, #tpu.memory_space<vmem>>, vector<16x384xbf16>,
    %c0_118 = arith.constant 0 : index
    %c0_119 = arith.constant 0 : index
    %c19_120 = arith.constant 19 : index
    %90 = vector.load %arg5[%c0_118, %c0_119, %c19_120] : memref<2x16x512xbf16, #tpu.memory_space<vmem>>, vector<1x16x384xbf16>
    %91 = vector.shape_cast %90 : vector<1x16x384xbf16> to vector<16x384xbf16>
    %c64 = arith.constant 64 : index
    %c0_121 = arith.constant 0 : index
    %92 = vector.load %arg6[%c64, %c0_121] : memref<144x768xbf16, #tpu.memory_space<vmem>>, vector<16x384xbf16>
    tpu.vector_store %arg6[%c64, %c0_121], %91 {strides = array<i32>} : memref<144x768xbf16, #tpu.memory_space<vmem>>, vector<16x384xbf16>,
    %c1_122 = arith.constant 1 : index
    %c0_123 = arith.constant 0 : index
    %c19_124 = arith.constant 19 : index
    %93 = vector.load %arg5[%c1_122, %c0_123, %c19_124] : memref<2x16x512xbf16, #tpu.memory_space<vmem>>, vector<1x16x384xbf16>
    %94 = vector.shape_cast %93 : vector<1x16x384xbf16> to vector<16x384xbf16>
    %c64_125 = arith.constant 64 : index
    %c384_126 = arith.constant 384 : index
    %95 = vector.load %arg6[%c64_125, %c384_126] : memref<144x768xbf16, #tpu.memory_space<vmem>>, vector<16x384xbf16>
    tpu.vector_store %arg6[%c64_125, %c384_126], %94 {strides = array<i32>} : memref<144x768xbf16, #tpu.memory_space<vmem>>, vector<16x384xbf16>,
    %c0_127 = arith.constant 0 : index
    %c0_128 = arith.constant 0 : index
    %c20 = arith.constant 20 : index
    %96 = vector.load %arg5[%c0_127, %c0_128, %c20] : memref<2x16x512xbf16, #tpu.memory_space<vmem>>, vector<1x16x384xbf16>
    %97 = vector.shape_cast %96 : vector<1x16x384xbf16> to vector<16x384xbf16>
    %c80 = arith.constant 80 : index
    %c0_129 = arith.constant 0 : index
    %98 = vector.load %arg6[%c80, %c0_129] : memref<144x768xbf16, #tpu.memory_space<vmem>>, vector<16x384xbf16>
    tpu.vector_store %arg6[%c80, %c0_129], %97 {strides = array<i32>} : memref<144x768xbf16, #tpu.memory_space<vmem>>, vector<16x384xbf16>,
    %c1_130 = arith.constant 1 : index
    %c0_131 = arith.constant 0 : index
    %c20_132 = arith.constant 20 : index
    %99 = vector.load %arg5[%c1_130, %c0_131, %c20_132] : memref<2x16x512xbf16, #tpu.memory_space<vmem>>, vector<1x16x384xbf16>
    %100 = vector.shape_cast %99 : vector<1x16x384xbf16> to vector<16x384xbf16>
    %c80_133 = arith.constant 80 : index
    %c384_134 = arith.constant 384 : index
    %101 = vector.load %arg6[%c80_133, %c384_134] : memref<144x768xbf16, #tpu.memory_space<vmem>>, vector<16x384xbf16>
    tpu.vector_store %arg6[%c80_133, %c384_134], %100 {strides = array<i32>} : memref<144x768xbf16, #tpu.memory_space<vmem>>, vector<16x384xbf16>,
    %c0_135 = arith.constant 0 : index
    %c0_136 = arith.constant 0 : index
    %c36 = arith.constant 36 : index
    %102 = vector.load %arg5[%c0_135, %c0_136, %c36] : memref<2x16x512xbf16, #tpu.memory_space<vmem>>, vector<1x16x384xbf16>
    %103 = vector.shape_cast %102 : vector<1x16x384xbf16> to vector<16x384xbf16>
    %c96 = arith.constant 96 : index
    %c0_137 = arith.constant 0 : index
    %104 = vector.load %arg6[%c96, %c0_137] : memref<144x768xbf16, #tpu.memory_space<vmem>>, vector<16x384xbf16>
    tpu.vector_store %arg6[%c96, %c0_137], %103 {strides = array<i32>} : memref<144x768xbf16, #tpu.memory_space<vmem>>, vector<16x384xbf16>,
    %c1_138 = arith.constant 1 : index
    %c0_139 = arith.constant 0 : index
    %c36_140 = arith.constant 36 : index
    %105 = vector.load %arg5[%c1_138, %c0_139, %c36_140] : memref<2x16x512xbf16, #tpu.memory_space<vmem>>, vector<1x16x384xbf16>
    %106 = vector.shape_cast %105 : vector<1x16x384xbf16> to vector<16x384xbf16>
    %c96_141 = arith.constant 96 : index
    %c384_142 = arith.constant 384 : index
    %107 = vector.load %arg6[%c96_141, %c384_142] : memref<144x768xbf16, #tpu.memory_space<vmem>>, vector<16x384xbf16>
    tpu.vector_store %arg6[%c96_141, %c384_142], %106 {strides = array<i32>} : memref<144x768xbf16, #tpu.memory_space<vmem>>, vector<16x384xbf16>,
    %c0_143 = arith.constant 0 : index
    %c0_144 = arith.constant 0 : index
    %c37_145 = arith.constant 37 : index
    %108 = vector.load %arg5[%c0_143, %c0_144, %c37_145] : memref<2x16x512xbf16, #tpu.memory_space<vmem>>, vector<1x16x384xbf16>
    %109 = vector.shape_cast %108 : vector<1x16x384xbf16> to vector<16x384xbf16>
    %c112 = arith.constant 112 : index
    %c0_146 = arith.constant 0 : index
    %110 = vector.load %arg6[%c112, %c0_146] : memref<144x768xbf16, #tpu.memory_space<vmem>>, vector<16x384xbf16>
    tpu.vector_store %arg6[%c112, %c0_146], %109 {strides = array<i32>} : memref<144x768xbf16, #tpu.memory_space<vmem>>, vector<16x384xbf16>,
    %c1_147 = arith.constant 1 : index
    %c0_148 = arith.constant 0 : index
    %c37_149 = arith.constant 37 : index
    %111 = vector.load %arg5[%c1_147, %c0_148, %c37_149] : memref<2x16x512xbf16, #tpu.memory_space<vmem>>, vector<1x16x384xbf16>
    %112 = vector.shape_cast %111 : vector<1x16x384xbf16> to vector<16x384xbf16>
    %c112_150 = arith.constant 112 : index
    %c384_151 = arith.constant 384 : index
    %113 = vector.load %arg6[%c112_150, %c384_151] : memref<144x768xbf16, #tpu.memory_space<vmem>>, vector<16x384xbf16>
    tpu.vector_store %arg6[%c112_150, %c384_151], %112 {strides = array<i32>} : memref<144x768xbf16, #tpu.memory_space<vmem>>, vector<16x384xbf16>,
    %c0_152 = arith.constant 0 : index
    %c0_153 = arith.constant 0 : index
    %c38 = arith.constant 38 : index
    %114 = vector.load %arg5[%c0_152, %c0_153, %c38] : memref<2x16x512xbf16, #tpu.memory_space<vmem>>, vector<1x16x384xbf16>
    %115 = vector.shape_cast %114 : vector<1x16x384xbf16> to vector<16x384xbf16>
    %c128 = arith.constant 128 : index
    %c0_154 = arith.constant 0 : index
    %116 = vector.load %arg6[%c128, %c0_154] : memref<144x768xbf16, #tpu.memory_space<vmem>>, vector<16x384xbf16>
    tpu.vector_store %arg6[%c128, %c0_154], %115 {strides = array<i32>} : memref<144x768xbf16, #tpu.memory_space<vmem>>, vector<16x384xbf16>,
    %c1_155 = arith.constant 1 : index
    %c0_156 = arith.constant 0 : index
    %c38_157 = arith.constant 38 : index
    %117 = vector.load %arg5[%c1_155, %c0_156, %c38_157] : memref<2x16x512xbf16, #tpu.memory_space<vmem>>, vector<1x16x384xbf16>
    %118 = vector.shape_cast %117 : vector<1x16x384xbf16> to vector<16x384xbf16>
    %c128_158 = arith.constant 128 : index
    %c384_159 = arith.constant 384 : index
    %119 = vector.load %arg6[%c128_158, %c384_159] : memref<144x768xbf16, #tpu.memory_space<vmem>>, vector<16x384xbf16>
    tpu.vector_store %arg6[%c128_158, %c384_159], %118 {strides = array<i32>} : memref<144x768xbf16, #tpu.memory_space<vmem>>, vector<16x384xbf16>,
    %c0_160 = arith.constant 0 : index
    %c0_161 = arith.constant 0 : index
    %120 = vector.load %arg2[%c0_160, %c0_161] : memref<8x144xbf16, #tpu.memory_space<vmem>>, vector<8x144xbf16>
    %c0_162 = arith.constant 0 : index
    %c0_163 = arith.constant 0 : index
    %121 = vector.load %arg6[%c0_162, %c0_163] : memref<144x768xbf16, #tpu.memory_space<vmem>>, vector<144x768xbf16>
    %cst_164 = arith.constant dense<0.000000e+00> : vector<8x768xf32>
    %122 = tpu.matmul %120, %121, %cst_164 {dimension_numbers = #tpu.dot_dimension_numbers<[1], [0], [0], [1], [0, 0, 1, 1], [], []>} : vector<8x144xbf16>, vector<144x768xbf16>, vector<8x768xf32> -> vector<8x768xf32>
    %c0_165 = arith.constant 0 : index
    %c0_166 = arith.constant 0 : index
    %123 = vector.load %arg3[%c0_165, %c0_166] : memref<8x1xf32, #tpu.memory_space<vmem>>, vector<8x1xf32>
    %124 = vector.broadcast %123 : vector<8x1xf32> to vector<8x768xf32>
    %125 = arith.addf %122, %124 : vector<8x768xf32>
    %cst_167 = arith.constant 0.000000e+00 : f32
    %126 = vector.broadcast %cst_167 : f32 to vector<8x768xf32>
    %127 = arith.maximumf %125, %126 : vector<8x768xf32>
    %128 = vector.extract_strided_slice %127 {offsets = [0, 0], sizes = [8, 16], strides = [1, 1]} : vector<8x768xf32> to vector<8x16xf32>
    %c0_168 = arith.constant 0 : index
    %c0_169 = arith.constant 0 : index
    %c0_170 = arith.constant 0 : index
    %c0_171 = arith.constant 0 : index
    %129 = vector.load %arg4[%c0_168, %c0_169, %c0_170, %c0_171] : memref<2x8x16x16xf32, #tpu.memory_space<vmem>>, vector<1x8x1x16xf32>
    %130 = vector.shape_cast %129 : vector<1x8x1x16xf32> to vector<8x16xf32>
    %131 = vector.shape_cast %128 : vector<8x16xf32> to vector<1x8x1x16xf32>
    tpu.vector_store %arg4[%c0_168, %c0_169, %c0_170, %c0_171], %131 {strides = array<i32>} : memref<2x8x16x16xf32, #tpu.memory_space<vmem>>, vector<1x8x1x16xf32>,
    %132 = vector.extract_strided_slice %127 {offsets = [0, 18], sizes = [8, 16], strides = [1, 1]} : vector<8x768xf32> to vector<8x16xf32>
    %c0_172 = arith.constant 0 : index
    %c0_173 = arith.constant 0 : index
    %c1_174 = arith.constant 1 : index
    %c0_175 = arith.constant 0 : index
    %133 = vector.load %arg4[%c0_172, %c0_173, %c1_174, %c0_175] : memref<2x8x16x16xf32, #tpu.memory_space<vmem>>, vector<1x8x1x16xf32>
    %134 = vector.shape_cast %133 : vector<1x8x1x16xf32> to vector<8x16xf32>
    %135 = vector.shape_cast %132 : vector<8x16xf32> to vector<1x8x1x16xf32>
    tpu.vector_store %arg4[%c0_172, %c0_173, %c1_174, %c0_175], %135 {strides = array<i32>} : memref<2x8x16x16xf32, #tpu.memory_space<vmem>>, vector<1x8x1x16xf32>,
    %136 = vector.extract_strided_slice %127 {offsets = [0, 36], sizes = [8, 16], strides = [1, 1]} : vector<8x768xf32> to vector<8x16xf32>
    %c0_176 = arith.constant 0 : index
    %c0_177 = arith.constant 0 : index
    %c2_178 = arith.constant 2 : index
    %c0_179 = arith.constant 0 : index
    %137 = vector.load %arg4[%c0_176, %c0_177, %c2_178, %c0_179] : memref<2x8x16x16xf32, #tpu.memory_space<vmem>>, vector<1x8x1x16xf32>
    %138 = vector.shape_cast %137 : vector<1x8x1x16xf32> to vector<8x16xf32>
    %139 = vector.shape_cast %136 : vector<8x16xf32> to vector<1x8x1x16xf32>
    tpu.vector_store %arg4[%c0_176, %c0_177, %c2_178, %c0_179], %139 {strides = array<i32>} : memref<2x8x16x16xf32, #tpu.memory_space<vmem>>, vector<1x8x1x16xf32>,
    %140 = vector.extract_strided_slice %127 {offsets = [0, 54], sizes = [8, 16], strides = [1, 1]} : vector<8x768xf32> to vector<8x16xf32>
    %c0_180 = arith.constant 0 : index
    %c0_181 = arith.constant 0 : index
    %c3_182 = arith.constant 3 : index
    %c0_183 = arith.constant 0 : index
    %141 = vector.load %arg4[%c0_180, %c0_181, %c3_182, %c0_183] : memref<2x8x16x16xf32, #tpu.memory_space<vmem>>, vector<1x8x1x16xf32>
    %142 = vector.shape_cast %141 : vector<1x8x1x16xf32> to vector<8x16xf32>
    %143 = vector.shape_cast %140 : vector<8x16xf32> to vector<1x8x1x16xf32>
    tpu.vector_store %arg4[%c0_180, %c0_181, %c3_182, %c0_183], %143 {strides = array<i32>} : memref<2x8x16x16xf32, #tpu.memory_space<vmem>>, vector<1x8x1x16xf32>,
    %144 = vector.extract_strided_slice %127 {offsets = [0, 72], sizes = [8, 16], strides = [1, 1]} : vector<8x768xf32> to vector<8x16xf32>
    %c0_184 = arith.constant 0 : index
    %c0_185 = arith.constant 0 : index
    %c4_186 = arith.constant 4 : index
    %c0_187 = arith.constant 0 : index
    %145 = vector.load %arg4[%c0_184, %c0_185, %c4_186, %c0_187] : memref<2x8x16x16xf32, #tpu.memory_space<vmem>>, vector<1x8x1x16xf32>
    %146 = vector.shape_cast %145 : vector<1x8x1x16xf32> to vector<8x16xf32>
    %147 = vector.shape_cast %144 : vector<8x16xf32> to vector<1x8x1x16xf32>
    tpu.vector_store %arg4[%c0_184, %c0_185, %c4_186, %c0_187], %147 {strides = array<i32>} : memref<2x8x16x16xf32, #tpu.memory_space<vmem>>, vector<1x8x1x16xf32>,
    %148 = vector.extract_strided_slice %127 {offsets = [0, 90], sizes = [8, 16], strides = [1, 1]} : vector<8x768xf32> to vector<8x16xf32>
    %c0_188 = arith.constant 0 : index
    %c0_189 = arith.constant 0 : index
    %c5_190 = arith.constant 5 : index
    %c0_191 = arith.constant 0 : index
    %149 = vector.load %arg4[%c0_188, %c0_189, %c5_190, %c0_191] : memref<2x8x16x16xf32, #tpu.memory_space<vmem>>, vector<1x8x1x16xf32>
    %150 = vector.shape_cast %149 : vector<1x8x1x16xf32> to vector<8x16xf32>
    %151 = vector.shape_cast %148 : vector<8x16xf32> to vector<1x8x1x16xf32>
    tpu.vector_store %arg4[%c0_188, %c0_189, %c5_190, %c0_191], %151 {strides = array<i32>} : memref<2x8x16x16xf32, #tpu.memory_space<vmem>>, vector<1x8x1x16xf32>,
    %152 = vector.extract_strided_slice %127 {offsets = [0, 108], sizes = [8, 16], strides = [1, 1]} : vector<8x768xf32> to vector<8x16xf32>
    %c0_192 = arith.constant 0 : index
    %c0_193 = arith.constant 0 : index
    %c6_194 = arith.constant 6 : index
    %c0_195 = arith.constant 0 : index
    %153 = vector.load %arg4[%c0_192, %c0_193, %c6_194, %c0_195] : memref<2x8x16x16xf32, #tpu.memory_space<vmem>>, vector<1x8x1x16xf32>
    %154 = vector.shape_cast %153 : vector<1x8x1x16xf32> to vector<8x16xf32>
    %155 = vector.shape_cast %152 : vector<8x16xf32> to vector<1x8x1x16xf32>
    tpu.vector_store %arg4[%c0_192, %c0_193, %c6_194, %c0_195], %155 {strides = array<i32>} : memref<2x8x16x16xf32, #tpu.memory_space<vmem>>, vector<1x8x1x16xf32>,
    %156 = vector.extract_strided_slice %127 {offsets = [0, 126], sizes = [8, 16], strides = [1, 1]} : vector<8x768xf32> to vector<8x16xf32>
    %c0_196 = arith.constant 0 : index
    %c0_197 = arith.constant 0 : index
    %c7_198 = arith.constant 7 : index
    %c0_199 = arith.constant 0 : index
    %157 = vector.load %arg4[%c0_196, %c0_197, %c7_198, %c0_199] : memref<2x8x16x16xf32, #tpu.memory_space<vmem>>, vector<1x8x1x16xf32>
    %158 = vector.shape_cast %157 : vector<1x8x1x16xf32> to vector<8x16xf32>
    %159 = vector.shape_cast %156 : vector<8x16xf32> to vector<1x8x1x16xf32>
    tpu.vector_store %arg4[%c0_196, %c0_197, %c7_198, %c0_199], %159 {strides = array<i32>} : memref<2x8x16x16xf32, #tpu.memory_space<vmem>>, vector<1x8x1x16xf32>,
    %160 = vector.extract_strided_slice %127 {offsets = [0, 144], sizes = [8, 16], strides = [1, 1]} : vector<8x768xf32> to vector<8x16xf32>
    %c0_200 = arith.constant 0 : index
    %c0_201 = arith.constant 0 : index
    %c8_202 = arith.constant 8 : index
    %c0_203 = arith.constant 0 : index
    %161 = vector.load %arg4[%c0_200, %c0_201, %c8_202, %c0_203] : memref<2x8x16x16xf32, #tpu.memory_space<vmem>>, vector<1x8x1x16xf32>
    %162 = vector.shape_cast %161 : vector<1x8x1x16xf32> to vector<8x16xf32>
    %163 = vector.shape_cast %160 : vector<8x16xf32> to vector<1x8x1x16xf32>
    tpu.vector_store %arg4[%c0_200, %c0_201, %c8_202, %c0_203], %163 {strides = array<i32>} : memref<2x8x16x16xf32, #tpu.memory_space<vmem>>, vector<1x8x1x16xf32>,
    %164 = vector.extract_strided_slice %127 {offsets = [0, 162], sizes = [8, 16], strides = [1, 1]} : vector<8x768xf32> to vector<8x16xf32>
    %c0_204 = arith.constant 0 : index
    %c0_205 = arith.constant 0 : index
    %c9_206 = arith.constant 9 : index
    %c0_207 = arith.constant 0 : index
    %165 = vector.load %arg4[%c0_204, %c0_205, %c9_206, %c0_207] : memref<2x8x16x16xf32, #tpu.memory_space<vmem>>, vector<1x8x1x16xf32>
    %166 = vector.shape_cast %165 : vector<1x8x1x16xf32> to vector<8x16xf32>
    %167 = vector.shape_cast %164 : vector<8x16xf32> to vector<1x8x1x16xf32>
    tpu.vector_store %arg4[%c0_204, %c0_205, %c9_206, %c0_207], %167 {strides = array<i32>} : memref<2x8x16x16xf32, #tpu.memory_space<vmem>>, vector<1x8x1x16xf32>,
    %168 = vector.extract_strided_slice %127 {offsets = [0, 180], sizes = [8, 16], strides = [1, 1]} : vector<8x768xf32> to vector<8x16xf32>
    %c0_208 = arith.constant 0 : index
    %c0_209 = arith.constant 0 : index
    %c10_210 = arith.constant 10 : index
    %c0_211 = arith.constant 0 : index
    %169 = vector.load %arg4[%c0_208, %c0_209, %c10_210, %c0_211] : memref<2x8x16x16xf32, #tpu.memory_space<vmem>>, vector<1x8x1x16xf32>
    %170 = vector.shape_cast %169 : vector<1x8x1x16xf32> to vector<8x16xf32>
    %171 = vector.shape_cast %168 : vector<8x16xf32> to vector<1x8x1x16xf32>
    tpu.vector_store %arg4[%c0_208, %c0_209, %c10_210, %c0_211], %171 {strides = array<i32>} : memref<2x8x16x16xf32, #tpu.memory_space<vmem>>, vector<1x8x1x16xf32>,
    %172 = vector.extract_strided_slice %127 {offsets = [0, 198], sizes = [8, 16], strides = [1, 1]} : vector<8x768xf32> to vector<8x16xf32>
    %c0_212 = arith.constant 0 : index
    %c0_213 = arith.constant 0 : index
    %c11_214 = arith.constant 11 : index
    %c0_215 = arith.constant 0 : index
    %173 = vector.load %arg4[%c0_212, %c0_213, %c11_214, %c0_215] : memref<2x8x16x16xf32, #tpu.memory_space<vmem>>, vector<1x8x1x16xf32>
    %174 = vector.shape_cast %173 : vector<1x8x1x16xf32> to vector<8x16xf32>
    %175 = vector.shape_cast %172 : vector<8x16xf32> to vector<1x8x1x16xf32>
    tpu.vector_store %arg4[%c0_212, %c0_213, %c11_214, %c0_215], %175 {strides = array<i32>} : memref<2x8x16x16xf32, #tpu.memory_space<vmem>>, vector<1x8x1x16xf32>,
    %176 = vector.extract_strided_slice %127 {offsets = [0, 216], sizes = [8, 16], strides = [1, 1]} : vector<8x768xf32> to vector<8x16xf32>
    %c0_216 = arith.constant 0 : index
    %c0_217 = arith.constant 0 : index
    %c12_218 = arith.constant 12 : index
    %c0_219 = arith.constant 0 : index
    %177 = vector.load %arg4[%c0_216, %c0_217, %c12_218, %c0_219] : memref<2x8x16x16xf32, #tpu.memory_space<vmem>>, vector<1x8x1x16xf32>
    %178 = vector.shape_cast %177 : vector<1x8x1x16xf32> to vector<8x16xf32>
    %179 = vector.shape_cast %176 : vector<8x16xf32> to vector<1x8x1x16xf32>
    tpu.vector_store %arg4[%c0_216, %c0_217, %c12_218, %c0_219], %179 {strides = array<i32>} : memref<2x8x16x16xf32, #tpu.memory_space<vmem>>, vector<1x8x1x16xf32>,
    %180 = vector.extract_strided_slice %127 {offsets = [0, 234], sizes = [8, 16], strides = [1, 1]} : vector<8x768xf32> to vector<8x16xf32>
    %c0_220 = arith.constant 0 : index
    %c0_221 = arith.constant 0 : index
    %c13_222 = arith.constant 13 : index
    %c0_223 = arith.constant 0 : index
    %181 = vector.load %arg4[%c0_220, %c0_221, %c13_222, %c0_223] : memref<2x8x16x16xf32, #tpu.memory_space<vmem>>, vector<1x8x1x16xf32>
    %182 = vector.shape_cast %181 : vector<1x8x1x16xf32> to vector<8x16xf32>
    %183 = vector.shape_cast %180 : vector<8x16xf32> to vector<1x8x1x16xf32>
    tpu.vector_store %arg4[%c0_220, %c0_221, %c13_222, %c0_223], %183 {strides = array<i32>} : memref<2x8x16x16xf32, #tpu.memory_space<vmem>>, vector<1x8x1x16xf32>,
    %184 = vector.extract_strided_slice %127 {offsets = [0, 252], sizes = [8, 16], strides = [1, 1]} : vector<8x768xf32> to vector<8x16xf32>
    %c0_224 = arith.constant 0 : index
    %c0_225 = arith.constant 0 : index
    %c14_226 = arith.constant 14 : index
    %c0_227 = arith.constant 0 : index
    %185 = vector.load %arg4[%c0_224, %c0_225, %c14_226, %c0_227] : memref<2x8x16x16xf32, #tpu.memory_space<vmem>>, vector<1x8x1x16xf32>
    %186 = vector.shape_cast %185 : vector<1x8x1x16xf32> to vector<8x16xf32>
    %187 = vector.shape_cast %184 : vector<8x16xf32> to vector<1x8x1x16xf32>
    tpu.vector_store %arg4[%c0_224, %c0_225, %c14_226, %c0_227], %187 {strides = array<i32>} : memref<2x8x16x16xf32, #tpu.memory_space<vmem>>, vector<1x8x1x16xf32>,
    %188 = vector.extract_strided_slice %127 {offsets = [0, 270], sizes = [8, 16], strides = [1, 1]} : vector<8x768xf32> to vector<8x16xf32>
    %c0_228 = arith.constant 0 : index
    %c0_229 = arith.constant 0 : index
    %c15_230 = arith.constant 15 : index
    %c0_231 = arith.constant 0 : index
    %189 = vector.load %arg4[%c0_228, %c0_229, %c15_230, %c0_231] : memref<2x8x16x16xf32, #tpu.memory_space<vmem>>, vector<1x8x1x16xf32>
    %190 = vector.shape_cast %189 : vector<1x8x1x16xf32> to vector<8x16xf32>
    %191 = vector.shape_cast %188 : vector<8x16xf32> to vector<1x8x1x16xf32>
    tpu.vector_store %arg4[%c0_228, %c0_229, %c15_230, %c0_231], %191 {strides = array<i32>} : memref<2x8x16x16xf32, #tpu.memory_space<vmem>>, vector<1x8x1x16xf32>,
    %192 = vector.extract_strided_slice %127 {offsets = [0, 384], sizes = [8, 16], strides = [1, 1]} : vector<8x768xf32> to vector<8x16xf32>
    %c1_232 = arith.constant 1 : index
    %c0_233 = arith.constant 0 : index
    %c0_234 = arith.constant 0 : index
    %c0_235 = arith.constant 0 : index
    %193 = vector.load %arg4[%c1_232, %c0_233, %c0_234, %c0_235] : memref<2x8x16x16xf32, #tpu.memory_space<vmem>>, vector<1x8x1x16xf32>
    %194 = vector.shape_cast %193 : vector<1x8x1x16xf32> to vector<8x16xf32>
    %195 = vector.shape_cast %192 : vector<8x16xf32> to vector<1x8x1x16xf32>
    tpu.vector_store %arg4[%c1_232, %c0_233, %c0_234, %c0_235], %195 {strides = array<i32>} : memref<2x8x16x16xf32, #tpu.memory_space<vmem>>, vector<1x8x1x16xf32>,
    %196 = vector.extract_strided_slice %127 {offsets = [0, 402], sizes = [8, 16], strides = [1, 1]} : vector<8x768xf32> to vector<8x16xf32>
    %c1_236 = arith.constant 1 : index
    %c0_237 = arith.constant 0 : index
    %c1_238 = arith.constant 1 : index
    %c0_239 = arith.constant 0 : index
    %197 = vector.load %arg4[%c1_236, %c0_237, %c1_238, %c0_239] : memref<2x8x16x16xf32, #tpu.memory_space<vmem>>, vector<1x8x1x16xf32>
    %198 = vector.shape_cast %197 : vector<1x8x1x16xf32> to vector<8x16xf32>
    %199 = vector.shape_cast %196 : vector<8x16xf32> to vector<1x8x1x16xf32>
    tpu.vector_store %arg4[%c1_236, %c0_237, %c1_238, %c0_239], %199 {strides = array<i32>} : memref<2x8x16x16xf32, #tpu.memory_space<vmem>>, vector<1x8x1x16xf32>,
    %200 = vector.extract_strided_slice %127 {offsets = [0, 420], sizes = [8, 16], strides = [1, 1]} : vector<8x768xf32> to vector<8x16xf32>
    %c1_240 = arith.constant 1 : index
    %c0_241 = arith.constant 0 : index
    %c2_242 = arith.constant 2 : index
    %c0_243 = arith.constant 0 : index
    %201 = vector.load %arg4[%c1_240, %c0_241, %c2_242, %c0_243] : memref<2x8x16x16xf32, #tpu.memory_space<vmem>>, vector<1x8x1x16xf32>
    %202 = vector.shape_cast %201 : vector<1x8x1x16xf32> to vector<8x16xf32>
    %203 = vector.shape_cast %200 : vector<8x16xf32> to vector<1x8x1x16xf32>
    tpu.vector_store %arg4[%c1_240, %c0_241, %c2_242, %c0_243], %203 {strides = array<i32>} : memref<2x8x16x16xf32, #tpu.memory_space<vmem>>, vector<1x8x1x16xf32>,
    %204 = vector.extract_strided_slice %127 {offsets = [0, 438], sizes = [8, 16], strides = [1, 1]} : vector<8x768xf32> to vector<8x16xf32>
    %c1_244 = arith.constant 1 : index
    %c0_245 = arith.constant 0 : index
    %c3_246 = arith.constant 3 : index
    %c0_247 = arith.constant 0 : index
    %205 = vector.load %arg4[%c1_244, %c0_245, %c3_246, %c0_247] : memref<2x8x16x16xf32, #tpu.memory_space<vmem>>, vector<1x8x1x16xf32>
    %206 = vector.shape_cast %205 : vector<1x8x1x16xf32> to vector<8x16xf32>
    %207 = vector.shape_cast %204 : vector<8x16xf32> to vector<1x8x1x16xf32>
    tpu.vector_store %arg4[%c1_244, %c0_245, %c3_246, %c0_247], %207 {strides = array<i32>} : memref<2x8x16x16xf32, #tpu.memory_space<vmem>>, vector<1x8x1x16xf32>,
    %208 = vector.extract_strided_slice %127 {offsets = [0, 456], sizes = [8, 16], strides = [1, 1]} : vector<8x768xf32> to vector<8x16xf32>
    %c1_248 = arith.constant 1 : index
    %c0_249 = arith.constant 0 : index
    %c4_250 = arith.constant 4 : index
    %c0_251 = arith.constant 0 : index
    %209 = vector.load %arg4[%c1_248, %c0_249, %c4_250, %c0_251] : memref<2x8x16x16xf32, #tpu.memory_space<vmem>>, vector<1x8x1x16xf32>
    %210 = vector.shape_cast %209 : vector<1x8x1x16xf32> to vector<8x16xf32>
    %211 = vector.shape_cast %208 : vector<8x16xf32> to vector<1x8x1x16xf32>
    tpu.vector_store %arg4[%c1_248, %c0_249, %c4_250, %c0_251], %211 {strides = array<i32>} : memref<2x8x16x16xf32, #tpu.memory_space<vmem>>, vector<1x8x1x16xf32>,
    %212 = vector.extract_strided_slice %127 {offsets = [0, 474], sizes = [8, 16], strides = [1, 1]} : vector<8x768xf32> to vector<8x16xf32>
    %c1_252 = arith.constant 1 : index
    %c0_253 = arith.constant 0 : index
    %c5_254 = arith.constant 5 : index
    %c0_255 = arith.constant 0 : index
    %213 = vector.load %arg4[%c1_252, %c0_253, %c5_254, %c0_255] : memref<2x8x16x16xf32, #tpu.memory_space<vmem>>, vector<1x8x1x16xf32>
    %214 = vector.shape_cast %213 : vector<1x8x1x16xf32> to vector<8x16xf32>
    %215 = vector.shape_cast %212 : vector<8x16xf32> to vector<1x8x1x16xf32>
    tpu.vector_store %arg4[%c1_252, %c0_253, %c5_254, %c0_255], %215 {strides = array<i32>} : memref<2x8x16x16xf32, #tpu.memory_space<vmem>>, vector<1x8x1x16xf32>,
    %216 = vector.extract_strided_slice %127 {offsets = [0, 492], sizes = [8, 16], strides = [1, 1]} : vector<8x768xf32> to vector<8x16xf32>
    %c1_256 = arith.constant 1 : index
    %c0_257 = arith.constant 0 : index
    %c6_258 = arith.constant 6 : index
    %c0_259 = arith.constant 0 : index
    %217 = vector.load %arg4[%c1_256, %c0_257, %c6_258, %c0_259] : memref<2x8x16x16xf32, #tpu.memory_space<vmem>>, vector<1x8x1x16xf32>
    %218 = vector.shape_cast %217 : vector<1x8x1x16xf32> to vector<8x16xf32>
    %219 = vector.shape_cast %216 : vector<8x16xf32> to vector<1x8x1x16xf32>
    tpu.vector_store %arg4[%c1_256, %c0_257, %c6_258, %c0_259], %219 {strides = array<i32>} : memref<2x8x16x16xf32, #tpu.memory_space<vmem>>, vector<1x8x1x16xf32>,
    %220 = vector.extract_strided_slice %127 {offsets = [0, 510], sizes = [8, 16], strides = [1, 1]} : vector<8x768xf32> to vector<8x16xf32>
    %c1_260 = arith.constant 1 : index
    %c0_261 = arith.constant 0 : index
    %c7_262 = arith.constant 7 : index
    %c0_263 = arith.constant 0 : index
    %221 = vector.load %arg4[%c1_260, %c0_261, %c7_262, %c0_263] : memref<2x8x16x16xf32, #tpu.memory_space<vmem>>, vector<1x8x1x16xf32>
    %222 = vector.shape_cast %221 : vector<1x8x1x16xf32> to vector<8x16xf32>
    %223 = vector.shape_cast %220 : vector<8x16xf32> to vector<1x8x1x16xf32>
    tpu.vector_store %arg4[%c1_260, %c0_261, %c7_262, %c0_263], %223 {strides = array<i32>} : memref<2x8x16x16xf32, #tpu.memory_space<vmem>>, vector<1x8x1x16xf32>,
    %224 = vector.extract_strided_slice %127 {offsets = [0, 528], sizes = [8, 16], strides = [1, 1]} : vector<8x768xf32> to vector<8x16xf32>
    %c1_264 = arith.constant 1 : index
    %c0_265 = arith.constant 0 : index
    %c8_266 = arith.constant 8 : index
    %c0_267 = arith.constant 0 : index
    %225 = vector.load %arg4[%c1_264, %c0_265, %c8_266, %c0_267] : memref<2x8x16x16xf32, #tpu.memory_space<vmem>>, vector<1x8x1x16xf32>
    %226 = vector.shape_cast %225 : vector<1x8x1x16xf32> to vector<8x16xf32>
    %227 = vector.shape_cast %224 : vector<8x16xf32> to vector<1x8x1x16xf32>
    tpu.vector_store %arg4[%c1_264, %c0_265, %c8_266, %c0_267], %227 {strides = array<i32>} : memref<2x8x16x16xf32, #tpu.memory_space<vmem>>, vector<1x8x1x16xf32>,
    %228 = vector.extract_strided_slice %127 {offsets = [0, 546], sizes = [8, 16], strides = [1, 1]} : vector<8x768xf32> to vector<8x16xf32>
    %c1_268 = arith.constant 1 : index
    %c0_269 = arith.constant 0 : index
    %c9_270 = arith.constant 9 : index
    %c0_271 = arith.constant 0 : index
    %229 = vector.load %arg4[%c1_268, %c0_269, %c9_270, %c0_271] : memref<2x8x16x16xf32, #tpu.memory_space<vmem>>, vector<1x8x1x16xf32>
    %230 = vector.shape_cast %229 : vector<1x8x1x16xf32> to vector<8x16xf32>
    %231 = vector.shape_cast %228 : vector<8x16xf32> to vector<1x8x1x16xf32>
    tpu.vector_store %arg4[%c1_268, %c0_269, %c9_270, %c0_271], %231 {strides = array<i32>} : memref<2x8x16x16xf32, #tpu.memory_space<vmem>>, vector<1x8x1x16xf32>,
    %232 = vector.extract_strided_slice %127 {offsets = [0, 564], sizes = [8, 16], strides = [1, 1]} : vector<8x768xf32> to vector<8x16xf32>
    %c1_272 = arith.constant 1 : index
    %c0_273 = arith.constant 0 : index
    %c10_274 = arith.constant 10 : index
    %c0_275 = arith.constant 0 : index
    %233 = vector.load %arg4[%c1_272, %c0_273, %c10_274, %c0_275] : memref<2x8x16x16xf32, #tpu.memory_space<vmem>>, vector<1x8x1x16xf32>
    %234 = vector.shape_cast %233 : vector<1x8x1x16xf32> to vector<8x16xf32>
    %235 = vector.shape_cast %232 : vector<8x16xf32> to vector<1x8x1x16xf32>
    tpu.vector_store %arg4[%c1_272, %c0_273, %c10_274, %c0_275], %235 {strides = array<i32>} : memref<2x8x16x16xf32, #tpu.memory_space<vmem>>, vector<1x8x1x16xf32>,
    %236 = vector.extract_strided_slice %127 {offsets = [0, 582], sizes = [8, 16], strides = [1, 1]} : vector<8x768xf32> to vector<8x16xf32>
    %c1_276 = arith.constant 1 : index
    %c0_277 = arith.constant 0 : index
    %c11_278 = arith.constant 11 : index
    %c0_279 = arith.constant 0 : index
    %237 = vector.load %arg4[%c1_276, %c0_277, %c11_278, %c0_279] : memref<2x8x16x16xf32, #tpu.memory_space<vmem>>, vector<1x8x1x16xf32>
    %238 = vector.shape_cast %237 : vector<1x8x1x16xf32> to vector<8x16xf32>
    %239 = vector.shape_cast %236 : vector<8x16xf32> to vector<1x8x1x16xf32>
    tpu.vector_store %arg4[%c1_276, %c0_277, %c11_278, %c0_279], %239 {strides = array<i32>} : memref<2x8x16x16xf32, #tpu.memory_space<vmem>>, vector<1x8x1x16xf32>,
    %240 = vector.extract_strided_slice %127 {offsets = [0, 600], sizes = [8, 16], strides = [1, 1]} : vector<8x768xf32> to vector<8x16xf32>
    %c1_280 = arith.constant 1 : index
    %c0_281 = arith.constant 0 : index
    %c12_282 = arith.constant 12 : index
    %c0_283 = arith.constant 0 : index
    %241 = vector.load %arg4[%c1_280, %c0_281, %c12_282, %c0_283] : memref<2x8x16x16xf32, #tpu.memory_space<vmem>>, vector<1x8x1x16xf32>
    %242 = vector.shape_cast %241 : vector<1x8x1x16xf32> to vector<8x16xf32>
    %243 = vector.shape_cast %240 : vector<8x16xf32> to vector<1x8x1x16xf32>
    tpu.vector_store %arg4[%c1_280, %c0_281, %c12_282, %c0_283], %243 {strides = array<i32>} : memref<2x8x16x16xf32, #tpu.memory_space<vmem>>, vector<1x8x1x16xf32>,
    %244 = vector.extract_strided_slice %127 {offsets = [0, 618], sizes = [8, 16], strides = [1, 1]} : vector<8x768xf32> to vector<8x16xf32>
    %c1_284 = arith.constant 1 : index
    %c0_285 = arith.constant 0 : index
    %c13_286 = arith.constant 13 : index
    %c0_287 = arith.constant 0 : index
    %245 = vector.load %arg4[%c1_284, %c0_285, %c13_286, %c0_287] : memref<2x8x16x16xf32, #tpu.memory_space<vmem>>, vector<1x8x1x16xf32>
    %246 = vector.shape_cast %245 : vector<1x8x1x16xf32> to vector<8x16xf32>
    %247 = vector.shape_cast %244 : vector<8x16xf32> to vector<1x8x1x16xf32>
    tpu.vector_store %arg4[%c1_284, %c0_285, %c13_286, %c0_287], %247 {strides = array<i32>} : memref<2x8x16x16xf32, #tpu.memory_space<vmem>>, vector<1x8x1x16xf32>,
    %248 = vector.extract_strided_slice %127 {offsets = [0, 636], sizes = [8, 16], strides = [1, 1]} : vector<8x768xf32> to vector<8x16xf32>
    %c1_288 = arith.constant 1 : index
    %c0_289 = arith.constant 0 : index
    %c14_290 = arith.constant 14 : index
    %c0_291 = arith.constant 0 : index
    %249 = vector.load %arg4[%c1_288, %c0_289, %c14_290, %c0_291] : memref<2x8x16x16xf32, #tpu.memory_space<vmem>>, vector<1x8x1x16xf32>
    %250 = vector.shape_cast %249 : vector<1x8x1x16xf32> to vector<8x16xf32>
    %251 = vector.shape_cast %248 : vector<8x16xf32> to vector<1x8x1x16xf32>
    tpu.vector_store %arg4[%c1_288, %c0_289, %c14_290, %c0_291], %251 {strides = array<i32>} : memref<2x8x16x16xf32, #tpu.memory_space<vmem>>, vector<1x8x1x16xf32>,
    %252 = vector.extract_strided_slice %127 {offsets = [0, 654], sizes = [8, 16], strides = [1, 1]} : vector<8x768xf32> to vector<8x16xf32>
    %c1_292 = arith.constant 1 : index
    %c0_293 = arith.constant 0 : index
    %c15_294 = arith.constant 15 : index
    %c0_295 = arith.constant 0 : index
    %253 = vector.load %arg4[%c1_292, %c0_293, %c15_294, %c0_295] : memref<2x8x16x16xf32, #tpu.memory_space<vmem>>, vector<1x8x1x16xf32>
    %254 = vector.shape_cast %253 : vector<1x8x1x16xf32> to vector<8x16xf32>
    %255 = vector.shape_cast %252 : vector<8x16xf32> to vector<1x8x1x16xf32>
    tpu.vector_store %arg4[%c1_292, %c0_293, %c15_294, %c0_295], %255 {strides = array<i32>} : memref<2x8x16x16xf32, #tpu.memory_space<vmem>>, vector<1x8x1x16xf32>,
    return
  }
  func.func @transform_0(%arg0: i32) -> (i32, i32, i32, i32) {
    %c0_i32 = arith.constant 0 : i32
    %c0_i32_0 = arith.constant 0 : i32
    %c0_i32_1 = arith.constant 0 : i32
    %c0_i32_2 = arith.constant 0 : i32
    return %arg0, %c0_i32, %c0_i32_0, %c0_i32_1 : i32, i32, i32, i32
  }
  func.func @transform_1(%arg0: i32) -> (i32, i32) {
    %c0_i32 = arith.constant 0 : i32
    %c0_i32_0 = arith.constant 0 : i32
    %c0_i32_1 = arith.constant 0 : i32
    return %c0_i32, %c0_i32_0 : i32, i32
  }
  func.func @transform_2(%arg0: i32) -> (i32, i32) {
    %c0_i32 = arith.constant 0 : i32
    %c0_i32_0 = arith.constant 0 : i32
    %c0_i32_1 = arith.constant 0 : i32
    return %c0_i32, %c0_i32_0 : i32, i32
  }
  func.func @transform_3(%arg0: i32) -> (i32, i32, i32, i32) {
    %c0_i32 = arith.constant 0 : i32
    %c0_i32_0 = arith.constant 0 : i32
    %c0_i32_1 = arith.constant 0 : i32
    %c0_i32_2 = arith.constant 0 : i32
    return %arg0, %c0_i32, %c0_i32_0, %c0_i32_1 : i32, i32, i32, i32
  }
}

</mosaic_0001>

<bundles_post_ra>
// kernel: conv_bn_relu.1
= control target key start
LH: loop header
LB: loop body
LE: loop exit
PB: predicated region body
PF: predicated region fallthrough
CT: control target
= control target key end

     0   :  { %vm57_vm0 = vcmask 1041409   ;;  %vm60_vm1 = vcmask 1042434   ;;  %vm63_vm2 = vcmask 1043459   ;;  %s3701_s21 = smov 19   ;;  %s3702_s26 = smov 37   ;;  %s6126_s0 = inlined_call_operand.vmem [shape: f32[2,4,16,16], index: 0, kind: input, shape index: {}]   ;;  %s6127_s1 = inlined_call_operand.vmem [shape: bf16[8,144], index: 1, kind: input, shape index: {}]   ;;  %s6128_s2 = inlined_call_operand.vmem [shape: f32[8,1], index: 2, kind: input, shape index: {}]   ;;  %s6129_s3 = inlined_call_operand.hbm [shape: f32[2,8,16,16], index: 3, kind: output, shape index: {}]  }
   0x1   :  { %v24_v0 = vld [vmem:[%s6126_s0] sm:$0x1]  ;;  %v25_v1 = vld [vmem:[%s6126_s0 + $0x10] sm:$0x1]  ;;  %v82_v7 = vld [vmem:[%s6126_s0 + $0x1] sm:$0x1] }
   0x2   :  { %v26_v2 = vld [vmem:[%s6126_s0 + $0x20] sm:$0x1]  ;;  %v27_v3 = vld [vmem:[%s6126_s0 + $0x30] sm:$0x1]  ;;  %v32_v4 = vpack.c.bf16 %v24_v0, %v24_v0  ;;  %v33_v5 = vpack.c.bf16 %v25_v1, %v25_v1  ;;  %v83_v9 = vld [vmem:[%s6126_s0 + $0x11] sm:$0x1]  ;;  %v90_v11 = vpack.c.bf16 %v82_v7, %v82_v7 }
   0x3   :  { %v34_v6 = vpack.c.bf16 %v26_v2, %v26_v2  ;;  %v35_v8 = vpack.c.bf16 %v27_v3, %v27_v3  ;;  %v84_v10 = vld [vmem:[%s6126_s0 + $0x21] sm:$0x1]  ;;  %v85_v15 = vld [vmem:[%s6126_s0 + $0x31] sm:$0x1]  ;;  %v91_v16 = vpack.c.bf16 %v83_v9, %v83_v9  ;;  %v28_v17 = vld [vmem:[%s6126_s0 + $0x40] sm:$0x1] }
   0x4   :  { %v48_v12 = vunpack.c.l.b16 %v32_v4  ;;  %v49_v13 = vunpack.c.l.b16 %v33_v5  ;;  %v92_v19 = vpack.c.bf16 %v84_v10, %v84_v10  ;;  %v93_v20 = vpack.c.bf16 %v85_v15, %v85_v15  ;;  %v29_v22 = vld [vmem:[%s6126_s0 + $0x50] sm:$0x1]  ;;  %v30_v23 = vld [vmem:[%s6126_s0 + $0x60] sm:$0x1]  ;;  %v86_v37 = vld [vmem:[%s6126_s0 + $0x41] sm:$0x1] }
   0x5   :  { %v50_v14 = vunpack.c.l.b16 %v34_v6  ;;  %v51_v18 = vunpack.c.l.b16 %v35_v8  ;;  %v106_v21 = vunpack.c.l.b16 %v90_v11  ;;  %v31_v24 = vld [vmem:[%s6126_s0 + $0x70] sm:$0x1]  ;;  %v107_v27 = vunpack.c.l.b16 %v91_v16  ;;  %v87_v42 = vld [vmem:[%s6126_s0 + $0x51] sm:$0x1]  ;;  %v88_v47 = vld [vmem:[%s6126_s0 + $0x61] sm:$0x1] }
   0x6   :  { %v56_v25 = vrot.slane %v49_v13, 7  ;;  %v36_v28 = vpack.c.bf16 %v28_v17, %v28_v17  ;;  %v108_v30 = vunpack.c.l.b16 %v92_v19  ;;  %v109_v31 = vunpack.c.l.b16 %v93_v20  ;;  %v89_v48 = vld [vmem:[%s6126_s0 + $0x71] sm:$0x1]  ;;  %v137_v53 = vld [vmem:[%s6126_s0 + $0x2] sm:$0x1]  ;;  %s3703_s24 = smov 55  }
   0x7   :  { %v59_v26 = vrot.slane %v50_v14, 6  ;;  %v62_v29 = vrot.slane %v51_v18, 5  ;;  %v37_v32 = vpack.c.bf16 %v29_v22, %v29_v22  ;;  %v114_v34 = vrot.slane %v107_v27, 7  ;;  %v138_v58 = vld [vmem:[%s6126_s0 + $0x12] sm:$0x1]  ;;  %s3704_s14 = smov 73  }
   0x8   :  { %v58_v33 = vsel %vm57_vm0, %v56_v25, %v48_v12  ;;  %v38_v35 = vpack.c.bf16 %v30_v23, %v30_v23  ;;  %v39_v36 = vpack.c.bf16 %v31_v24, %v31_v24  ;;  %v116_v39 = vrot.slane %v108_v30, 6  ;;  %v139_v63 = vld [vmem:[%s6126_s0 + $0x22] sm:$0x1]  ;;  %v140_v0 = vld [vmem:[%s6126_s0 + $0x32] sm:$0x1]  ;;  %s3705_s4 = smov 91  }
   0x9   :  { %v61_v38 = vsel %vm60_vm1, %v59_v26, %v58_v33  ;;  %v118_v40 = vrot.slane %v109_v31, 5  ;;  %v52_v41 = vunpack.c.l.b16 %v36_v28  ;;  %v115_v44 = vsel %vm57_vm0, %v114_v34, %v106_v21  ;;  %v141_v9 = vld [vmem:[%s6126_s0 + $0x42] sm:$0x1]  ;;  %v142_v14 = vld [vmem:[%s6126_s0 + $0x52] sm:$0x1] }
   0xa   :  { %v64_v43 = vsel %vm63_vm2, %v62_v29, %v61_v38  ;;  %v53_v45 = vunpack.c.l.b16 %v37_v32  ;;  %v54_v46 = vunpack.c.l.b16 %v38_v35  ;;  %v117_v50 = vsel %vm60_vm1, %v116_v39, %v115_v44  ;;  %v143_v15 = vld [vmem:[%s6126_s0 + $0x62] sm:$0x1]  ;;  %v144_v24 = vld [vmem:[%s6126_s0 + $0x72] sm:$0x1]  ;;  %v192_v29 = vld [vmem:[%s6126_s0 + $0x3] sm:$0x1] }
   0xb   :  { %v71_v49 = vpack.c.b16 %v64_v43, %v64_v43  ;;  %v55_v51 = vunpack.c.l.b16 %v39_v36  ;;  %v94_v52 = vpack.c.bf16 %v86_v37, %v86_v37  ;;  %v119_v54 = vsel %vm63_vm2, %v118_v40, %v117_v50  ;;  %v193_v30 = vld [vmem:[%s6126_s0 + $0x13] sm:$0x1]  ;;  %v194_v35 = vld [vmem:[%s6126_s0 + $0x23] sm:$0x1] }
   0xc   :  { %v65_v55 = vrot.slane %v53_v45, 7  ;;  %v67_v56 = vrot.slane %v54_v46, 6  ;;  %v95_v57 = vpack.c.bf16 %v87_v42, %v87_v42  ;;  %v126_v59 = vpack.c.b16 %v119_v54, %v119_v54  ;;  %v195_v40 = vld [vmem:[%s6126_s0 + $0x33] sm:$0x1] }
   0xd   :  { %73 = vrot.lane.b32.xlu0 %v71_v49, %s3701_s21  ;;  %v69_v60 = vrot.slane %v55_v51, 5  ;;  %v96_v61 = vpack.c.bf16 %v88_v47, %v88_v47  ;;  %v97_v62 = vpack.c.bf16 %v89_v48, %v89_v48  ;;  %v110_v2 = vunpack.c.l.b16 %v94_v52  ;;  %v196_v49 = vld [vmem:[%s6126_s0 + $0x43] sm:$0x1]  ;;  %v197_v54 = vld [vmem:[%s6126_s0 + $0x53] sm:$0x1] }
   0xe   :  { %v66_v1 = vsel %vm57_vm0, %v65_v55, %v52_v41  ;;  %v111_v3 = vunpack.c.l.b16 %v95_v57  ;;  %v145_v4 = vpack.c.bf16 %v137_v53, %v137_v53  ;;  %128 = vrot.lane.b32.xlu1 %v126_v59, %s3702_s26  ;;  %v146_v8 = vpack.c.bf16 %v138_v58, %v138_v58  ;;  %v198_v55 = vld [vmem:[%s6126_s0 + $0x63] sm:$0x1] }
   0xf   :  { %v68_v5 = vsel %vm60_vm1, %v67_v56, %v66_v1  ;;  %v112_v6 = vunpack.c.l.b16 %v96_v61  ;;  %v113_v7 = vunpack.c.l.b16 %v97_v62  ;;  %v147_v12 = vpack.c.bf16 %v139_v63, %v139_v63 }
  0x10   :  { %v70_v10 = vsel %vm63_vm2, %v69_v60, %v68_v5  ;;  %v120_v11 = vrot.slane %v111_v3, 7  ;;  %v148_v13 = vpack.c.bf16 %v140_v0, %v140_v0  ;;  %v161_v19 = vunpack.c.l.b16 %v145_v4  ;;  %v199_v60 = vld [vmem:[%s6126_s0 + $0x73] sm:$0x1]  ;;  %v247_v5 = vld [vmem:[%s6126_s0 + $0x4] sm:$0x1] }
  0x11   :  { %v72_v16 = vpack.c.b16 %v70_v10, %v70_v10  ;;  %v122_v17 = vrot.slane %v112_v6, 6  ;;  %v124_v18 = vrot.slane %v113_v7, 5  ;;  %v162_v21 = vunpack.c.l.b16 %v146_v8  ;;  %v248_v6 = vld [vmem:[%s6126_s0 + $0x14] sm:$0x1] }
  0x12   :  { %v121_v20 = vsel %vm57_vm0, %v120_v11, %v110_v2  ;;  %v163_v22 = vunpack.c.l.b16 %v147_v12  ;;  %v164_v23 = vunpack.c.l.b16 %v148_v13  ;;  %v149_v26 = vpack.c.bf16 %v141_v9, %v141_v9  ;;  %v249_v11 = vld [vmem:[%s6126_s0 + $0x24] sm:$0x1] }
  0x13   :  { %75 = vrot.lane.b32.xlu0 %v72_v16, %s3701_s21  ;;  %v123_v25 = vsel %vm60_vm1, %v122_v17, %v121_v20  ;;  %v150_v27 = vpack.c.bf16 %v142_v14, %v142_v14  ;;  %v151_v28 = vpack.c.bf16 %v143_v15, %v143_v15  ;;  %v169_v32 = vrot.slane %v162_v21, 7  ;;  %v250_v16 = vld [vmem:[%s6126_s0 + $0x34] sm:$0x1]  ;;  %v251_v21 = vld [vmem:[%s6126_s0 + $0x44] sm:$0x1]  ;;  %s3706_s21 = smov 109  }
  0x14   :  { %v125_v31 = vsel %vm63_vm2, %v124_v18, %v123_v25  ;;  %v171_v33 = vrot.slane %v163_v22, 6  ;;  %v173_v34 = vrot.slane %v164_v23, 5  ;;  %v152_v37 = vpack.c.bf16 %v144_v24, %v144_v24 }
  0x15   :  { %v127_v36 = vpack.c.b16 %v125_v31, %v125_v31  ;;  %v165_v38 = vunpack.c.l.b16 %v149_v26  ;;  %v166_v39 = vunpack.c.l.b16 %v150_v27  ;;  %v170_v41 = vsel %vm57_vm0, %v169_v32, %v161_v19  ;;  %v252_v26 = vld [vmem:[%s6126_s0 + $0x54] sm:$0x1]  ;;  %v253_v27 = vld [vmem:[%s6126_s0 + $0x64] sm:$0x1] }
  0x16   :  { %v167_v42 = vunpack.c.l.b16 %v151_v28  ;;  %v200_v43 = vpack.c.bf16 %v192_v29, %v192_v29  ;;  %v201_v44 = vpack.c.bf16 %v193_v30, %v193_v30  ;;  %v172_v45 = vsel %vm60_vm1, %v171_v33, %v170_v41  ;;  %v254_v32 = vld [vmem:[%s6126_s0 + $0x74] sm:$0x1]  ;;  %v302_v41 = vld [vmem:[%s6126_s0 + $0x5] sm:$0x1] }
  0x17   :  { %130 = vrot.lane.b32.xlu1 %v127_v36, %s3702_s26  ;;  %v168_v46 = vunpack.c.l.b16 %v152_v37  ;;  %v175_v47 = vrot.slane %v166_v39, 7  ;;  %v202_v48 = vpack.c.bf16 %v194_v35, %v194_v35  ;;  %v174_v50 = vsel %vm63_vm2, %v173_v34, %v172_v45 }
  0x18   :  { %v177_v51 = vrot.slane %v167_v42, 6  ;;  %v203_v52 = vpack.c.bf16 %v195_v40, %v195_v40  ;;  %v216_v53 = vunpack.c.l.b16 %v200_v43  ;;  %v181_v56 = vpack.c.b16 %v174_v50, %v174_v50 }
  0x19   :  { %v176_v57 = vsel %vm57_vm0, %v175_v47, %v165_v38  ;;  %v179_v58 = vrot.slane %v168_v46, 5  ;;  %v217_v59 = vunpack.c.l.b16 %v201_v44  ;;  %v218_v62 = vunpack.c.l.b16 %v202_v48  ;;  %v303_v46 = vld [vmem:[%s6126_s0 + $0x15] sm:$0x1]  ;;  %v304_v47 = vld [vmem:[%s6126_s0 + $0x25] sm:$0x1] }
  0x1a   :  { %v178_v61 = vsel %vm60_vm1, %v177_v51, %v176_v57  ;;  %v219_v63 = vunpack.c.l.b16 %v203_v52  ;;  %v204_v0 = vpack.c.bf16 %v196_v49, %v196_v49  ;;  %183 = vrot.lane.b32.xlu0 %v181_v56, %s3703_s24  ;;  %v205_v3 = vpack.c.bf16 %v197_v54, %v197_v54  ;;  %v305_v52 = vld [vmem:[%s6126_s0 + $0x35] sm:$0x1] }
  0x1b   :  { %v180_v1 = vsel %vm63_vm2, %v179_v58, %v178_v61  ;;  %v224_v2 = vrot.slane %v217_v59, 7  ;;  %v206_v4 = vpack.c.bf16 %v198_v55, %v198_v55  ;;  %v226_v8 = vrot.slane %v218_v62, 6  ;;  %v306_v61 = vld [vmem:[%s6126_s0 + $0x45] sm:$0x1] }
  0x1c   :  { %v182_v7 = vpack.c.b16 %v180_v1, %v180_v1  ;;  %v228_v9 = vrot.slane %v219_v63, 5  ;;  %v207_v10 = vpack.c.bf16 %v199_v60, %v199_v60  ;;  %v220_v13 = vunpack.c.l.b16 %v204_v0 }
  0x1d   :  { %v225_v12 = vsel %vm57_vm0, %v224_v2, %v216_v53  ;;  %v221_v14 = vunpack.c.l.b16 %v205_v3  ;;  %v222_v15 = vunpack.c.l.b16 %v206_v4  ;;  %v255_v19 = vpack.c.bf16 %v247_v5, %v247_v5  ;;  %v307_v2 = vld [vmem:[%s6126_s0 + $0x55] sm:$0x1]  ;;  %v308_v3 = vld [vmem:[%s6126_s0 + $0x65] sm:$0x1] }
  0x1e   :  { %185 = vrot.lane.b32.xlu1 %v182_v7, %s3703_s24  ;;  %v227_v17 = vsel %vm60_vm1, %v226_v8, %v225_v12  ;;  %v223_v18 = vunpack.c.l.b16 %v207_v10  ;;  %v256_v20 = vpack.c.bf16 %v248_v6, %v248_v6  ;;  %v257_v25 = vpack.c.bf16 %v249_v11, %v249_v11  ;;  %v309_v8 = vld [vmem:[%s6126_s0 + $0x75] sm:$0x1] }
  0x1f   :  { %v229_v22 = vsel %vm63_vm2, %v228_v9, %v227_v17  ;;  %v230_v23 = vrot.slane %v221_v14, 7  ;;  %v232_v24 = vrot.slane %v222_v15, 6  ;;  %v258_v30 = vpack.c.bf16 %v250_v16, %v250_v16  ;;  %v357_v17 = vld [vmem:[%s6126_s0 + $0x6] sm:$0x1] }
  0x20   :  { %v236_v28 = vpack.c.b16 %v229_v22, %v229_v22  ;;  %v234_v29 = vrot.slane %v223_v18, 5  ;;  %v271_v31 = vunpack.c.l.b16 %v255_v19  ;;  %v272_v34 = vunpack.c.l.b16 %v256_v20  ;;  %v358_v18 = vld [vmem:[%s6126_s0 + $0x16] sm:$0x1] }
  0x21   :  { %v231_v33 = vsel %vm57_vm0, %v230_v23, %v220_v13  ;;  %v273_v35 = vunpack.c.l.b16 %v257_v25  ;;  %v259_v36 = vpack.c.bf16 %v251_v21, %v251_v21  ;;  %v274_v38 = vunpack.c.l.b16 %v258_v30  ;;  %v359_v23 = vld [vmem:[%s6126_s0 + $0x26] sm:$0x1] }
  0x22   :  { %238 = vrot.lane.b32.xlu0 %v236_v28, %s3704_s14  ;;  %v233_v37 = vsel %vm60_vm1, %v232_v24, %v231_v33  ;;  %v260_v39 = vpack.c.bf16 %v252_v26, %v252_v26  ;;  %v261_v40 = vpack.c.bf16 %v253_v27, %v253_v27  ;;  %v279_v43 = vrot.slane %v272_v34, 7  ;;  %v360_v28 = vld [vmem:[%s6126_s0 + $0x36] sm:$0x1]  ;;  %v361_v33 = vld [vmem:[%s6126_s0 + $0x46] sm:$0x1] }
  0x23   :  { %v235_v42 = vsel %vm63_vm2, %v234_v29, %v233_v37  ;;  %v281_v44 = vrot.slane %v273_v35, 6  ;;  %v262_v45 = vpack.c.bf16 %v254_v32, %v254_v32  ;;  %v283_v49 = vrot.slane %v274_v38, 5  ;;  %v362_v38 = vld [vmem:[%s6126_s0 + $0x56] sm:$0x1] }
  0x24   :  { %v237_v48 = vpack.c.b16 %v235_v42, %v235_v42  ;;  %v275_v50 = vunpack.c.l.b16 %v259_v36  ;;  %v276_v51 = vunpack.c.l.b16 %v260_v39  ;;  %v280_v53 = vsel %vm57_vm0, %v279_v43, %v271_v31  ;;  %v363_v39 = vld [vmem:[%s6126_s0 + $0x66] sm:$0x1] }
  0x25   :  { %v277_v54 = vunpack.c.l.b16 %v261_v40  ;;  %v278_v55 = vunpack.c.l.b16 %v262_v45  ;;  %v310_v56 = vpack.c.bf16 %v302_v41, %v302_v41  ;;  %v282_v57 = vsel %vm60_vm1, %v281_v44, %v280_v53  ;;  %v364_v44 = vld [vmem:[%s6126_s0 + $0x76] sm:$0x1]  ;;  %v415_v53 = vld [vmem:[%s6126_s0 + $0x7] sm:$0x1] }
  0x26   :  { %240 = vrot.lane.b32.xlu1 %v237_v48, %s3704_s14  ;;  %v285_v58 = vrot.slane %v276_v51, 7  ;;  %v311_v59 = vpack.c.bf16 %v303_v46, %v303_v46  ;;  %v312_v60 = vpack.c.bf16 %v304_v47, %v304_v47  ;;  %v284_v62 = vsel %vm63_vm2, %v283_v49, %v282_v57 }
  0x27   :  { %v287_v63 = vrot.slane %v277_v54, 6  ;;  %v289_v0 = vrot.slane %v278_v55, 5  ;;  %v313_v1 = vpack.c.bf16 %v305_v52, %v305_v52  ;;  %v291_v4 = vpack.c.b16 %v284_v62, %v284_v62 }
  0x28   :  { %v286_v5 = vsel %vm57_vm0, %v285_v58, %v275_v50  ;;  %v326_v6 = vunpack.c.l.b16 %v310_v56  ;;  %v327_v7 = vunpack.c.l.b16 %v311_v59  ;;  %v328_v10 = vunpack.c.l.b16 %v312_v60  ;;  %v416_v58 = vld [vmem:[%s6126_s0 + $0x17] sm:$0x1]  ;;  %v417_v59 = vld [vmem:[%s6126_s0 + $0x27] sm:$0x1] }
  0x29   :  { %v288_v9 = vsel %vm60_vm1, %v287_v63, %v286_v5  ;;  %v329_v11 = vunpack.c.l.b16 %v313_v1  ;;  %v314_v12 = vpack.c.bf16 %v306_v61, %v306_v61  ;;  %293 = vrot.lane.b32.xlu0 %v291_v4, %s3705_s4  ;;  %v315_v15 = vpack.c.bf16 %v307_v2, %v307_v2 }
  0x2a   :  { %v290_v13 = vsel %vm63_vm2, %v289_v0, %v288_v9  ;;  %v334_v14 = vrot.slane %v327_v7, 7  ;;  %v316_v16 = vpack.c.bf16 %v308_v3, %v308_v3  ;;  %v336_v20 = vrot.slane %v328_v10, 6  ;;  %v418_v0 = vld [vmem:[%s6126_s0 + $0x37] sm:$0x1]  ;;  %v419_v9 = vld [vmem:[%s6126_s0 + $0x47] sm:$0x1] }
  0x2b   :  { %v292_v19 = vpack.c.b16 %v290_v13, %v290_v13  ;;  %v338_v21 = vrot.slane %v329_v11, 5  ;;  %v317_v22 = vpack.c.bf16 %v309_v8, %v309_v8  ;;  %v330_v25 = vunpack.c.l.b16 %v314_v12  ;;  %v420_v10 = vld [vmem:[%s6126_s0 + $0x57] sm:$0x1] }
  0x2c   :  { %v335_v24 = vsel %vm57_vm0, %v334_v14, %v326_v6  ;;  %v331_v26 = vunpack.c.l.b16 %v315_v15  ;;  %v332_v27 = vunpack.c.l.b16 %v316_v16  ;;  %v365_v31 = vpack.c.bf16 %v357_v17, %v357_v17  ;;  %v421_v15 = vld [vmem:[%s6126_s0 + $0x67] sm:$0x1] }
  0x2d   :  { %295 = vrot.lane.b32.xlu1 %v292_v19, %s3705_s4  ;;  %v337_v29 = vsel %vm60_vm1, %v336_v20, %v335_v24  ;;  %v333_v30 = vunpack.c.l.b16 %v317_v22  ;;  %v366_v32 = vpack.c.bf16 %v358_v18, %v358_v18  ;;  %v367_v37 = vpack.c.bf16 %v359_v23, %v359_v23 }
  0x2e   :  { %v339_v34 = vsel %vm63_vm2, %v338_v21, %v337_v29  ;;  %v340_v35 = vrot.slane %v331_v26, 7  ;;  %v342_v36 = vrot.slane %v332_v27, 6  ;;  %v368_v42 = vpack.c.bf16 %v360_v28, %v360_v28 }
  0x2f   :  { %v346_v40 = vpack.c.b16 %v339_v34, %v339_v34  ;;  %v344_v41 = vrot.slane %v333_v30, 5  ;;  %v381_v43 = vunpack.c.l.b16 %v365_v31  ;;  %v382_v46 = vunpack.c.l.b16 %v366_v32 }
  0x30   :  { %v341_v45 = vsel %vm57_vm0, %v340_v35, %v330_v25  ;;  %v383_v47 = vunpack.c.l.b16 %v367_v37  ;;  %v369_v48 = vpack.c.bf16 %v361_v33, %v361_v33  ;;  %v384_v50 = vunpack.c.l.b16 %v368_v42 }
  0x31   :  { %348 = vrot.lane.b32.xlu0 %v346_v40, %s3706_s21  ;;  %v343_v49 = vsel %vm60_vm1, %v342_v36, %v341_v45  ;;  %v370_v51 = vpack.c.bf16 %v362_v38, %v362_v38  ;;  %v371_v52 = vpack.c.bf16 %v363_v39, %v363_v39  ;;  %v389_v55 = vrot.slane %v382_v46, 7 }
  0x32   :  { %v345_v54 = vsel %vm63_vm2, %v344_v41, %v343_v49  ;;  %v391_v56 = vrot.slane %v383_v47, 6  ;;  %v372_v57 = vpack.c.bf16 %v364_v44, %v364_v44  ;;  %v393_v61 = vrot.slane %v384_v50, 5 }
  0x33   :  { %v347_v60 = vpack.c.b16 %v345_v54, %v345_v54  ;;  %v385_v62 = vunpack.c.l.b16 %v369_v48  ;;  %v386_v63 = vunpack.c.l.b16 %v370_v51  ;;  %v390_v1 = vsel %vm57_vm0, %v389_v55, %v381_v43 }
  0x34   :  { %v387_v2 = vunpack.c.l.b16 %v371_v52  ;;  %v388_v3 = vunpack.c.l.b16 %v372_v57  ;;  %v423_v4 = vpack.c.bf16 %v415_v53, %v415_v53  ;;  %v392_v5 = vsel %vm60_vm1, %v391_v56, %v390_v1 }
  0x35   :  { %350 = vrot.lane.b32.xlu1 %v347_v60, %s3706_s21  ;;  %v395_v6 = vrot.slane %v386_v63, 7  ;;  %v424_v7 = vpack.c.bf16 %v416_v58, %v416_v58  ;;  %v425_v8 = vpack.c.bf16 %v417_v59, %v417_v59  ;;  %v394_v11 = vsel %vm63_vm2, %v393_v61, %v392_v5 }
  0x36   :  { %v397_v12 = vrot.slane %v387_v2, 6  ;;  %v399_v13 = vrot.slane %v388_v3, 5  ;;  %v426_v14 = vpack.c.bf16 %v418_v0, %v418_v0 }
  0x37   :  { %8 = vsyncpa [#allocation5], 0  ;;  %v401_v16 = vpack.c.b16 %v394_v11, %v394_v11  ;;  %v396_v17 = vsel %vm57_vm0, %v395_v6, %v385_v62  ;;  %v439_v18 = vunpack.c.l.b16 %v423_v4  ;;  %v440_v19 = vunpack.c.l.b16 %v424_v7  ;;  %v422_v20 = vld [vmem:[%s6126_s0 + $0x77] sm:$0x1]  ;;  %s3707_s12 = smov 127   ;;  %s3708_s30 = smov 17  }
  0x38   :  { %v398_v21 = vsel %vm60_vm1, %v397_v12, %v396_v17  ;;  %v441_v22 = vunpack.c.l.b16 %v425_v8  ;;  %v442_v23 = vunpack.c.l.b16 %v426_v14  ;;  %v427_v24 = vpack.c.bf16 %v419_v9, %v419_v9  ;;  %v470_v29 = vld [vmem:[%s6126_s0 + $0x8] sm:$0x1]  ;;  %v471_v30 = vld [vmem:[%s6126_s0 + $0x18] sm:$0x1]  ;;  %v525_v1 = vld [vmem:[%s6126_s0 + $0x9] sm:$0x1] }
  0x39   :  { %403 = vrot.lane.b32.xlu0 %v401_v16, %s3707_s12  ;;  %v400_v25 = vsel %vm63_vm2, %v399_v13, %v398_v21  ;;  %v447_v26 = vrot.slane %v440_v19, 7  ;;  %v428_v27 = vpack.c.bf16 %v420_v10, %v420_v10  ;;  %v429_v28 = vpack.c.bf16 %v421_v15, %v421_v15  ;;  %v472_v35 = vld [vmem:[%s6126_s0 + $0x28] sm:$0x1]  ;;  %v473_v40 = vld [vmem:[%s6126_s0 + $0x38] sm:$0x1]  ;;  %s3709_s23 = smov 35  }
  0x3a   :  { %v402_v31 = vpack.c.b16 %v400_v25, %v400_v25  ;;  %v449_v32 = vrot.slane %v441_v22, 6  ;;  %v451_v33 = vrot.slane %v442_v23, 5  ;;  %v430_v34 = vpack.c.bf16 %v422_v20, %v422_v20  ;;  %v474_v45 = vld [vmem:[%s6126_s0 + $0x48] sm:$0x1]  ;;  %v475_v50 = vld [vmem:[%s6126_s0 + $0x58] sm:$0x1] }
  0x3b   :  { %v448_v36 = vsel %vm57_vm0, %v447_v26, %v439_v18  ;;  %v443_v37 = vunpack.c.l.b16 %v427_v24  ;;  %v444_v38 = vunpack.c.l.b16 %v428_v27  ;;  %v445_v39 = vunpack.c.l.b16 %v429_v28  ;;  %v476_v51 = vld [vmem:[%s6126_s0 + $0x68] sm:$0x1]  ;;  %v477_v56 = vld [vmem:[%s6126_s0 + $0x78] sm:$0x1]  ;;  %v526_v6 = vld [vmem:[%s6126_s0 + $0x19] sm:$0x1] }
  0x3c   :  { %405 = vrot.lane.b32.xlu1 %v402_v31, %s3707_s12  ;;  %v450_v41 = vsel %vm60_vm1, %v449_v32, %v448_v36  ;;  %v446_v42 = vunpack.c.l.b16 %v430_v34  ;;  %v478_v43 = vpack.c.bf16 %v470_v29, %v470_v29  ;;  %v479_v44 = vpack.c.bf16 %v471_v30, %v471_v30  ;;  %v527_v7 = vld [vmem:[%s6126_s0 + $0x29] sm:$0x1]  ;;  %v528_v12 = vld [vmem:[%s6126_s0 + $0x39] sm:$0x1]  ;;  %s3710_s15 = smov 53   ;;  %s3711_s7 = smov 71  }
  0x3d   :  { %v452_v46 = vsel %vm63_vm2, %v451_v33, %v450_v41  ;;  %v453_v47 = vrot.slane %v444_v38, 7  ;;  %v455_v48 = vrot.slane %v445_v39, 6  ;;  %v480_v49 = vpack.c.bf16 %v472_v35, %v472_v35  ;;  %v529_v21 = vld [vmem:[%s6126_s0 + $0x49] sm:$0x1]  ;;  %v530_v26 = vld [vmem:[%s6126_s0 + $0x59] sm:$0x1] }
  0x3e   :  { %v459_v52 = vpack.c.b16 %v452_v46, %v452_v46  ;;  %v457_v53 = vrot.slane %v446_v42, 5  ;;  %v481_v54 = vpack.c.bf16 %v473_v40, %v473_v40  ;;  %v494_v55 = vunpack.c.l.b16 %v478_v43  ;;  %v531_v27 = vld [vmem:[%s6126_s0 + $0x69] sm:$0x1]  ;;  %v532_v32 = vld [vmem:[%s6126_s0 + $0x79] sm:$0x1]  ;;  %s3712_s26 = smov 89  }
  0x3f   :  { %v454_v57 = vsel %vm57_vm0, %v453_v47, %v443_v37  ;;  %v495_v58 = vunpack.c.l.b16 %v479_v44  ;;  %v496_v59 = vunpack.c.l.b16 %v480_v49  ;;  %v482_v60 = vpack.c.bf16 %v474_v45, %v474_v45  ;;  %v580_v41 = vld [vmem:[%s6126_s0 + $0xa] sm:$0x1]  ;;  %v581_v42 = vld [vmem:[%s6126_s0 + $0x1a] sm:$0x1]  ;;  %s3713_s18 = smov 107   ;;  %s3714_s10 = smov 125  }
  0x40   :  { %461 = vrot.lane.b32.xlu0 %v459_v52, %s3708_s30  ;;  %v456_v61 = vsel %vm60_vm1, %v455_v48, %v454_v57  ;;  %v497_v62 = vunpack.c.l.b16 %v481_v54  ;;  %v483_v63 = vpack.c.bf16 %v475_v50, %v475_v50  ;;  %v484_v0 = vpack.c.bf16 %v476_v51, %v476_v51  ;;  %v582_v47 = vld [vmem:[%s6126_s0 + $0x2a] sm:$0x1]  ;;  %v583_v52 = vld [vmem:[%s6126_s0 + $0x3a] sm:$0x1]  ;;  %s3715_s29 = smov 15   ;;  %s3719_s5 = smov 110  }
  0x41   :  { %v458_v2 = vsel %vm63_vm2, %v457_v53, %v456_v61  ;;  %v502_v3 = vrot.slane %v495_v58, 7  ;;  %v504_v4 = vrot.slane %v496_v59, 6  ;;  %v485_v5 = vpack.c.bf16 %v477_v56, %v477_v56  ;;  %v584_v57 = vld [vmem:[%s6126_s0 + $0x4a] sm:$0x1]  ;;  %s3720_s6 = smov 92   ;;  %s3722_s8 = smov 90  }
  0x42   :  { %v460_v8 = vpack.c.b16 %v458_v2, %v458_v2  ;;  %v506_v9 = vrot.slane %v497_v62, 5  ;;  %v498_v10 = vunpack.c.l.b16 %v482_v60  ;;  %v499_v11 = vunpack.c.l.b16 %v483_v63  ;;  %v585_v62 = vld [vmem:[%s6126_s0 + $0x5a] sm:$0x1]  ;;  %v586_v63 = vld [vmem:[%s6126_s0 + $0x6a] sm:$0x1]  ;;  %s3725_s9 = smov 56  }
  0x43   :  { %v503_v13 = vsel %vm57_vm0, %v502_v3, %v494_v55  ;;  %v500_v14 = vunpack.c.l.b16 %v484_v0  ;;  %v501_v15 = vunpack.c.l.b16 %v485_v5  ;;  %v533_v16 = vpack.c.bf16 %v525_v1, %v525_v1  ;;  %s3727_s11 = smov 20   ;;  %s3728_s13 = smov 114  }
  0x44   :  { %463 = vrot.lane.b32.xlu1 %v460_v8, %s3708_s30  ;;  %v505_v17 = vsel %vm60_vm1, %v504_v4, %v503_v13  ;;  %v508_v18 = vrot.slane %v499_v11, 7  ;;  %v534_v19 = vpack.c.bf16 %v526_v6, %v526_v6  ;;  %v535_v20 = vpack.c.bf16 %v527_v7, %v527_v7  ;;  %v587_v4 = vld [vmem:[%s6126_s0 + $0x7a] sm:$0x1]  ;;  %v635_v13 = vld [vmem:[%s6126_s0 + $0xb] sm:$0x1]  ;;  %s3718_s30 = smov 126  }
  0x45   :  { %v507_v22 = vsel %vm63_vm2, %v506_v9, %v505_v17  ;;  %v510_v23 = vrot.slane %v500_v14, 6  ;;  %v512_v24 = vrot.slane %v501_v15, 5  ;;  %v536_v25 = vpack.c.bf16 %v528_v12, %v528_v12  ;;  %s3729_s14 = smov 112   ;;  %s3731_s16 = smov 76  }
  0x46   :  { %v514_v28 = vpack.c.b16 %v507_v22, %v507_v22  ;;  %v509_v29 = vsel %vm57_vm0, %v508_v18, %v498_v10  ;;  %v549_v30 = vunpack.c.l.b16 %v533_v16  ;;  %v550_v31 = vunpack.c.l.b16 %v534_v19  ;;  %v636_v18 = vld [vmem:[%s6126_s0 + $0x1b] sm:$0x1]  ;;  %v637_v19 = vld [vmem:[%s6126_s0 + $0x2b] sm:$0x1]  ;;  %s3732_s17 = smov 2   ;;  %s3734_s19 = smov 40  }
  0x47   :  { %v511_v33 = vsel %vm60_vm1, %v510_v23, %v509_v29  ;;  %v551_v34 = vunpack.c.l.b16 %v535_v20  ;;  %v552_v35 = vunpack.c.l.b16 %v536_v25  ;;  %v537_v36 = vpack.c.bf16 %v529_v21, %v529_v21  ;;  %s3735_s20 = smov 22   ;;  %s3736_s22 = smov 4  }
  0x48   :  { %516 = vrot.lane.b32.xlu0 %v514_v28, %s3709_s23  ;;  %v513_v37 = vsel %vm63_vm2, %v512_v24, %v511_v33  ;;  %v557_v38 = vrot.slane %v550_v31, 7  ;;  %v538_v39 = vpack.c.bf16 %v530_v26, %v530_v26  ;;  %v539_v40 = vpack.c.bf16 %v531_v27, %v531_v27  ;;  %v638_v24 = vld [vmem:[%s6126_s0 + $0x3b] sm:$0x1]  ;;  %v639_v33 = vld [vmem:[%s6126_s0 + $0x4b] sm:$0x1] }
  0x49   :  { %v515_v43 = vpack.c.b16 %v513_v37, %v513_v37  ;;  %v559_v44 = vrot.slane %v551_v34, 6  ;;  %v561_v45 = vrot.slane %v552_v35, 5  ;;  %v540_v46 = vpack.c.bf16 %v532_v32, %v532_v32 }
  0x4a   :  { %v558_v48 = vsel %vm57_vm0, %v557_v38, %v549_v30  ;;  %v553_v49 = vunpack.c.l.b16 %v537_v36  ;;  %v554_v50 = vunpack.c.l.b16 %v538_v39  ;;  %v555_v51 = vunpack.c.l.b16 %v539_v40  ;;  %v640_v38 = vld [vmem:[%s6126_s0 + $0x5b] sm:$0x1]  ;;  %v641_v39 = vld [vmem:[%s6126_s0 + $0x6b] sm:$0x1] }
  0x4b   :  { %518 = vrot.lane.b32.xlu1 %v515_v43, %s3709_s23  ;;  %v560_v53 = vsel %vm60_vm1, %v559_v44, %v558_v48  ;;  %v556_v54 = vunpack.c.l.b16 %v540_v46  ;;  %v588_v55 = vpack.c.bf16 %v580_v41, %v580_v41  ;;  %v589_v56 = vpack.c.bf16 %v581_v42, %v581_v42  ;;  %v642_v44 = vld [vmem:[%s6126_s0 + $0x7b] sm:$0x1]  ;;  %s3737_s23 = smov [#allocation4]  }
  0x4c   :  { %v562_v58 = vsel %vm63_vm2, %v561_v45, %v560_v53  ;;  %v563_v59 = vrot.slane %v554_v50, 7  ;;  %v565_v60 = vrot.slane %v555_v51, 6  ;;  %v590_v61 = vpack.c.bf16 %v582_v47, %v582_v47  ;;  %v690_v53 = vld [vmem:[%s6126_s0 + $0xc] sm:$0x1]  ;;  %s3579_s24 = sshll.u32 %s3737_s23, 4  ;;  %s3580_s24 = int_to_ptr.vmem [resolvable:$true] %s3579_s24 }
  0x4d   :  { %v569_v0 = vpack.c.b16 %v562_v58, %v562_v58  ;;  %v567_v1 = vrot.slane %v556_v54, 5  ;;  %v591_v2 = vpack.c.bf16 %v583_v52, %v583_v52  ;;  %v604_v3 = vunpack.c.l.b16 %v588_v55  ;;  %v691_v54 = vld [vmem:[%s6126_s0 + $0x1c] sm:$0x1]  ;;  %s3677_s25 = scalar_lea.vmem %s3580_s24, 4096  ;;  %p3682_p1 = scmp.lt.s32.totalorder %s3580_s24, %s3580_s24 }
  0x4e   :  { %v564_v5 = vsel %vm57_vm0, %v563_v59, %v553_v49  ;;  %v605_v6 = vunpack.c.l.b16 %v589_v56  ;;  %v606_v7 = vunpack.c.l.b16 %v590_v61  ;;  %v592_v8 = vpack.c.bf16 %v584_v57, %v584_v57  ;;  %v692_v59 = vld [vmem:[%s6126_s0 + $0x2c] sm:$0x1]  ;;  %p3678_p0 = scmp.ne.s32.totalorder %s3580_s24, %s3677_s25  ;;  %p3683_p2 = scmp.lt.s32.totalorder %s3677_s25, %s3677_s25 }
  0x4f   :  { %571 = vrot.lane.b32.xlu0 %v569_v0, %s3710_s15  ;;  %v566_v9 = vsel %vm60_vm1, %v565_v60, %v564_v5  ;;  %v607_v10 = vunpack.c.l.b16 %v591_v2  ;;  %v593_v11 = vpack.c.bf16 %v585_v62, %v585_v62  ;;  %v594_v12 = vpack.c.bf16 %v586_v63, %v586_v63  ;;  %v693_v0 = vld [vmem:[%s6126_s0 + $0x3c] sm:$0x1]  ;;  %v694_v5 = vld [vmem:[%s6126_s0 + $0x4c] sm:$0x1] }
  0x50   :  { %v568_v14 = vsel %vm63_vm2, %v567_v1, %v566_v9  ;;  %v612_v15 = vrot.slane %v605_v6, 7  ;;  %v614_v16 = vrot.slane %v606_v7, 6  ;;  %v595_v17 = vpack.c.bf16 %v587_v4, %v587_v4  ;;  %p3684_p3 = por %p3683_p2, %p3682_p1 }
  0x51   :  { %v570_v20 = vpack.c.b16 %v568_v14, %v568_v14  ;;  %v616_v21 = vrot.slane %v607_v10, 5  ;;  %v608_v22 = vunpack.c.l.b16 %v592_v8  ;;  %v609_v23 = vunpack.c.l.b16 %v593_v11  ;;  %v695_v10 = vld [vmem:[%s6126_s0 + $0x5c] sm:$0x1]  ;;  %v696_v11 = vld [vmem:[%s6126_s0 + $0x6c] sm:$0x1] }
  0x52   :  { %v613_v25 = vsel %vm57_vm0, %v612_v15, %v604_v3  ;;  %v610_v26 = vunpack.c.l.b16 %v594_v12  ;;  %v611_v27 = vunpack.c.l.b16 %v595_v17  ;;  %v643_v28 = vpack.c.bf16 %v635_v13, %v635_v13  ;;  %p3685_p4 = pnand %p3684_p3, %p3678_p0 }
  0x53   :  { %573 = vrot.lane.b32.xlu1 %v570_v20, %s3710_s15  ;;  %v615_v29 = vsel %vm60_vm1, %v614_v16, %v613_v25  ;;  %v618_v30 = vrot.slane %v609_v23, 7  ;;  %v644_v31 = vpack.c.bf16 %v636_v18, %v636_v18  ;;  %v645_v32 = vpack.c.bf16 %v637_v19, %v637_v19  ;;  %v697_v16 = vld [vmem:[%s6126_s0 + $0x7c] sm:$0x1]  ;;  %v745_v25 = vld [vmem:[%s6126_s0 + $0xd] sm:$0x1]  ;;  %s3730_s15 = smov 94  }
  0x54   :  { %v617_v34 = vsel %vm63_vm2, %v616_v21, %v615_v29  ;;  %v620_v35 = vrot.slane %v610_v26, 6  ;;  %v622_v36 = vrot.slane %v611_v27, 5  ;;  %v646_v37 = vpack.c.bf16 %v638_v24, %v638_v24 }
  0x55   :  { %v624_v40 = vpack.c.b16 %v617_v34, %v617_v34  ;;  %v619_v41 = vsel %vm57_vm0, %v618_v30, %v608_v22  ;;  %v659_v42 = vunpack.c.l.b16 %v643_v28  ;;  %v660_v43 = vunpack.c.l.b16 %v644_v31  ;;  %v746_v30 = vld [vmem:[%s6126_s0 + $0x1d] sm:$0x1]  ;;  %v747_v31 = vld [vmem:[%s6126_s0 + $0x2d] sm:$0x1] }
  0x56   :  { %v621_v45 = vsel %vm60_vm1, %v620_v35, %v619_v41  ;;  %v661_v46 = vunpack.c.l.b16 %v645_v32  ;;  %v662_v47 = vunpack.c.l.b16 %v646_v37  ;;  %v647_v48 = vpack.c.bf16 %v639_v33, %v639_v33 }
  0x57   :  { %626 = vrot.lane.b32.xlu0 %v624_v40, %s3711_s7  ;;  %v623_v49 = vsel %vm63_vm2, %v622_v36, %v621_v45  ;;  %v667_v50 = vrot.slane %v660_v43, 7  ;;  %v648_v51 = vpack.c.bf16 %v640_v38, %v640_v38  ;;  %v649_v52 = vpack.c.bf16 %v641_v39, %v641_v39  ;;  %v748_v36 = vld [vmem:[%s6126_s0 + $0x3d] sm:$0x1]  ;;  %v749_v45 = vld [vmem:[%s6126_s0 + $0x4d] sm:$0x1] }
  0x58   :  { %v625_v55 = vpack.c.b16 %v623_v49, %v623_v49  ;;  %v669_v56 = vrot.slane %v661_v46, 6  ;;  %v671_v57 = vrot.slane %v662_v47, 5  ;;  %v650_v58 = vpack.c.bf16 %v642_v44, %v642_v44 }
  0x59   :  { %v668_v60 = vsel %vm57_vm0, %v667_v50, %v659_v42  ;;  %v663_v61 = vunpack.c.l.b16 %v647_v48  ;;  %v664_v62 = vunpack.c.l.b16 %v648_v51  ;;  %v665_v63 = vunpack.c.l.b16 %v649_v52  ;;  %v750_v50 = vld [vmem:[%s6126_s0 + $0x5d] sm:$0x1]  ;;  %v751_v51 = vld [vmem:[%s6126_s0 + $0x6d] sm:$0x1] }
  0x5a   :  { %628 = vrot.lane.b32.xlu1 %v625_v55, %s3711_s7  ;;  %v670_v1 = vsel %vm60_vm1, %v669_v56, %v668_v60  ;;  %v666_v2 = vunpack.c.l.b16 %v650_v58  ;;  %v698_v3 = vpack.c.bf16 %v690_v53, %v690_v53  ;;  %v699_v4 = vpack.c.bf16 %v691_v54, %v691_v54  ;;  %v752_v56 = vld [vmem:[%s6126_s0 + $0x7d] sm:$0x1]  ;;  %s3721_s7 = smov 108  }
  0x5b   :  { %v672_v6 = vsel %vm63_vm2, %v671_v57, %v670_v1  ;;  %v673_v7 = vrot.slane %v664_v62, 7  ;;  %v675_v8 = vrot.slane %v665_v63, 6  ;;  %v700_v9 = vpack.c.bf16 %v692_v59, %v692_v59  ;;  %v803_v1 = vld [vmem:[%s6126_s0 + $0xe] sm:$0x1] }
  0x5c   :  { %v679_v12 = vpack.c.b16 %v672_v6, %v672_v6  ;;  %v677_v13 = vrot.slane %v666_v2, 5  ;;  %v701_v14 = vpack.c.bf16 %v693_v0, %v693_v0  ;;  %v714_v15 = vunpack.c.l.b16 %v698_v3  ;;  %v804_v2 = vld [vmem:[%s6126_s0 + $0x1e] sm:$0x1] }
  0x5d   :  { %v674_v17 = vsel %vm57_vm0, %v673_v7, %v663_v61  ;;  %v715_v18 = vunpack.c.l.b16 %v699_v4  ;;  %v716_v19 = vunpack.c.l.b16 %v700_v9  ;;  %v702_v20 = vpack.c.bf16 %v694_v5, %v694_v5  ;;  %v805_v7 = vld [vmem:[%s6126_s0 + $0x2e] sm:$0x1] }
  0x5e   :  { %681 = vrot.lane.b32.xlu0 %v679_v12, %s3712_s26  ;;  %v676_v21 = vsel %vm60_vm1, %v675_v8, %v674_v17  ;;  %v717_v22 = vunpack.c.l.b16 %v701_v14  ;;  %v703_v23 = vpack.c.bf16 %v695_v10, %v695_v10  ;;  %v704_v24 = vpack.c.bf16 %v696_v11, %v696_v11  ;;  %v806_v12 = vld [vmem:[%s6126_s0 + $0x3e] sm:$0x1]  ;;  %v807_v17 = vld [vmem:[%s6126_s0 + $0x4e] sm:$0x1] }
  0x5f   :  { %v678_v26 = vsel %vm63_vm2, %v677_v13, %v676_v21  ;;  %v722_v27 = vrot.slane %v715_v18, 7  ;;  %v724_v28 = vrot.slane %v716_v19, 6  ;;  %v705_v29 = vpack.c.bf16 %v697_v16, %v697_v16 }
  0x60   :  { %v680_v32 = vpack.c.b16 %v678_v26, %v678_v26  ;;  %v726_v33 = vrot.slane %v717_v22, 5  ;;  %v718_v34 = vunpack.c.l.b16 %v702_v20  ;;  %v719_v35 = vunpack.c.l.b16 %v703_v23  ;;  %v808_v22 = vld [vmem:[%s6126_s0 + $0x5e] sm:$0x1]  ;;  %v809_v23 = vld [vmem:[%s6126_s0 + $0x6e] sm:$0x1] }
  0x61   :  { %v723_v37 = vsel %vm57_vm0, %v722_v27, %v714_v15  ;;  %v720_v38 = vunpack.c.l.b16 %v704_v24  ;;  %v721_v39 = vunpack.c.l.b16 %v705_v29  ;;  %v753_v40 = vpack.c.bf16 %v745_v25, %v745_v25 }
  0x62   :  { %683 = vrot.lane.b32.xlu1 %v680_v32, %s3712_s26  ;;  %v725_v41 = vsel %vm60_vm1, %v724_v28, %v723_v37  ;;  %v728_v42 = vrot.slane %v719_v35, 7  ;;  %v754_v43 = vpack.c.bf16 %v746_v30, %v746_v30  ;;  %v755_v44 = vpack.c.bf16 %v747_v31, %v747_v31  ;;  %v810_v28 = vld [vmem:[%s6126_s0 + $0x7e] sm:$0x1]  ;;  %v858_v37 = vld [vmem:[%s6126_s0 + $0xf] sm:$0x1] }
  0x63   :  { %v727_v46 = vsel %vm63_vm2, %v726_v33, %v725_v41  ;;  %v730_v47 = vrot.slane %v720_v38, 6  ;;  %v732_v48 = vrot.slane %v721_v39, 5  ;;  %v756_v49 = vpack.c.bf16 %v748_v36, %v748_v36 }
  0x64   :  { %v734_v52 = vpack.c.b16 %v727_v46, %v727_v46  ;;  %v729_v53 = vsel %vm57_vm0, %v728_v42, %v718_v34  ;;  %v769_v54 = vunpack.c.l.b16 %v753_v40  ;;  %v770_v55 = vunpack.c.l.b16 %v754_v43  ;;  %v859_v42 = vld [vmem:[%s6126_s0 + $0x1f] sm:$0x1]  ;;  %v860_v43 = vld [vmem:[%s6126_s0 + $0x2f] sm:$0x1] }
  0x65   :  { %v731_v57 = vsel %vm60_vm1, %v730_v47, %v729_v53  ;;  %v771_v58 = vunpack.c.l.b16 %v755_v44  ;;  %v772_v59 = vunpack.c.l.b16 %v756_v49  ;;  %v757_v60 = vpack.c.bf16 %v749_v45, %v749_v45 }
  0x66   :  { %736 = vrot.lane.b32.xlu0 %v734_v52, %s3713_s18  ;;  %v733_v61 = vsel %vm63_vm2, %v732_v48, %v731_v57  ;;  %v777_v62 = vrot.slane %v770_v55, 7  ;;  %v758_v63 = vpack.c.bf16 %v750_v50, %v750_v50  ;;  %v759_v0 = vpack.c.bf16 %v751_v51, %v751_v51  ;;  %v861_v48 = vld [vmem:[%s6126_s0 + $0x3f] sm:$0x1]  ;;  %v862_v57 = vld [vmem:[%s6126_s0 + $0x4f] sm:$0x1] }
  0x67   :  { %v735_v3 = vpack.c.b16 %v733_v61, %v733_v61  ;;  %v779_v4 = vrot.slane %v771_v58, 6  ;;  %v781_v5 = vrot.slane %v772_v59, 5  ;;  %v760_v6 = vpack.c.bf16 %v752_v56, %v752_v56 }
  0x68   :  { %v778_v8 = vsel %vm57_vm0, %v777_v62, %v769_v54  ;;  %v773_v9 = vunpack.c.l.b16 %v757_v60  ;;  %v774_v10 = vunpack.c.l.b16 %v758_v63  ;;  %v775_v11 = vunpack.c.l.b16 %v759_v0  ;;  %v863_v62 = vld [vmem:[%s6126_s0 + $0x5f] sm:$0x1]  ;;  %v864_v63 = vld [vmem:[%s6126_s0 + $0x6f] sm:$0x1] }
  0x69   :  { %738 = vrot.lane.b32.xlu1 %v735_v3, %s3713_s18  ;;  %v780_v13 = vsel %vm60_vm1, %v779_v4, %v778_v8  ;;  %v776_v14 = vunpack.c.l.b16 %v760_v6  ;;  %v811_v15 = vpack.c.bf16 %v803_v1, %v803_v1  ;;  %v812_v16 = vpack.c.bf16 %v804_v2, %v804_v2  ;;  %v865_v4 = vld [vmem:[%s6126_s0 + $0x7f] sm:$0x1]  ;;  %s3717_s0 = smov 33   ;;  %s3733_s18 = smov 58  }
  0x6a   :  { %v782_v18 = vsel %vm63_vm2, %v781_v5, %v780_v13  ;;  %v783_v19 = vrot.slane %v774_v10, 7  ;;  %v785_v20 = vrot.slane %v775_v11, 6  ;;  %v813_v21 = vpack.c.bf16 %v805_v7, %v805_v7 }
  0x6b   :  { %v789_v24 = vpack.c.b16 %v782_v18, %v782_v18  ;;  %v787_v25 = vrot.slane %v776_v14, 5  ;;  %v814_v26 = vpack.c.bf16 %v806_v12, %v806_v12  ;;  %v827_v27 = vunpack.c.l.b16 %v811_v15 }
  0x6c   :  { %v784_v29 = vsel %vm57_vm0, %v783_v19, %v773_v9  ;;  %v828_v30 = vunpack.c.l.b16 %v812_v16  ;;  %v829_v31 = vunpack.c.l.b16 %v813_v21  ;;  %v815_v32 = vpack.c.bf16 %v807_v17, %v807_v17 }
  0x6d   :  { %791 = vrot.lane.b32.xlu0 %v789_v24, %s3714_s10  ;;  %v786_v33 = vsel %vm60_vm1, %v785_v20, %v784_v29  ;;  %v830_v34 = vunpack.c.l.b16 %v814_v26  ;;  %v816_v35 = vpack.c.bf16 %v808_v22, %v808_v22  ;;  %v817_v36 = vpack.c.bf16 %v809_v23, %v809_v23 }
  0x6e   :  { %v788_v38 = vsel %vm63_vm2, %v787_v25, %v786_v33  ;;  %v835_v39 = vrot.slane %v828_v30, 7  ;;  %v837_v40 = vrot.slane %v829_v31, 6  ;;  %v818_v41 = vpack.c.bf16 %v810_v28, %v810_v28 }
  0x6f   :  { %v790_v44 = vpack.c.b16 %v788_v38, %v788_v38  ;;  %v839_v45 = vrot.slane %v830_v34, 5  ;;  %v831_v46 = vunpack.c.l.b16 %v815_v32  ;;  %v832_v47 = vunpack.c.l.b16 %v816_v35 }
  0x70   :  { %v836_v49 = vsel %vm57_vm0, %v835_v39, %v827_v27  ;;  %v833_v50 = vunpack.c.l.b16 %v817_v36  ;;  %v834_v51 = vunpack.c.l.b16 %v818_v41  ;;  %v866_v52 = vpack.c.bf16 %v858_v37, %v858_v37 }
  0x71   :  { %793 = vrot.lane.b32.xlu1 %v790_v44, %s3714_s10  ;;  %v838_v53 = vsel %vm60_vm1, %v837_v40, %v836_v49  ;;  %v841_v54 = vrot.slane %v832_v47, 7  ;;  %v867_v55 = vpack.c.bf16 %v859_v42, %v859_v42  ;;  %v868_v56 = vpack.c.bf16 %v860_v43, %v860_v43  ;;  %s3726_s10 = smov 38  }
  0x72   :  { %v840_v58 = vsel %vm63_vm2, %v839_v45, %v838_v53  ;;  %v843_v59 = vrot.slane %v833_v50, 6  ;;  %v845_v60 = vrot.slane %v834_v51, 5  ;;  %v869_v61 = vpack.c.bf16 %v861_v48, %v861_v48 }
  0x73   :  { %v847_v0 = vpack.c.b16 %v840_v58, %v840_v58  ;;  %v842_v1 = vsel %vm57_vm0, %v841_v54, %v831_v46  ;;  %v882_v2 = vunpack.c.l.b16 %v866_v52  ;;  %v883_v3 = vunpack.c.l.b16 %v867_v55 }
  0x74   :  { %v844_v5 = vsel %vm60_vm1, %v843_v59, %v842_v1  ;;  %v884_v6 = vunpack.c.l.b16 %v868_v56  ;;  %v885_v7 = vunpack.c.l.b16 %v869_v61  ;;  %v870_v8 = vpack.c.bf16 %v862_v57, %v862_v57 }
  0x75   :  { %849 = vrot.lane.b32.xlu0 %v847_v0, %s3715_s29  ;;  %v846_v9 = vsel %vm63_vm2, %v845_v60, %v844_v5  ;;  %v890_v10 = vrot.slane %v883_v3, 7  ;;  %v871_v11 = vpack.c.bf16 %v863_v62, %v863_v62  ;;  %v872_v12 = vpack.c.bf16 %v864_v63, %v864_v63 }
  0x76   :  { %v848_v13 = vpack.c.b16 %v846_v9, %v846_v9  ;;  %v892_v14 = vrot.slane %v884_v6, 6  ;;  %v894_v15 = vrot.slane %v885_v7, 5  ;;  %v873_v16 = vpack.c.bf16 %v865_v4, %v865_v4  ;;  %v4350_v7 = vld [vmem:[%s6127_s1] sm:$0xff] }
  0x77   :  { %v891_v17 = vsel %vm57_vm0, %v890_v10, %v882_v2  ;;  %v886_v18 = vunpack.c.l.b16 %v870_v8  ;;  %v887_v19 = vunpack.c.l.b16 %v871_v11  ;;  %v888_v20 = vunpack.c.l.b16 %v872_v12 }
  0x78   :  { %851 = vrot.lane.b32.xlu1 %v848_v13, %s3715_s29  ;;  %v893_v21 = vsel %vm60_vm1, %v892_v14, %v891_v17  ;;  %v889_v22 = vunpack.c.l.b16 %v873_v16  ;;  %v3716_v26 = vmov 0   ;;  %vm79_vm3 = vcmask 279704   ;;  %v1389_v17 = vld [vmem:[%s6128_s2] sm:$0xff]  ;;  %s3724_s2 = smov 74  }
  0x79   :  { %v895_v23 = vsel %vm63_vm2, %v894_v15, %v893_v21  ;;  %v896_v24 = vrot.slane %v887_v19, 7  ;;  %v898_v25 = vrot.slane %v888_v20, 6  ;;  %16 = vst [vmem:[#allocation2] sm:$0xff] %v3716_v26  ;;  %17 = vst [vmem:[#allocation2 + $0x8] sm:$0xff] %v3716_v26  ;;  %3674 = vset.pattern.permute.xlu0 %v3716_v26  ;;  %vm134_vm4 = vcmask 427304  }
  0x7a   :  { %18 = vst [vmem:[#allocation2 + $0x10] sm:$0xff] %v3716_v26  ;;  %20 = vst [vmem:[#allocation2 + $0x20] sm:$0xff] %v3716_v26  ;;  %v902_v27 = vpack.c.b16 %v895_v23, %v895_v23  ;;  %v900_v28 = vrot.slane %v889_v22, 5  ;;  %vm189_vm5 = vcmask 574904   ;;  %vm244_vm6 = vcmask 722504  }
  0x7b   :  { %21 = vst [vmem:[#allocation2 + $0x28] sm:$0xff] %v3716_v26  ;;  %22 = vst [vmem:[#allocation2 + $0x30] sm:$0xff] %v3716_v26  ;;  %v897_v29 = vsel %vm57_vm0, %v896_v24, %v886_v18  ;;  %vm299_vm7 = vcmask 870104   ;;  %vm354_vm8 = vcmask 1017704   ;;  %vm409_vm9 = vcmask 1042424  }
  0x7c   :  { %904 = vrot.lane.b32.xlu0 %v902_v27, %s3717_s0  ;;  %v899_v30 = vsel %vm60_vm1, %v898_v25, %v897_v29  ;;  %vm411_vm10 = vcmask 115712   ;;  %vm467_vm11 = vcmask 263304   ;;  %vm522_vm12 = vcmask 410904  }
  0x7d   :  { %v901_v31 = vsel %vm63_vm2, %v900_v28, %v899_v30  ;;  %vm577_vm13 = vcmask 558504   ;;  %vm632_vm14 = vcmask 706104   ;;  %vm687_vm15 = vcmask 853704  }
  0x7e   :  { %v903_v32 = vpack.c.b16 %v901_v31, %v901_v31  ;;  %vm742_vm0 = vcmask 1001304   ;;  %vm797_vm1 = vcmask 1042408   ;;  %vm799_vm2 = vcmask 99328  }
  0x7f   :  { %v74_v33 = vpop.permute.xlu0 %73  ;;  %v4354_v8 = vcombine.high %v4350_v7, %v4350_v7 }
  0x80   :  { %906 = vrot.lane.b32.xlu1 %v903_v32, %s3717_s0  ;;  %80 = vst.msk [vmem:[#allocation2] sm:$0x3] %vm79_vm3, %v74_v33  ;;  %v129_v34 = vpop.permute.xlu1 %128  ;;  %3640 = vrot.lane.b32.xlu0 %v3716_v26, %s3718_s30 }
  0x81   :  { %135 = vst.msk [vmem:[#allocation2] sm:$0x3] %vm134_vm4, %v129_v34 }
  0x84   :  { %3635 = vrot.lane.b32.xlu1 %v3716_v26, %s3707_s12  ;;  %3650 = vrot.lane.b32.xlu0 %v3716_v26, %s3706_s21 }
  0x85   :  { %v76_v35 = vpop.permute.xlu0 %75 }
  0x86   :  { %81 = vst.msk [vmem:[#allocation2 + $0x20] sm:$0x3] %vm79_vm3, %v76_v35  ;;  %vm855_vm3 = vcmask 246904  }
  0x88   :  { %3645 = vrot.lane.b32.xlu1 %v3716_v26, %s3719_s5  ;;  %3660 = vrot.lane.b32.xlu0 %v3716_v26, %s3720_s6 }
  0x89   :  { %v131_v36 = vpop.permute.xlu1 %130 }
  0x8a   :  { %136 = vst.msk [vmem:[#allocation2 + $0x20] sm:$0x3] %vm134_vm4, %v131_v36  ;;  %vm910_vm4 = vcmask 394504  }
  0x8c   :  { %3655 = vrot.lane.b32.xlu1 %v3716_v26, %s3721_s7  ;;  %v184_v37 = vpop.permute.xlu0 %183 }
  0x8d   :  { %190 = vst.msk [vmem:[#allocation2] sm:$0x3] %vm189_vm5, %v184_v37 }
  0x90   :  { %v186_v38 = vpop.permute.xlu1 %185 }
  0x91   :  { %191 = vst.msk [vmem:[#allocation2 + $0x20] sm:$0x3] %vm189_vm5, %v186_v38  ;;  %vm1401_vm5 = vcmask 130048  }
  0x92   :  { %3592 = vmatprep.mubr.msk.bf16.mxu0 %vm1401_vm5, %v4354_v8  ;;  %3593 = vmatprep.mubr.msk.bf16.mxu1 %vm1401_vm5, %v4354_v8 }
  0x94   :  { %v239_v39 = vpop.permute.xlu0 %238 }
  0x95   :  { %245 = vst.msk [vmem:[#allocation2] sm:$0x3] %vm244_vm6, %v239_v39 }
  0x98   :  { %v241_v40 = vpop.permute.xlu1 %240 }
  0x99   :  { %246 = vst.msk [vmem:[#allocation2 + $0x20] sm:$0x3] %vm244_vm6, %v241_v40  ;;  %vm942_vm6 = vcmask 1039360  }
  0x9b   :  { %v294_v41 = vpop.permute.xlu0 %293 }
  0x9c   :  { %300 = vst.msk [vmem:[#allocation2] sm:$0x3] %vm299_vm7, %v294_v41 }
  0x9f   :  { %v296_v42 = vpop.permute.xlu1 %295 }
  0xa0   :  { %301 = vst.msk [vmem:[#allocation2 + $0x20] sm:$0x3] %vm299_vm7, %v296_v42  ;;  %vm993_vm7 = vcmask 1031168  }
  0xa3   :  { %v349_v43 = vpop.permute.xlu0 %348 }
  0xa4   :  { %355 = vst.msk [vmem:[#allocation2] sm:$0x3] %vm354_vm8, %v349_v43 }
  0xa7   :  { %v351_v44 = vpop.permute.xlu1 %350 }
  0xa8   :  { %356 = vst.msk [vmem:[#allocation2 + $0x20] sm:$0x3] %vm354_vm8, %v351_v44  ;;  %vm1044_vm8 = vcmask 900096  }
  0xab   :  { %v404_v45 = vpop.permute.xlu0 %403 }
  0xac   :  { %410 = vst.msk [vmem:[#allocation2] sm:$0x3] %vm409_vm9, %v404_v45 }
  0xad   :  { %412 = vst.msk [vmem:[#allocation2 + $0x8] sm:$0x3] %vm411_vm10, %v404_v45 }
  0xae   :  { %v406_v46 = vpop.permute.xlu1 %405 }
  0xaf   :  { %413 = vst.msk [vmem:[#allocation2 + $0x20] sm:$0x3] %vm409_vm9, %v406_v46  ;;  %vm1095_vm9 = vcmask 891904  }
  0xb0   :  { %414 = vst.msk [vmem:[#allocation2 + $0x28] sm:$0x3] %vm411_vm10, %v406_v46  ;;  %vm1146_vm10 = vcmask 883712  }
  0xb2   :  { %v462_v47 = vpop.permute.xlu0 %461 }
  0xb3   :  { %468 = vst.msk [vmem:[#allocation2 + $0x8] sm:$0x3] %vm467_vm11, %v462_v47  ;;  %v913_v0 = vld [vmem:[#allocation2] sm:$0xff] }
  0xb6   :  { %v464_v48 = vpop.permute.xlu1 %463  ;;  %v4271_v49 = vld [vmem:[#allocation2 + $0x20] sm:$0xff] }
  0xb7   :  { %469 = vst.msk [vmem:[#allocation2 + $0x28] sm:$0x3] %vm467_vm11, %v464_v48  ;;  %1446 = vmatprep.subr.bf16.mxu1 %v4271_v49  ;;  %vm1197_vm11 = vcmask 752640  }
  0xba   :  { %v517_v50 = vpop.permute.xlu0 %516 }
  0xbb   :  { %523 = vst.msk [vmem:[#allocation2 + $0x8] sm:$0x3] %vm522_vm12, %v517_v50 }
  0xbd   :  { %v519_v51 = vpop.permute.xlu1 %518 }
  0xbe   :  { %524 = vst.msk [vmem:[#allocation2 + $0x28] sm:$0x3] %vm522_vm12, %v519_v51  ;;  %vm1248_vm12 = vcmask 744448  }
  0xc1   :  { %v572_v52 = vpop.permute.xlu0 %571 }
  0xc2   :  { %578 = vst.msk [vmem:[#allocation2 + $0x8] sm:$0x3] %vm577_vm13, %v572_v52 }
  0xc5   :  { %v574_v53 = vpop.permute.xlu1 %573 }
  0xc6   :  { %579 = vst.msk [vmem:[#allocation2 + $0x28] sm:$0x3] %vm577_vm13, %v574_v53  ;;  %vm1299_vm13 = vcmask 736256  }
  0xc9   :  { %v627_v54 = vpop.permute.xlu0 %626 }
  0xca   :  { %633 = vst.msk [vmem:[#allocation2 + $0x8] sm:$0x3] %vm632_vm14, %v627_v54 }
  0xcc   :  { %v629_v55 = vpop.permute.xlu1 %628 }
  0xcd   :  { %634 = vst.msk [vmem:[#allocation2 + $0x28] sm:$0x3] %vm632_vm14, %v629_v55  ;;  %vm1592_vm14 = vcmask 122880  }
  0xd0   :  { %v682_v56 = vpop.permute.xlu0 %681 }
  0xd1   :  { %688 = vst.msk [vmem:[#allocation2 + $0x8] sm:$0x3] %vm687_vm15, %v682_v56 }
  0xd4   :  { %v684_v57 = vpop.permute.xlu1 %683 }
  0xd5   :  { %689 = vst.msk [vmem:[#allocation2 + $0x28] sm:$0x3] %vm687_vm15, %v684_v57  ;;  %vm1972_vm15 = vcmask 15360  }
  0xd8   :  { %v737_v58 = vpop.permute.xlu0 %736 }
  0xd9   :  { %743 = vst.msk [vmem:[#allocation2 + $0x8] sm:$0x3] %vm742_vm0, %v737_v58 }
  0xdb   :  { %v739_v59 = vpop.permute.xlu1 %738 }
  0xdc   :  { %744 = vst.msk [vmem:[#allocation2 + $0x28] sm:$0x3] %vm742_vm0, %v739_v59  ;;  %vm2417_vm0 = vcmask 31744  }
  0xdf   :  { %v792_v60 = vpop.permute.xlu0 %791 }
  0xe0   :  { %798 = vst.msk [vmem:[#allocation2 + $0x8] sm:$0x3] %vm797_vm1, %v792_v60 }
  0xe1   :  { %800 = vst.msk [vmem:[#allocation2 + $0x10] sm:$0x3] %vm799_vm2, %v792_v60 }
  0xe3   :  { %v794_v61 = vpop.permute.xlu1 %793 }
  0xe4   :  { %801 = vst.msk [vmem:[#allocation2 + $0x28] sm:$0x3] %vm797_vm1, %v794_v61 }
  0xe5   :  { %802 = vst.msk [vmem:[#allocation2 + $0x30] sm:$0x3] %vm799_vm2, %v794_v61 }
  0xe7   :  { %v850_v62 = vpop.permute.xlu0 %849  ;;  %v4274_v63 = vld [vmem:[#allocation2 + $0x8] sm:$0xff] }
  0xe8   :  { %856 = vst.msk [vmem:[#allocation2 + $0x10] sm:$0x3] %vm855_vm3, %v850_v62  ;;  %1405 = vmatprep.subr.bf16.mxu0 %v4274_v63 }
  0xe9   :  { %1406 = vmatpush1.bf16.msra.mxu0 %v913_v0 }
  0xea   :  { %v852_v1 = vpop.permute.xlu1 %851 }
  0xeb   :  { %857 = vst.msk [vmem:[#allocation2 + $0x30] sm:$0x3] %vm855_vm3, %v852_v1  ;;  %v4315_v6 = vld [vmem:[#allocation2 + $0x28] sm:$0xff] }
  0xee   :  { %v905_v2 = vpop.permute.xlu0 %904 }
  0xef   :  { %911 = vst.msk [vmem:[#allocation2 + $0x10] sm:$0x3] %vm910_vm4, %v905_v2 }
  0xf2   :  { %v907_v3 = vpop.permute.xlu1 %906  ;;  %v4371_v9 = vpop.permute.xlu0 %3640 }
  0xf3   :  { %912 = vst.msk [vmem:[#allocation2 + $0x30] sm:$0x3] %vm910_vm4, %v907_v3 }
  0xf6   :  { %v979_v4 = vld [vmem:[#allocation2 + $0x10] sm:$0xff]  ;;  %v4373_v10 = vpop.permute.xlu1 %3635  ;;  %v4375_v11 = vpop.permute.xlu0 %3650 }
  0xf7   :  { %989 = vrot.lane.b32.xlu1 %v979_v4, %s3718_s30  ;;  %938 = vrot.lane.b32.xlu0 %v979_v4, %s3707_s12  ;;  %v3637_v42 = vunpack.i.l.bf16 %v4373_v10 }
  0xf8   :  { %1447 = vmatpush1.bf16.msra.mxu1 %v979_v4 }
  0xfa   :  { %v4279_v5 = vld [vmem:[#allocation2 + $0x30] sm:$0xff]  ;;  %v4377_v12 = vpop.permute.xlu1 %3645  ;;  %v4379_v13 = vpop.permute.xlu0 %3660 }
  0xfb   :  { %1015 = vrot.lane.b32.xlu1 %v4279_v5, %s3718_s30  ;;  %964 = vrot.lane.b32.xlu0 %v4279_v5, %s3707_s12  ;;  %v3647_v56 = vunpack.i.l.bf16 %v4377_v12 }
  0xfe   :  { %v4381_v14 = vpop.permute.xlu1 %3655 }
  0xff   :  { %1091 = vrot.lane.b32.xlu1 %v979_v4, %s3706_s21  ;;  %1040 = vrot.lane.b32.xlu0 %v979_v4, %s3719_s5 }
 0x103   :  { %1117 = vrot.lane.b32.xlu1 %v4279_v5, %s3706_s21  ;;  %1066 = vrot.lane.b32.xlu0 %v4279_v5, %s3719_s5 }
 0x107   :  { %1193 = vrot.lane.b32.xlu1 %v979_v4, %s3720_s6  ;;  %1142 = vrot.lane.b32.xlu0 %v979_v4, %s3721_s7 }
 0x10b   :  { %1168 = vrot.lane.b32.xlu0 %v4279_v5, %s3721_s7  ;;  %985 = vrot.lane.b32.xlu1 %v913_v0, %s3718_s30 }
 0x10f   :  { %1011 = vrot.lane.b32.xlu1 %v4271_v49, %s3718_s30  ;;  %934 = vrot.lane.b32.xlu0 %v913_v0, %s3707_s12 }
 0x113   :  { %1087 = vrot.lane.b32.xlu1 %v913_v0, %s3706_s21  ;;  %960 = vrot.lane.b32.xlu0 %v4271_v49, %s3707_s12 }
 0x117   :  { %1113 = vrot.lane.b32.xlu1 %v4271_v49, %s3706_s21  ;;  %1036 = vrot.lane.b32.xlu0 %v913_v0, %s3719_s5 }
 0x11b   :  { %1189 = vrot.lane.b32.xlu1 %v913_v0, %s3720_s6  ;;  %1062 = vrot.lane.b32.xlu0 %v4271_v49, %s3719_s5 }
 0x11f   :  { %1215 = vrot.lane.b32.xlu1 %v4271_v49, %s3720_s6  ;;  %1138 = vrot.lane.b32.xlu0 %v913_v0, %s3721_s7 }
 0x123   :  { %936 = vrot.lane.b32.xlu1 %v4274_v63, %s3707_s12  ;;  %1164 = vrot.lane.b32.xlu0 %v4271_v49, %s3721_s7 }
 0x127   :  { %962 = vrot.lane.b32.xlu1 %v4315_v6, %s3707_s12  ;;  %987 = vrot.lane.b32.xlu0 %v4274_v63, %s3718_s30 }
 0x12b   :  { %1038 = vrot.lane.b32.xlu1 %v4274_v63, %s3719_s5  ;;  %1013 = vrot.lane.b32.xlu0 %v4315_v6, %s3718_s30 }
 0x12f   :  { %1064 = vrot.lane.b32.xlu1 %v4315_v6, %s3719_s5  ;;  %1089 = vrot.lane.b32.xlu0 %v4274_v63, %s3706_s21 }
 0x133   :  { %1140 = vrot.lane.b32.xlu1 %v4274_v63, %s3721_s7  ;;  %1115 = vrot.lane.b32.xlu0 %v4315_v6, %s3706_s21 }
 0x137   :  { %1166 = vrot.lane.b32.xlu1 %v4315_v6, %s3721_s7  ;;  %1191 = vrot.lane.b32.xlu0 %v4274_v63, %s3720_s6 }
 0x13b   :  { %1219 = vrot.lane.b32.xlu1 %v4279_v5, %s3720_s6  ;;  %1217 = vrot.lane.b32.xlu0 %v4315_v6, %s3720_s6 }
 0x13f   :  { %1242 = vrot.lane.b32.xlu1 %v4274_v63, %s3705_s4  ;;  %1240 = vrot.lane.b32.xlu0 %v913_v0, %s3705_s4 }
 0x143   :  { %3665 = vrot.lane.b32.xlu1 %v3716_v26, %s3705_s4  ;;  %1244 = vrot.lane.b32.xlu0 %v979_v4, %s3705_s4 }
 0x147   :  { %1268 = vrot.lane.b32.xlu1 %v4315_v6, %s3705_s4  ;;  %1266 = vrot.lane.b32.xlu0 %v4271_v49, %s3705_s4 }
 0x14b   :  { %1291 = vrot.lane.b32.xlu1 %v913_v0, %s3722_s8  ;;  %1270 = vrot.lane.b32.xlu0 %v4279_v5, %s3705_s4 }
 0x14f   :  { %1295 = vrot.lane.b32.xlu1 %v979_v4, %s3722_s8  ;;  %1293 = vrot.lane.b32.xlu0 %v4274_v63, %s3722_s8  ;;  %v3652_v63 = vunpack.i.l.bf16 %v4375_v11 }
 0x153   :  { %1317 = vrot.lane.b32.xlu1 %v4271_v49, %s3722_s8  ;;  %3670 = vrot.lane.b32.xlu0 %v3716_v26, %s3722_s8  ;;  %v3642_v49 = vunpack.i.l.bf16 %v4371_v9 }
 0x157   :  { %1321 = vrot.lane.b32.xlu1 %v4279_v5, %s3722_s8  ;;  %1319 = vrot.lane.b32.xlu0 %v4315_v6, %s3722_s8 }
 0x15b   :  { %1392 = vperm.xlu0 %3674, %v1389_v17  }
 0x169   :  { %v990_v15 = vpop.permute.xlu1 %989  ;;  %v939_v16 = vpop.permute.xlu0 %938 }
 0x16a   :  { %v945_v48 = vsel %vm942_vm6, %v939_v16, %v3637_v42  ;;  %v996_v55 = vsel %vm993_vm7, %v990_v15, %v3642_v49 }
 0x16d   :  { %v4386_v18 = vpop.permute.xlu1 %1015  ;;  %v4388_v19 = vpop.permute.xlu0 %964 }
 0x171   :  { %v4390_v20 = vpop.permute.xlu1 %1091  ;;  %v1041_v21 = vpop.permute.xlu0 %1040 }
 0x172   :  { %v1047_v62 = vsel %vm1044_vm8, %v1041_v21, %v3647_v56 }
 0x175   :  { %v4392_v22 = vpop.permute.xlu1 %1117  ;;  %v4394_v23 = vpop.permute.xlu0 %1066 }
 0x179   :  { %v4396_v24 = vpop.permute.xlu1 %1193  ;;  %v4398_v25 = vpop.permute.xlu0 %1142 }
 0x17d   :  { %v4400_v26 = vpop.permute.xlu0 %1168  ;;  %v986_v27 = vpop.permute.xlu1 %985 }
 0x181   :  { %v1012_v28 = vpop.permute.xlu1 %1011  ;;  %v935_v29 = vpop.permute.xlu0 %934 }
 0x185   :  { %v1088_v30 = vpop.permute.xlu1 %1087  ;;  %v961_v31 = vpop.permute.xlu0 %960 }
 0x189   :  { %v1114_v32 = vpop.permute.xlu1 %1113  ;;  %v1037_v33 = vpop.permute.xlu0 %1036 }
 0x18d   :  { %v4402_v34 = vpop.permute.xlu1 %1189  ;;  %v1063_v35 = vpop.permute.xlu0 %1062 }
 0x191   :  { %v4404_v36 = vpop.permute.xlu1 %1215  ;;  %v1139_v37 = vpop.permute.xlu0 %1138 }
 0x195   :  { %v937_v38 = vpop.permute.xlu1 %936  ;;  %v1165_v39 = vpop.permute.xlu0 %1164 }
 0x196   :  { %v944_v40 = vsel %vm942_vm6, %v937_v38, %v939_v16  ;;  %v943_v41 = vsel %vm942_vm6, %v935_v29, %v937_v38  ;;  %v3657_v16 = vunpack.i.l.bf16 %v4381_v14 }
 0x197   :  { %1407 = vmatprep.subr.bf16.mxu0 %v944_v40 }
 0x198   :  { %1408 = vmatpush1.bf16.msra.mxu0 %v943_v41 }
 0x199   :  { %v4409_v43 = vpop.permute.xlu1 %962  ;;  %v988_v44 = vpop.permute.xlu0 %987 }
 0x19a   :  { %v995_v45 = vsel %vm993_vm7, %v988_v44, %v990_v15  ;;  %v968_v46 = vsel %vm942_vm6, %v961_v31, %v4409_v43  ;;  %v994_v47 = vsel %vm993_vm7, %v986_v27, %v988_v44  ;;  %v1098_v15 = vsel %vm1095_vm9, %v4390_v20, %v3652_v63 }
 0x19b   :  { %1409 = vmatprep.subr.bf16.mxu0 %v995_v45  ;;  %1448 = vmatprep.subr.bf16.mxu1 %v968_v46 }
 0x19c   :  { %1410 = vmatpush1.bf16.msra.mxu0 %v994_v47  ;;  %1449 = vmatpush1.bf16.msra.mxu1 %v945_v48 }
 0x19d   :  { %v1039_v50 = vpop.permute.xlu1 %1038  ;;  %v4417_v51 = vpop.permute.xlu0 %1013 }
 0x19e   :  { %v1046_v52 = vsel %vm1044_vm8, %v1039_v50, %v1041_v21  ;;  %v1019_v53 = vsel %vm993_vm7, %v1012_v28, %v4417_v51  ;;  %v1045_v54 = vsel %vm1044_vm8, %v1037_v33, %v1039_v50 }
 0x19f   :  { %1411 = vmatprep.subr.bf16.mxu0 %v1046_v52  ;;  %1450 = vmatprep.subr.bf16.mxu1 %v1019_v53  ;;  %v3590_v52 = vcombine.low %v4350_v7, %v4350_v7  ;;  %v3643_v7 = vunpack.i.h.bf16 %v4371_v9  ;;  %v1020_v9 = vsel %vm993_vm7, %v4417_v51, %v4386_v18 }
 0x1a0   :  { %1412 = vmatpush1.bf16.msra.mxu0 %v1045_v54  ;;  %1451 = vmatpush1.bf16.msra.mxu1 %v996_v55  ;;  %v3638_v54 = vunpack.i.h.bf16 %v4373_v10 }
 0x1a1   :  { %v4425_v57 = vpop.permute.xlu1 %1064  ;;  %v1090_v58 = vpop.permute.xlu0 %1089  ;;  %v1021_v10 = vsel %vm993_vm7, %v4386_v18, %v3643_v7 }
 0x1a2   :  { %v1097_v59 = vsel %vm1095_vm9, %v1090_v58, %v4390_v20  ;;  %v1070_v60 = vsel %vm1044_vm8, %v1063_v35, %v4425_v57  ;;  %v1096_v61 = vsel %vm1095_vm9, %v1088_v30, %v1090_v58  ;;  %v1149_v20 = vsel %vm1146_vm10, %v4398_v25, %v3657_v16 }
 0x1a3   :  { %1413 = vmatprep.subr.bf16.mxu0 %v1097_v59  ;;  %1452 = vmatprep.subr.bf16.mxu1 %v1070_v60  ;;  %v3662_v30 = vunpack.i.l.bf16 %v4379_v13  ;;  %v970_v56 = vsel %vm942_vm6, %v4388_v19, %v3638_v54 }
 0x1a4   :  { %1414 = vmatpush1.bf16.msra.mxu0 %v1096_v61  ;;  %1453 = vmatpush1.bf16.msra.mxu1 %v1047_v62  ;;  %v3658_v62 = vunpack.i.h.bf16 %v4381_v14 }
 0x1a5   :  { %v1141_v0 = vpop.permute.xlu1 %1140  ;;  %v4434_v1 = vpop.permute.xlu0 %1115 }
 0x1a6   :  { %v1148_v2 = vsel %vm1146_vm10, %v1141_v0, %v4398_v25  ;;  %v1121_v3 = vsel %vm1095_vm9, %v1114_v32, %v4434_v1  ;;  %v1147_v4 = vsel %vm1146_vm10, %v1139_v37, %v1141_v0  ;;  %v1122_v18 = vsel %vm1095_vm9, %v4434_v1, %v4392_v22 }
 0x1a7   :  { %1415 = vmatprep.subr.bf16.mxu0 %v1148_v2  ;;  %1454 = vmatprep.subr.bf16.mxu1 %v1121_v3  ;;  %v1174_v51 = vsel %vm1146_vm10, %v4400_v26, %v3658_v62  ;;  %v3723_v3 = vmov 1966171168  }
 0x1a8   :  { %1416 = vmatpush1.bf16.msra.mxu0 %v1147_v4  ;;  %1455 = vmatpush1.bf16.msra.mxu1 %v1098_v15  ;;  %v1537_v4 = vunpack.c.l.s4 %v3723_v3  ;;  %v1539_v15 = vlaneseq }
 0x1a9   :  { %v4444_v17 = vpop.permute.xlu1 %1166  ;;  %v1192_v21 = vpop.permute.xlu0 %1191 }
 0x1aa   :  { %v1199_v27 = vsel %vm1197_vm11, %v1192_v21, %v4396_v24  ;;  %v1172_v28 = vsel %vm1146_vm10, %v1165_v39, %v4444_v17  ;;  %v1198_v29 = vsel %vm1197_vm11, %v4402_v34, %v1192_v21  ;;  %v1200_v34 = vsel %vm1197_vm11, %v4396_v24, %v3662_v30 }
 0x1ab   :  { %1417 = vmatprep.subr.bf16.mxu0 %v1199_v27  ;;  %1456 = vmatprep.subr.bf16.mxu1 %v1172_v28  ;;  %v1538_v16 = vunpack.c.0.s8 %v1537_v4 }
 0x1ac   :  { %1418 = vmatpush1.bf16.msra.mxu0 %v1198_v29  ;;  %1457 = vmatpush1.bf16.msra.mxu1 %v1149_v20 }
 0x1ad   :  { %v4455_v31 = vpop.permute.xlu1 %1219  ;;  %v4457_v32 = vpop.permute.xlu0 %1217 }
 0x1ae   :  { %v1223_v33 = vsel %vm1197_vm11, %v4404_v36, %v4457_v32 }
 0x1af   :  { %1458 = vmatprep.subr.bf16.mxu1 %v1223_v33 }
 0x1b0   :  { %1459 = vmatpush1.bf16.msra.mxu1 %v1200_v34 }
 0x1b1   :  { %v1243_v35 = vpop.permute.xlu1 %1242  ;;  %v1241_v37 = vpop.permute.xlu0 %1240 }
 0x1b2   :  { %v1249_v41 = vsel %vm1248_vm12, %v1241_v37, %v1243_v35 }
 0x1b5   :  { %v4464_v25 = vpop.permute.xlu1 %3665  ;;  %v1245_v38 = vpop.permute.xlu0 %1244 }
 0x1b6   :  { %v1250_v39 = vsel %vm1248_vm12, %v1243_v35, %v1245_v38  ;;  %v3667_v40 = vunpack.i.l.bf16 %v4464_v25  ;;  %v3668_v14 = vunpack.i.h.bf16 %v4464_v25 }
 0x1b7   :  { %1419 = vmatprep.subr.bf16.mxu0 %v1250_v39 }
 0x1b8   :  { %1420 = vmatpush1.bf16.msra.mxu0 %v1249_v41  ;;  %v1251_v44 = vsel %vm1248_vm12, %v1245_v38, %v3667_v40 }
 0x1b9   :  { %v4469_v36 = vpop.permute.xlu1 %1268  ;;  %v1267_v42 = vpop.permute.xlu0 %1266 }
 0x1ba   :  { %v1274_v24 = vsel %vm1248_vm12, %v1267_v42, %v4469_v36 }
 0x1bb   :  { %1460 = vmatprep.subr.bf16.mxu1 %v1274_v24 }
 0x1bc   :  { %1461 = vmatpush1.bf16.msra.mxu1 %v1251_v44 }
 0x1bd   :  { %v1292_v45 = vpop.permute.xlu1 %1291  ;;  %v1271_v46 = vpop.permute.xlu0 %1270 }
 0x1be   :  { %v1276_v0 = vsel %vm1248_vm12, %v1271_v46, %v3668_v14 }
 0x1c1   :  { %v1296_v47 = vpop.permute.xlu1 %1295  ;;  %v1294_v48 = vpop.permute.xlu0 %1293 }
 0x1c2   :  { %v1301_v49 = vsel %vm1299_vm13, %v1294_v48, %v1296_v47  ;;  %v1300_v50 = vsel %vm1299_vm13, %v1292_v45, %v1294_v48 }
 0x1c3   :  { %1421 = vmatprep.subr.bf16.mxu0 %v1301_v49 }
 0x1c4   :  { %1422 = vmatpush1.bf16.msra.mxu0 %v1300_v50 }
 0x1c5   :  { %v3671_v53 = vpop.permute.xlu0 %3670  ;;  %1487 = vmatprep.subr.bf16.mxu0 %v4279_v5  ;;  %v1318_v58 = vpop.permute.xlu1 %1317 }
 0x1c6   :  { %v3672_v55 = vunpack.i.l.bf16 %v3671_v53  ;;  %v3673_v63 = vunpack.i.h.bf16 %v3671_v53 }
 0x1c7   :  { %1438 = vmatmul.mubr.bf16.vlgmr.msra.gmra.mrb[0].mxu0 %v3590_v52 }
 0x1c8   :  { %1488 = vmatpush1.bf16.msra.mxu0 %v4315_v6  ;;  %3594 = vmatprep.mubr.msk.bf16.mxu0 %vm1401_vm5, %v4354_v8  ;;  %v1302_v5 = vsel %vm1299_vm13, %v1296_v47, %v3672_v55  ;;  %v969_v6 = vsel %vm942_vm6, %v4409_v43, %v4388_v19  ;;  %v3648_v8 = vunpack.i.h.bf16 %v4377_v12  ;;  %v3653_v19 = vunpack.i.h.bf16 %v4375_v11 }
 0x1c9   :  { %v1320_v59 = vpop.permute.xlu0 %1319  ;;  %1489 = vmatprep.subr.bf16.mxu0 %v970_v56  ;;  %v1071_v43 = vsel %vm1044_vm8, %v4425_v57, %v4394_v23  ;;  %v3663_v11 = vunpack.i.h.bf16 %v4379_v13  ;;  %v1322_v13 = vpop.permute.xlu1 %1321 }
 0x1ca   :  { %v1325_v60 = vsel %vm1299_vm13, %v1318_v58, %v1320_v59  ;;  %v1072_v61 = vsel %vm1044_vm8, %v4394_v23, %v3648_v8  ;;  %v1123_v12 = vsel %vm1095_vm9, %v4392_v22, %v3653_v19  ;;  %v1173_v23 = vsel %vm1146_vm10, %v4444_v17, %v4400_v26 }
 0x1cb   :  { %1462 = vmatprep.subr.bf16.mxu1 %v1325_v60  ;;  %v1225_v57 = vsel %vm1197_vm11, %v4455_v31, %v3663_v11  ;;  %v1224_v22 = vsel %vm1197_vm11, %v4457_v32, %v4455_v31  ;;  %v1275_v26 = vsel %vm1248_vm12, %v4469_v36, %v1271_v46  ;;  %v1327_v1 = vsel %vm1299_vm13, %v1322_v13, %v3673_v63 }
 0x1cc   :  { %1463 = vmatpush1.bf16.msra.mxu1 %v1302_v5  ;;  %1490 = vmatpush1.bf16.msra.mxu0 %v969_v6  ;;  %v1326_v2 = vsel %vm1299_vm13, %v1320_v59, %v1322_v13  ;;  %v1540_v17 = vshrl.u32 %v1539_v15, 7 }
 0x1cd   :  { %1491 = vmatprep.subr.bf16.mxu0 %v1021_v10 }
 0x1ce   :  { %v4529_v29 = vsub.s32 %v1538_v16, %v1540_v17  ;;  %v4533_v25 = vsub.s32 0, %v1540_v17  ;;  %v4558_v59 = vsub.s32 1, %v1540_v17 }
 0x1cf   :  { %1479 = vmatmul.mubr.bf16.vlgmr.msra.gmra.mrb[0].mxu1 %v3590_v52 }
 0x1d0   :  { %1492 = vmatpush1.bf16.msra.mxu0 %v1020_v9 }
 0x1d1   :  { %1493 = vmatprep.subr.bf16.mxu0 %v1072_v61 }
 0x1d4   :  { %1494 = vmatpush1.bf16.msra.mxu0 %v1071_v43 }
 0x1d5   :  { %1495 = vmatprep.subr.bf16.mxu0 %v1123_v12 }
 0x1d8   :  { %1496 = vmatpush1.bf16.msra.mxu0 %v1122_v18 }
 0x1d9   :  { %1497 = vmatprep.subr.bf16.mxu0 %v1174_v51 }
 0x1da   :  { %v4526_v21 = vpop.permute.xlu0 %1392 }
 0x1dc   :  { %1498 = vmatpush1.bf16.msra.mxu0 %v1173_v23 }
 0x1dd   :  { %1499 = vmatprep.subr.bf16.mxu0 %v1225_v57 }
 0x1e0   :  { %1500 = vmatpush1.bf16.msra.mxu0 %v1224_v22 }
 0x1e1   :  { %1501 = vmatprep.subr.bf16.mxu0 %v1276_v0 }
 0x1e4   :  { %1502 = vmatpush1.bf16.msra.mxu0 %v1275_v26 }
 0x1e5   :  { %1503 = vmatprep.subr.bf16.mxu0 %v1327_v1 }
 0x1e8   :  { %1504 = vmatpush1.bf16.msra.mxu0 %v1326_v2 }
 0x1eb   :  { %1520 = vmatmul.mubr.bf16.vlgmr.msra.gmra.mrb[4].mxu0 %v3590_v52 }
 0x29a   :  { %v1439_v27 = vpop.f32.mrb[0].mxu0 }
 0x29b   :  { %v1440_v28 = vadd.f32 %v1439_v27, %v4526_v21  ;;  %v1441_v20 = vpop.f32.mrb[1].mxu0 }
 0x29c   :  { %v1442_v30 = vadd.f32 %v1441_v20, %v4526_v21  ;;  %v1443_v31 = vpop.f32.mrb[2].mxu0 }
 0x29d   :  { %v1528_v32 = vmax.f32 %v1440_v28, 0.0  ;;  %v1444_v33 = vpop.f32.mrb[3].mxu0 }
 0x29e   :  { %v1529_v34 = vmax.f32 %v1442_v30, 0.0 }
 0x29f   :  { %v1535_v35 = vcombine.high %v1528_v32, %v1528_v32  ;;  %v1542_v37 = vrot.slane %v1528_v32, %v4529_v29 }
 0x2a0   :  { %v1997_v38 = vcombine.high %v1529_v34, %v1529_v34  ;;  %v4536_v39 = vrot.slane %v1529_v34, %v4529_v29  ;;  %v1826_v40 = vcombine.low %v1528_v32, %v1529_v34  ;;  %v1827_v41 = vcombine.high %v1528_v32, %v1529_v34 }
 0x2a1   :  { %v1549_v36 = vrot.slane %v1535_v35, %v4529_v29  ;;  %v1550_v42 = vcombine.high %v1542_v37, %v1542_v37  ;;  %v1558_v24 = vrot.slane %v1542_v37, %v4529_v29 }
 0x2a2   :  { %v4541_v44 = vrot.slane %v1997_v38, %v4529_v29  ;;  %v1480_v45 = vpop.f32.mrb[0].mxu1  ;;  %v4545_v46 = vrot.slane %v4536_v39, %v4529_v29  ;;  %v4548_v47 = vrot.slane %v1826_v40, %v4529_v29  ;;  %v2012_v6 = vcombine.high %v4536_v39, %v4536_v39 }
 0x2a3   :  { %v1551_v48 = vcombine.high %v1549_v36, %v1549_v36  ;;  %v1565_v49 = vrot.slane %v1549_v36, %v4529_v29  ;;  %v1572_v50 = vrot.slane %v1550_v42, %v4529_v29  ;;  %v1580_v52 = vcombine.high %v1558_v24, %v1558_v24  ;;  %1593 = vst.msk [vmem:[#allocation4] sm:$0x1] %vm1592_vm14, %v1558_v24  ;;  %v1482_v53 = vpop.f32.mrb[1].mxu1 }
 0x2a4   :  { %v4554_v54 = vrot.slane %v1558_v24, %v4533_v25  ;;  %v1481_v55 = vadd.f32 %v1480_v45, %v4526_v21  ;;  %v1483_v56 = vadd.f32 %v1482_v53, %v4526_v21  ;;  %v1484_v58 = vpop.f32.mrb[2].mxu1  ;;  %v4578_v61 = vrot.slane %v4545_v46, %v4533_v25 }
 0x2a5   :  { %v4561_v7 = vrot.slane %v1551_v48, %v4529_v29  ;;  %v4563_v60 = vcombine.high %v1565_v49, %v1565_v49  ;;  %v1582_v5 = vcombine.high %v1572_v50, %v1572_v50  ;;  %1594 = vst.msk [vmem:[#allocation4 + $0x10] sm:$0x1] %vm1592_vm14, %v1572_v50  ;;  %1595 = vst.msk [vmem:[#allocation4 + $0x20] sm:$0x1] %vm1592_vm14, %v1580_v52  ;;  %v1485_v10 = vpop.f32.mrb[3].mxu1 }
 0x2a6   :  { %1597 = vst.msk [vmem:[#allocation4 + $0x40] sm:$0x1] %vm1592_vm14, %v1565_v49  ;;  %v1530_v8 = vmax.f32 %v1481_v55, 0.0  ;;  %v4570_v9 = vmax.f32 %v1483_v56, 0.0  ;;  %1665 = vrot.lane.b32.xlu0 %v4554_v54, %s3720_s6  ;;  %1633 = vrot.lane.b32.xlu1 %v4554_v54, %s3719_s5  ;;  %v4581_v19 = vrot.slane %v1827_v41, %v4529_v29  ;;  %v4590_v43 = vrot.slane %v4548_v47, %v4529_v29 }
 0x2a7   :  { %1596 = vst.msk [vmem:[#allocation4 + $0x30] sm:$0x1] %vm1592_vm14, %v1582_v5  ;;  %1598 = vst.msk [vmem:[#allocation4 + $0x50] sm:$0x1] %vm1592_vm14, %v4561_v7  ;;  %v4593_v12 = vrot.slane %v1580_v52, %v4533_v25  ;;  %v4596_v62 = vrot.slane %v1565_v49, %v4533_v25  ;;  %v4599_v18 = vrot.slane %v1582_v5, %v4533_v25 }
 0x2a8   :  { %1599 = vst.msk [vmem:[#allocation4 + $0x60] sm:$0x1] %vm1592_vm14, %v4563_v60  ;;  %v2271_v51 = vcombine.low %v1529_v34, %v1530_v8  ;;  %v2272_v11 = vcombine.high %v1529_v34, %v1530_v8  ;;  %v2442_v23 = vcombine.high %v1530_v8, %v1530_v8  ;;  %v2449_v57 = vrot.slane %v1530_v8, %v4529_v29 }
 0x2a9   :  { %v2556_v14 = vcombine.high %v4570_v9, %v4570_v9  ;;  %v2563_v22 = vrot.slane %v4570_v9, %v4529_v29  ;;  %v4607_v63 = vrot.slane %v1572_v50, %v4533_v25  ;;  %v4611_v0 = vrot.slane %v4581_v19, %v4529_v29 }
 0x2aa   :  { %v4614_v13 = vrot.slane %v2271_v51, %v4529_v29  ;;  %v4617_v26 = vrot.slane %v2272_v11, %v4529_v29  ;;  %v2456_v1 = vrot.slane %v2442_v23, %v4529_v29  ;;  %v2457_v2 = vcombine.high %v2449_v57, %v2449_v57  ;;  %1697 = vrot.lane.b32.xlu0 %v4554_v54, %s3724_s2 }
 0x2ab   :  { %v2570_v3 = vrot.slane %v2556_v14, %v4529_v29  ;;  %v2571_v4 = vcombine.high %v2563_v22, %v2563_v22  ;;  %v2579_v15 = vrot.slane %v2563_v22, %v4529_v29  ;;  %1635 = vrot.lane.b32.xlu1 %v4607_v63, %s3719_s5  ;;  %v4627_v16 = vrot.slane %v2449_v57, %v4529_v29 }
 0x2ac   :  { %v2287_v17 = vcombine.high %v4614_v13, %v4614_v13  ;;  %v4632_v27 = vrot.slane %v2457_v2, %v4529_v29  ;;  %v1883_v28 = vrot.slane %v4590_v43, %v4558_v59  ;;  %v4637_v20 = vrot.slane %v2012_v6, %v4529_v29 }
 0x2ad   :  { %v2572_v30 = vcombine.high %v2570_v3, %v2570_v3  ;;  %v4640_v31 = vrot.slane %v2570_v3, %v4529_v29  ;;  %v2593_v32 = vrot.slane %v2571_v4, %v4529_v29  ;;  %v2601_v33 = vcombine.high %v2579_v15, %v2579_v15  ;;  %2614 = vst.msk [vmem:[#allocation4 + $0x80] sm:$0x1] %vm1592_vm14, %v2579_v15 }
 0x2ae   :  { %v2288_v34 = vcombine.high %v4617_v26, %v4617_v26  ;;  %v4647_v35 = vrot.slane %v2579_v15, %v4533_v25  ;;  %1729 = vrot.lane.b32.xlu0 %v4554_v54, %s3725_s9  ;;  %v2494_v37 = vrot.slane %v4627_v16, %v4533_v25  ;;  %v4672_v36 = vrot.slane %v4614_v13, %v4529_v29 }
 0x2af   :  { %v4656_v39 = vrot.slane %v2572_v30, %v4529_v29  ;;  %v4660_v40 = vcombine.high %v4640_v31, %v4640_v31  ;;  %v4662_v41 = vcombine.high %v2593_v32, %v2593_v32  ;;  %2615 = vst.msk [vmem:[#allocation4 + $0x90] sm:$0x1] %vm1592_vm14, %v2593_v32  ;;  %2616 = vst.msk [vmem:[#allocation4 + $0xa0] sm:$0x1] %vm1592_vm14, %v2601_v33  ;;  %1667 = vrot.lane.b32.xlu1 %v4607_v63, %s3720_s6 }
 0x2b0   :  { %2618 = vst.msk [vmem:[#allocation4 + $0xc0] sm:$0x1] %vm1592_vm14, %v4640_v31  ;;  %v4676_v42 = vrot.slane %v4617_v26, %v4529_v29  ;;  %v4679_v24 = vrot.slane %v2593_v32, %v4533_v25  ;;  %v4683_v45 = vrot.slane %v4561_v7, %v4533_v25  ;;  %v2487_v48 = vcombine.high %v4627_v16, %v4627_v16 }
 0x2b1   :  { %2617 = vst.msk [vmem:[#allocation4 + $0xb0] sm:$0x1] %vm1592_vm14, %v4662_v41  ;;  %2619 = vst.msk [vmem:[#allocation4 + $0xd0] sm:$0x1] %vm1592_vm14, %v4656_v39  ;;  %v2498_v49 = vrot.slane %v4632_v27, %v4533_v25  ;;  %v4696_v50 = vrot.slane %v2456_v1, %v4529_v29  ;;  %v4706_v55 = vrot.slane %v4637_v20, %v4533_v25 }
 0x2b2   :  { %2620 = vst.msk [vmem:[#allocation4 + $0xe0] sm:$0x1] %vm1592_vm14, %v4660_v40  ;;  %1761 = vrot.lane.b32.xlu0 %v4554_v54, %s3726_s10  ;;  %v4709_v56 = vrot.slane %v2487_v48, %v4533_v25  ;;  %v2042_v58 = vcombine.high %v4545_v46, %v4545_v46  ;;  %v4715_v5 = vrot.slane %v4541_v44, %v4529_v29 }
 0x2b3   :  { %1699 = vrot.lane.b32.xlu1 %v4607_v63, %s3724_s2  ;;  %v2489_v10 = vcombine.high %v4632_v27, %v4632_v27  ;;  %v2458_v8 = vcombine.high %v2456_v1, %v2456_v1  ;;  %v1842_v51 = vcombine.high %v4548_v47, %v4548_v47  ;;  %v4734_v23 = vcombine.high %v4590_v43, %v4590_v43 }
 0x2b4   :  { %v4726_v11 = vrot.slane %v2042_v58, %v4533_v25  ;;  %v4730_v46 = vrot.slane %v4715_v5, %v4533_v25  ;;  %v1843_v57 = vcombine.high %v4581_v19, %v4581_v19  ;;  %v4749_v1 = vcombine.high %v4611_v0, %v4611_v0 }
 0x2b5   :  { %v4739_v14 = vrot.slane %v2489_v10, %v4533_v25  ;;  %v4742_v22 = vrot.slane %v2458_v8, %v4529_v29  ;;  %v4745_v47 = vrot.slane %v1842_v51, %v4529_v29  ;;  %v2044_v3 = vcombine.high %v4637_v20, %v4637_v20 }
 0x2b6   :  { %1793 = vrot.lane.b32.xlu0 %v4554_v54, %s3727_s11  ;;  %v4756_v2 = vrot.slane %v1843_v57, %v4529_v29  ;;  %v2013_v4 = vcombine.high %v4541_v44, %v4541_v44  ;;  %v4781_v58 = vrot.slane %v2601_v33, %v4533_v25  ;;  %v4785_v10 = vrot.slane %v4640_v31, %v4533_v25 }
 0x2b7   :  { %1731 = vrot.lane.b32.xlu1 %v4607_v63, %s3725_s9  ;;  %v4775_v44 = vrot.slane %v2044_v3, %v4533_v25  ;;  %v4791_v8 = vrot.slane %v2287_v17, %v4529_v29  ;;  %v4795_v51 = vcombine.high %v4672_v36, %v4672_v36  ;;  %v4803_v31 = vrot.slane %v4563_v60, %v4533_v25 }
 0x2b8   :  { %v2041_v32 = vrot.slane %v2013_v4, %v4529_v29  ;;  %v4809_v13 = vrot.slane %v2288_v34, %v4529_v29  ;;  %v4813_v17 = vcombine.high %v4676_v42, %v4676_v42  ;;  %v4823_v57 = vrot.slane %v4662_v41, %v4533_v25 }
 0x2b9   :  { %v4827_v26 = vrot.slane %v4656_v39, %v4533_v25  ;;  %v2488_v4 = vcombine.high %v4696_v50, %v4696_v50  ;;  %v1583_v34 = vcombine.high %v4561_v7, %v4561_v7  ;;  %v2043_v41 = vcombine.high %v4715_v5, %v4715_v5 }
 0x2ba   :  { %2523 = vrot.lane.b32.xlu0 %v2494_v37, %s3728_s13  ;;  %v4799_v33 = vrot.slane %v2041_v32, %v4533_v25  ;;  %v2490_v37 = vcombine.high %v4742_v22, %v4742_v22  ;;  %v4865_v5 = vcombine.high %v4745_v47, %v4745_v47  ;;  %v2045_v15 = vcombine.high %v2041_v32, %v2041_v32 }
 0x2bb   :  { %1763 = vrot.lane.b32.xlu1 %v4607_v63, %s3726_s10  ;;  %v4848_v30 = vrot.slane %v2488_v4, %v4533_v25  ;;  %v4860_v16 = vrot.slane %v1583_v34, %v4533_v25  ;;  %1600 = vst.msk [vmem:[#allocation4 + $0x70] sm:$0x1] %vm1592_vm14, %v1583_v34  ;;  %v4871_v20 = vrot.slane %v2043_v41, %v4533_v25 }
 0x2bc   :  { %v4900_v32 = vrot.slane %v2045_v15, %v4533_v25  ;;  %v4912_v27 = vcombine.high %v4791_v8, %v4791_v8 }
 0x2be   :  { %2078 = vrot.lane.b32.xlu0 %v4578_v61, %s3729_s14  ;;  %v1521_v3 = vpop.f32.mrb[4].mxu0  ;;  %6158 = vst [vmem:[#allocation7_spill] sm:$0xff] %v4912_v27 }
 0x2bf   :  { %1795 = vrot.lane.b32.xlu1 %v4607_v63, %s3727_s11  ;;  %v1522_v7 = vadd.f32 %v1521_v3, %v4526_v21  ;;  %v1523_v60 = vpop.f32.mrb[5].mxu0  ;;  %v4874_v63 = vrot.slane %v2490_v37, %v4533_v25  ;;  %v4878_v3 = vcombine.high %v4756_v2, %v4756_v2 }
 0x2c0   :  { %v1524_v48 = vadd.f32 %v1523_v60, %v4526_v21  ;;  %v1525_v34 = vpop.f32.mrb[6].mxu0 }
 0x2c1   :  { %v1532_v19 = vmax.f32 %v1522_v7, 0.0  ;;  %v1526_v21 = vpop.f32.mrb[7].mxu0  ;;  %v4892_v7 = vrot.slane %v4660_v40, %v4533_v25 }
 0x2c2   :  { %v1533_v60 = vmax.f32 %v1524_v48, 0.0  ;;  %2110 = vrot.lane.b32.xlu0 %v4578_v61, %s3730_s15 }
 0x2c3   :  { %v3017_v34 = vcombine.high %v1532_v19, %v1532_v19  ;;  %v3024_v4 = vrot.slane %v1532_v19, %v4529_v29  ;;  %2525 = vrot.lane.b32.xlu1 %v2498_v49, %s3728_s13  ;;  %v2604_v49 = vcombine.high %v4656_v39, %v4656_v39 }
 0x2c4   :  { %v3291_v21 = vcombine.low %v1532_v19, %v1533_v60  ;;  %v3292_v41 = vcombine.high %v1532_v19, %v1533_v60  ;;  %v3461_v37 = vcombine.high %v1533_v60, %v1533_v60  ;;  %v4905_v40 = vrot.slane %v1533_v60, %v4529_v29 }
 0x2c5   :  { %v4908_v54 = vrot.slane %v3017_v34, %v4529_v29  ;;  %v3032_v53 = vcombine.high %v3024_v4, %v3024_v4  ;;  %2621 = vst.msk [vmem:[#allocation4 + $0xf0] sm:$0x1] %vm1592_vm14, %v2604_v49  ;;  %v3040_v38 = vrot.slane %v3024_v4, %v4529_v29 }
 0x2c6   :  { %v4917_v15 = vrot.slane %v3291_v21, %v4529_v29  ;;  %v4920_v48 = vrot.slane %v3292_v41, %v4529_v29  ;;  %v4923_v60 = vrot.slane %v3461_v37, %v4529_v29  ;;  %2142 = vrot.lane.b32.xlu0 %v4578_v61, %s3731_s16  ;;  %v4937_v37 = vcombine.high %v4809_v13, %v4809_v13 }
 0x2c7   :  { %1942 = vrot.lane.b32.xlu1 %v1883_v28, %s3732_s17  ;;  %v2847_v28 = vcombine.low %v4570_v9, %v1532_v19  ;;  %v2848_v41 = vcombine.high %v4570_v9, %v1532_v19  ;;  %v4953_v21 = vrot.slane %v2604_v49, %v4533_v25  ;;  %v3047_v19 = vrot.slane %v4908_v54, %v4529_v29 }
 0x2c8   :  { %6159 = vst [vmem:[#allocation8_spill] sm:$0xff] %v4937_v37  ;;  %v3307_v52 = vcombine.high %v4917_v15, %v4917_v15  ;;  %v3054_v34 = vrot.slane %v3032_v53, %v4529_v29  ;;  %v6161_v49 = vrot.slane %v4611_v0, %v4558_v59  ;;  %v4970_v4 = vrot.slane %v3040_v38, %v4533_v25 }
 0x2c9   :  { %6160 = vst [vmem:[#allocation9_spill] sm:$0xff] %v4953_v21  ;;  %v2855_v6 = vrot.slane %v2847_v28, %v4529_v29  ;;  %v2862_v9 = vrot.slane %v2848_v41, %v4529_v29  ;;  %v3062_v39 = vcombine.high %v3040_v38, %v3040_v38  ;;  %v3033_v21 = vcombine.high %v4908_v54, %v4908_v54 }
 0x2ca   :  { %2174 = vrot.lane.b32.xlu0 %v4578_v61, %s3733_s18  ;;  %6162 = vst [vmem:[#allocation10_spill] sm:$0xff] %v4970_v4  ;;  %v4976_v41 = vrot.slane %v4917_v15, %v4529_v29  ;;  %v4988_v38 = vrot.slane %v3047_v19, %v4533_v25  ;;  %v4991_v54 = vrot.slane %v3054_v34, %v4533_v25 }
 0x2cb   :  { %1958 = vrot.lane.b32.xlu1 %v6161_v49, %s3732_s17  ;;  %v4979_v28 = vrot.slane %v2855_v6, %v4529_v29  ;;  %v2863_v53 = vcombine.high %v2855_v6, %v2855_v6  ;;  %v4982_v37 = vrot.slane %v2862_v9, %v4529_v29  ;;  %v2864_v27 = vcombine.high %v2862_v9, %v2862_v9 }
 0x2cc   :  { %6163 = vst [vmem:[#allocation11_spill] sm:$0xff] %v4976_v41  ;;  %v4985_v49 = vrot.slane %v3062_v39, %v4533_v25  ;;  %6167 = vst [vmem:[#allocation15_spill] sm:$0xff] %v4988_v38  ;;  %v3063_v4 = vcombine.high %v3047_v19, %v3047_v19  ;;  %v3061_v19 = vrot.slane %v3033_v21, %v4529_v29 }
 0x2cd   :  { %6164 = vst [vmem:[#allocation12_spill] sm:$0xff] %v4979_v28  ;;  %6165 = vst [vmem:[#allocation13_spill] sm:$0xff] %v4982_v37  ;;  %v4998_v15 = vrot.slane %v2863_v53, %v4529_v29  ;;  %v5002_v39 = vcombine.high %v4979_v28, %v4979_v28  ;;  %v5015_v53 = vcombine.high %v4982_v37, %v4982_v37 }
 0x2ce   :  { %6166 = vst [vmem:[#allocation14_spill] sm:$0xff] %v4985_v49  ;;  %6168 = vst [vmem:[#allocation16_spill] sm:$0xff] %v4991_v54  ;;  %2206 = vrot.lane.b32.xlu0 %v4578_v61, %s3734_s19  ;;  %v5011_v54 = vrot.slane %v2864_v27, %v4529_v29  ;;  %v5056_v27 = vrot.slane %v3063_v4, %v4533_v25  ;;  %v3064_v37 = vcombine.high %v3054_v34, %v3054_v34 }
 0x2cf   :  { %2080 = vrot.lane.b32.xlu1 %v4706_v55, %s3729_s14  ;;  %6169 = vst [vmem:[#allocation17_spill] sm:$0xff] %v5015_v53  ;;  %v5025_v49 = vcombine.high %v4998_v15, %v4998_v15  ;;  %v5062_v6 = vrot.slane %v3307_v52, %v4529_v29  ;;  %v5066_v53 = vcombine.high %v4976_v41, %v4976_v41 }
 0x2d0   :  { %v5037_v38 = vcombine.high %v5011_v54, %v5011_v54  ;;  %v5069_v9 = vrot.slane %v3064_v37, %v4533_v25  ;;  %v5075_v34 = vrot.slane %v4920_v48, %v4529_v29  ;;  %v6172_v21 = vcombine.high %v4920_v48, %v4920_v48 }
 0x2d1   :  { %v5086_v28 = vrot.slane %v3061_v19, %v4533_v25  ;;  %v3065_v37 = vcombine.high %v3061_v19, %v3061_v19  ;;  %v5096_v48 = vcombine.high %v5062_v6, %v5062_v6  ;;  %v5137_v41 = vrot.slane %v4923_v60, %v4529_v29 }
 0x2d2   :  { %2238 = vrot.lane.b32.xlu0 %v4578_v61, %s3735_s20  ;;  %6170 = vst [vmem:[#allocation18_spill] sm:$0xff] %v5069_v9  ;;  %6171 = vst [vmem:[#allocation19_spill] sm:$0xff] %v5075_v34  ;;  %v5081_v52 = vrot.slane %v6172_v21, %v4529_v29  ;;  %v5133_v21 = vrot.slane %v4905_v40, %v4529_v29  ;;  %v6177_v9 = vcombine.high %v4905_v40, %v4905_v40 }
 0x2d3   :  { %2112 = vrot.lane.b32.xlu1 %v4706_v55, %s3730_s15  ;;  %6174 = vst [vmem:[#allocation21_spill] sm:$0xff] %v5086_v28  ;;  %6175 = vst [vmem:[#allocation22_spill] sm:$0xff] %v5096_v48  ;;  %v5105_v4 = vrot.slane %v3065_v37, %v4533_v25  ;;  %v5111_v28 = vcombine.high %v5075_v34, %v5075_v34  ;;  %v3507_v19 = vcombine.high %v5137_v41, %v5137_v41 }
 0x2d4   :  { %6173 = vst [vmem:[#allocation20_spill] sm:$0xff] %v5081_v52  ;;  %v5121_v37 = vcombine.high %v5081_v52, %v5081_v52  ;;  %v3477_v52 = vcombine.high %v4923_v60, %v4923_v60  ;;  %v3506_v48 = vcombine.high %v5133_v21, %v5133_v21 }
 0x2d5   :  { %6176 = vst [vmem:[#allocation23_spill] sm:$0xff] %v5111_v28  ;;  %v5149_v28 = vrot.slane %v6177_v9, %v4529_v29  ;;  %v5174_v61 = vrot.slane %v3507_v19, %v4533_v25  ;;  %v2360_v19 = vrot.slane %v4676_v42, %v4558_v59 }
 0x2d6   :  { %2654 = vrot.lane.b32.xlu0 %v4647_v35, %s3719_s5  ;;  %v5166_v60 = vrot.slane %v3477_v52, %v4529_v29  ;;  %v5171_v34 = vrot.slane %v3506_v48, %v4533_v25  ;;  %v2328_v48 = vrot.slane %v4672_v36, %v4558_v59 }
 0x2d7   :  { %2144 = vrot.lane.b32.xlu1 %v4706_v55, %s3731_s16  ;;  %6178 = vst [vmem:[#allocation24_spill] sm:$0xff] %v5149_v28  ;;  %v3508_v9 = vcombine.high %v5149_v28, %v5149_v28 }
 0x2d8   :  { %v3533_v28 = vrot.slane %v5166_v60, %v4533_v25  ;;  %v3509_v29 = vcombine.high %v5166_v60, %v5166_v60 }
 0x2d9   :  { %v5179_v40 = vrot.slane %v3508_v9, %v4533_v25 }
 0x2da   :  { %2686 = vrot.lane.b32.xlu0 %v4647_v35, %s3720_s6  ;;  %v5186_v52 = vrot.slane %v3509_v29, %v4533_v25 }
 0x2db   :  { %2176 = vrot.lane.b32.xlu1 %v4706_v55, %s3733_s18 }
 0x2de   :  { %2718 = vrot.lane.b32.xlu0 %v4647_v35, %s3724_s2 }
 0x2df   :  { %2208 = vrot.lane.b32.xlu1 %v4706_v55, %s3734_s19 }
 0x2e2   :  { %2750 = vrot.lane.b32.xlu0 %v4647_v35, %s3725_s9 }
 0x2e3   :  { %2240 = vrot.lane.b32.xlu1 %v4706_v55, %s3735_s20 }
 0x2e6   :  { %2782 = vrot.lane.b32.xlu0 %v4647_v35, %s3726_s10 }
 0x2e7   :  { %2387 = vrot.lane.b32.xlu1 %v2328_v48, %s3736_s22 }
 0x2ea   :  { %1637 = vrot.lane.b32.xlu0 %v4593_v12, %s3719_s5 }
 0x2eb   :  { %2403 = vrot.lane.b32.xlu1 %v2360_v19, %s3736_s22  ;;  %v6180_v19 = vrot.slane %v4590_v43, %v4533_v25 }
 0x2ee   :  { %1641 = vrot.lane.b32.xlu0 %v4596_v62, %s3719_s5 }
 0x2ef   :  { %2656 = vrot.lane.b32.xlu1 %v4679_v24, %s3719_s5 }
 0x2f2   :  { %1669 = vrot.lane.b32.xlu0 %v4593_v12, %s3720_s6 }
 0x2f3   :  { %2688 = vrot.lane.b32.xlu1 %v4679_v24, %s3720_s6 }
 0x2f6   :  { %1673 = vrot.lane.b32.xlu0 %v4596_v62, %s3720_s6 }
 0x2f7   :  { %2720 = vrot.lane.b32.xlu1 %v4679_v24, %s3724_s2 }
 0x2fa   :  { %1701 = vrot.lane.b32.xlu0 %v4593_v12, %s3724_s2 }
 0x2fb   :  { %2752 = vrot.lane.b32.xlu1 %v4679_v24, %s3725_s9 }
 0x2fe   :  { %1705 = vrot.lane.b32.xlu0 %v4596_v62, %s3724_s2 }
 0x2ff   :  { %2784 = vrot.lane.b32.xlu1 %v4679_v24, %s3726_s10 }
 0x302   :  { %1733 = vrot.lane.b32.xlu0 %v4593_v12, %s3725_s9 }
 0x303   :  { %1639 = vrot.lane.b32.xlu1 %v4599_v18, %s3719_s5 }
 0x306   :  { %1737 = vrot.lane.b32.xlu0 %v4596_v62, %s3725_s9 }
 0x307   :  { %1643 = vrot.lane.b32.xlu1 %v4683_v45, %s3719_s5 }
 0x30a   :  { %1765 = vrot.lane.b32.xlu0 %v4593_v12, %s3726_s10 }
 0x30b   :  { %1671 = vrot.lane.b32.xlu1 %v4599_v18, %s3720_s6 }
 0x30e   :  { %1769 = vrot.lane.b32.xlu0 %v4596_v62, %s3726_s10 }
 0x30f   :  { %1675 = vrot.lane.b32.xlu1 %v4683_v45, %s3720_s6 }
 0x312   :  { %1797 = vrot.lane.b32.xlu0 %v4593_v12, %s3727_s11 }
 0x313   :  { %1703 = vrot.lane.b32.xlu1 %v4599_v18, %s3724_s2 }
 0x316   :  { %1801 = vrot.lane.b32.xlu0 %v4596_v62, %s3727_s11  ;;  %v6179_v62 = vrot.slane %v4696_v50, %v4533_v25 }
 0x317   :  { %1707 = vrot.lane.b32.xlu1 %v4683_v45, %s3724_s2 }
 0x318   :  { %v1666_v55 = vpop.permute.xlu0 %1665  ;;  %v1634_v9 = vpop.permute.xlu1 %1633 }
 0x319   :  { %1689 = vst.msk [vmem:[#allocation4 + $0x2] sm:$0x1] %vm1592_vm14, %v1666_v55  ;;  %1657 = vst.msk [vmem:[#allocation4 + $0x1] sm:$0x1] %vm1592_vm14, %v1634_v9  ;;  %v6181_v9 = vrot.slane %v4611_v0, %v4533_v25 }
 0x31a   :  { %2527 = vrot.lane.b32.xlu0 %v4709_v56, %s3728_s13 }
 0x31b   :  { %1735 = vrot.lane.b32.xlu1 %v4599_v18, %s3725_s9 }
 0x31c   :  { %v1698_v12 = vpop.permute.xlu0 %1697 }
 0x31d   :  { %1721 = vst.msk [vmem:[#allocation4 + $0x3] sm:$0x1] %vm1592_vm14, %v1698_v12  ;;  %v1636_v29 = vpop.permute.xlu1 %1635 }
 0x31e   :  { %1658 = vst.msk [vmem:[#allocation4 + $0x11] sm:$0x1] %vm1592_vm14, %v1636_v29  ;;  %2531 = vrot.lane.b32.xlu0 %v6179_v62, %s3728_s13 }
 0x31f   :  { %1739 = vrot.lane.b32.xlu1 %v4683_v45, %s3725_s9 }
 0x320   :  { %v1730_v48 = vpop.permute.xlu0 %1729 }
 0x321   :  { %1753 = vst.msk [vmem:[#allocation4 + $0x4] sm:$0x1] %vm1592_vm14, %v1730_v48  ;;  %v1668_v56 = vpop.permute.xlu1 %1667 }
 0x322   :  { %1690 = vst.msk [vmem:[#allocation4 + $0x12] sm:$0x1] %vm1592_vm14, %v1668_v56  ;;  %1940 = vrot.lane.b32.xlu0 %v6180_v19, %s3732_s17 }
 0x323   :  { %1767 = vrot.lane.b32.xlu1 %v4599_v18, %s3726_s10 }
 0x324   :  { %v1762_v55 = vpop.permute.xlu0 %1761 }
 0x325   :  { %1785 = vst.msk [vmem:[#allocation4 + $0x5] sm:$0x1] %vm1592_vm14, %v1762_v55  ;;  %v1700_v50 = vpop.permute.xlu1 %1699 }
 0x326   :  { %1722 = vst.msk [vmem:[#allocation4 + $0x13] sm:$0x1] %vm1592_vm14, %v1700_v50  ;;  %1956 = vrot.lane.b32.xlu0 %v6181_v9, %s3732_s17 }
 0x327   :  { %1771 = vrot.lane.b32.xlu1 %v4683_v45, %s3726_s10 }
 0x328   :  { %v1794_v12 = vpop.permute.xlu0 %1793 }
 0x329   :  { %1817 = vst.msk [vmem:[#allocation4 + $0x6] sm:$0x1] %vm1592_vm14, %v1794_v12  ;;  %v1732_v43 = vpop.permute.xlu1 %1731 }
 0x32a   :  { %1754 = vst.msk [vmem:[#allocation4 + $0x14] sm:$0x1] %vm1592_vm14, %v1732_v43  ;;  %2082 = vrot.lane.b32.xlu0 %v4726_v11, %s3729_s14 }
 0x32b   :  { %1799 = vrot.lane.b32.xlu1 %v4599_v18, %s3727_s11 }
 0x32c   :  { %v2524_v29 = vpop.permute.xlu0 %2523 }
 0x32d   :  { %2547 = vst.msk [vmem:[#allocation4 + $0xf] sm:$0x1] %vm1592_vm14, %v2524_v29  ;;  %v1764_v0 = vpop.permute.xlu1 %1763  ;;  %v6185_v29 = vrot.slane %v4756_v2, %v4558_v59 }
 0x32e   :  { %1786 = vst.msk [vmem:[#allocation4 + $0x15] sm:$0x1] %vm1592_vm14, %v1764_v0  ;;  %2086 = vrot.lane.b32.xlu0 %v4730_v46, %s3729_s14 }
 0x32f   :  { %1803 = vrot.lane.b32.xlu1 %v4683_v45, %s3727_s11  ;;  %v6182_v45 = vrot.slane %v4742_v22, %v4533_v25  ;;  %v6184_v22 = vrot.slane %v4734_v23, %v4558_v59 }
 0x330   :  { %v2079_v62 = vpop.permute.xlu0 %2078 }
 0x331   :  { %2102 = vst.msk [vmem:[#allocation4 + $0x8] sm:$0x1] %vm1592_vm14, %v2079_v62  ;;  %v1796_v48 = vpop.permute.xlu1 %1795 }
 0x332   :  { %1818 = vst.msk [vmem:[#allocation4 + $0x16] sm:$0x1] %vm1592_vm14, %v1796_v48  ;;  %2114 = vrot.lane.b32.xlu0 %v4726_v11, %s3730_s15  ;;  %v6186_v48 = vrot.slane %v4749_v1, %v4558_v59 }
 0x333   :  { %2529 = vrot.lane.b32.xlu1 %v4739_v14, %s3728_s13  ;;  %v6183_v14 = vrot.slane %v4745_v47, %v4558_v59 }
 0x334   :  { %v2111_v18 = vpop.permute.xlu0 %2110 }
 0x335   :  { %2134 = vst.msk [vmem:[#allocation4 + $0x9] sm:$0x1] %vm1592_vm14, %v2111_v18  ;;  %v2526_v56 = vpop.permute.xlu1 %2525 }
 0x336   :  { %2548 = vst.msk [vmem:[#allocation4 + $0x1f] sm:$0x1] %vm1592_vm14, %v2526_v56  ;;  %2118 = vrot.lane.b32.xlu0 %v4730_v46, %s3730_s15 }
 0x337   :  { %2533 = vrot.lane.b32.xlu1 %v6182_v45, %s3728_s13 }
 0x338   :  { %v2143_v19 = vpop.permute.xlu0 %2142 }
 0x339   :  { %2166 = vst.msk [vmem:[#allocation4 + $0xa] sm:$0x1] %vm1592_vm14, %v2143_v19  ;;  %v5303_v55 = vpop.permute.xlu1 %1942 }
 0x33a   :  { %2146 = vrot.lane.b32.xlu0 %v4726_v11, %s3731_s16 }
 0x33b   :  { %1946 = vrot.lane.b32.xlu1 %v6183_v14, %s3732_s17 }
 0x33c   :  { %v2175_v50 = vpop.permute.xlu0 %2174 }
 0x33d   :  { %2198 = vst.msk [vmem:[#allocation4 + $0xb] sm:$0x1] %vm1592_vm14, %v2175_v50  ;;  %v5312_v9 = vpop.permute.xlu1 %1958 }
 0x33e   :  { %2150 = vrot.lane.b32.xlu0 %v4730_v46, %s3731_s16 }
 0x33f   :  { %1950 = vrot.lane.b32.xlu1 %v6184_v22, %s3732_s17 }
 0x340   :  { %v2207_v12 = vpop.permute.xlu0 %2206 }
 0x341   :  { %2230 = vst.msk [vmem:[#allocation4 + $0xc] sm:$0x1] %vm1592_vm14, %v2207_v12  ;;  %v2081_v43 = vpop.permute.xlu1 %2080 }
 0x342   :  { %2103 = vst.msk [vmem:[#allocation4 + $0x18] sm:$0x1] %vm1592_vm14, %v2081_v43  ;;  %2178 = vrot.lane.b32.xlu0 %v4726_v11, %s3733_s18 }
 0x343   :  { %1962 = vrot.lane.b32.xlu1 %v6185_v29, %s3732_s17 }
 0x344   :  { %v2239_v0 = vpop.permute.xlu0 %2238 }
 0x345   :  { %2262 = vst.msk [vmem:[#allocation4 + $0xd] sm:$0x1] %vm1592_vm14, %v2239_v0  ;;  %v2113_v62 = vpop.permute.xlu1 %2112 }
 0x346   :  { %2135 = vst.msk [vmem:[#allocation4 + $0x19] sm:$0x1] %vm1592_vm14, %v2113_v62  ;;  %2182 = vrot.lane.b32.xlu0 %v4730_v46, %s3733_s18  ;;  %v6188_v62 = vrot.slane %v4676_v42, %v4533_v25 }
 0x347   :  { %1966 = vrot.lane.b32.xlu1 %v6186_v48, %s3732_s17 }
 0x348   :  { %v2655_v18 = vpop.permute.xlu0 %2654 }
 0x349   :  { %2678 = vst.msk [vmem:[#allocation4 + $0x81] sm:$0x1] %vm1592_vm14, %v2655_v18  ;;  %v2145_v56 = vpop.permute.xlu1 %2144 }
 0x34a   :  { %2167 = vst.msk [vmem:[#allocation4 + $0x1a] sm:$0x1] %vm1592_vm14, %v2145_v56  ;;  %2210 = vrot.lane.b32.xlu0 %v4726_v11, %s3734_s19 }
 0x34b   :  { %2084 = vrot.lane.b32.xlu1 %v4775_v44, %s3729_s14 }
 0x34c   :  { %v2687_v45 = vpop.permute.xlu0 %2686 }
 0x34d   :  { %2710 = vst.msk [vmem:[#allocation4 + $0x82] sm:$0x1] %vm1592_vm14, %v2687_v45  ;;  %v2177_v19 = vpop.permute.xlu1 %2176 }
 0x34e   :  { %2199 = vst.msk [vmem:[#allocation4 + $0x1b] sm:$0x1] %vm1592_vm14, %v2177_v19  ;;  %2214 = vrot.lane.b32.xlu0 %v4730_v46, %s3734_s19 }
 0x34f   :  { %2088 = vrot.lane.b32.xlu1 %v4799_v33, %s3729_s14 }
 0x350   :  { %v2719_v14 = vpop.permute.xlu0 %2718 }
 0x351   :  { %2742 = vst.msk [vmem:[#allocation4 + $0x83] sm:$0x1] %vm1592_vm14, %v2719_v14  ;;  %v2209_v50 = vpop.permute.xlu1 %2208 }
 0x352   :  { %2231 = vst.msk [vmem:[#allocation4 + $0x1c] sm:$0x1] %vm1592_vm14, %v2209_v50  ;;  %2242 = vrot.lane.b32.xlu0 %v4726_v11, %s3735_s20  ;;  %v6187_v11 = vrot.slane %v4672_v36, %v4533_v25 }
 0x353   :  { %2116 = vrot.lane.b32.xlu1 %v4775_v44, %s3730_s15 }
 0x354   :  { %v2751_v22 = vpop.permute.xlu0 %2750 }
 0x355   :  { %2774 = vst.msk [vmem:[#allocation4 + $0x84] sm:$0x1] %vm1592_vm14, %v2751_v22  ;;  %v2241_v12 = vpop.permute.xlu1 %2240 }
 0x356   :  { %2263 = vst.msk [vmem:[#allocation4 + $0x1d] sm:$0x1] %vm1592_vm14, %v2241_v12  ;;  %2246 = vrot.lane.b32.xlu0 %v4730_v46, %s3735_s20 }
 0x357   :  { %2120 = vrot.lane.b32.xlu1 %v4799_v33, %s3730_s15 }
 0x358   :  { %v2783_v43 = vpop.permute.xlu0 %2782 }
 0x359   :  { %2806 = vst.msk [vmem:[#allocation4 + $0x85] sm:$0x1] %vm1592_vm14, %v2783_v43  ;;  %v5361_v29 = vpop.permute.xlu1 %2387 }
 0x35a   :  { %2385 = vrot.lane.b32.xlu0 %v6187_v11, %s3736_s22 }
 0x35b   :  { %2148 = vrot.lane.b32.xlu1 %v4775_v44, %s3731_s16 }
 0x35c   :  { %v1638_v0 = vpop.permute.xlu0 %1637 }
 0x35d   :  { %1659 = vst.msk [vmem:[#allocation4 + $0x21] sm:$0x1] %vm1592_vm14, %v1638_v0  ;;  %v5370_v46 = vpop.permute.xlu1 %2403 }
 0x35e   :  { %2401 = vrot.lane.b32.xlu0 %v6188_v62, %s3736_s22 }
 0x35f   :  { %2152 = vrot.lane.b32.xlu1 %v4799_v33, %s3731_s16 }
 0x360   :  { %v1642_v48 = vpop.permute.xlu0 %1641 }
 0x361   :  { %v2657_v18 = vpop.permute.xlu1 %2656  ;;  %1661 = vst.msk [vmem:[#allocation4 + $0x41] sm:$0x1] %vm1592_vm14, %v1642_v48 }
 0x362   :  { %2679 = vst.msk [vmem:[#allocation4 + $0x91] sm:$0x1] %vm1592_vm14, %v2657_v18  ;;  %2658 = vrot.lane.b32.xlu0 %v4781_v58, %s3719_s5 }
 0x363   :  { %2180 = vrot.lane.b32.xlu1 %v4775_v44, %s3733_s18 }
 0x364   :  { %v1670_v36 = vpop.permute.xlu0 %1669 }
 0x365   :  { %v2689_v56 = vpop.permute.xlu1 %2688  ;;  %1691 = vst.msk [vmem:[#allocation4 + $0x22] sm:$0x1] %vm1592_vm14, %v1670_v36 }
 0x366   :  { %2711 = vst.msk [vmem:[#allocation4 + $0x92] sm:$0x1] %vm1592_vm14, %v2689_v56  ;;  %2662 = vrot.lane.b32.xlu0 %v4785_v10, %s3719_s5  ;;  %v6191_v56 = vrot.slane %v4809_v13, %v4558_v59 }
 0x367   :  { %2184 = vrot.lane.b32.xlu1 %v4799_v33, %s3733_s18 }
 0x368   :  { %v1674_v42 = vpop.permute.xlu0 %1673 }
 0x369   :  { %v2721_v45 = vpop.permute.xlu1 %2720  ;;  %1693 = vst.msk [vmem:[#allocation4 + $0x42] sm:$0x1] %vm1592_vm14, %v1674_v42 }
 0x36a   :  { %2743 = vst.msk [vmem:[#allocation4 + $0x93] sm:$0x1] %vm1592_vm14, %v2721_v45  ;;  %2690 = vrot.lane.b32.xlu0 %v4781_v58, %s3720_s6 }
 0x36b   :  { %2212 = vrot.lane.b32.xlu1 %v4775_v44, %s3734_s19 }
 0x36c   :  { %v1702_v19 = vpop.permute.xlu0 %1701 }
 0x36d   :  { %v2753_v14 = vpop.permute.xlu1 %2752  ;;  %1723 = vst.msk [vmem:[#allocation4 + $0x23] sm:$0x1] %vm1592_vm14, %v1702_v19  ;;  %v6192_v19 = vrot.slane %v4813_v17, %v4558_v59 }
 0x36e   :  { %2775 = vst.msk [vmem:[#allocation4 + $0x94] sm:$0x1] %vm1592_vm14, %v2753_v14  ;;  %2694 = vrot.lane.b32.xlu0 %v4785_v10, %s3720_s6 }
 0x36f   :  { %2216 = vrot.lane.b32.xlu1 %v4799_v33, %s3734_s19 }
 0x370   :  { %v1706_v50 = vpop.permute.xlu0 %1705 }
 0x371   :  { %v2785_v22 = vpop.permute.xlu1 %2784  ;;  %1725 = vst.msk [vmem:[#allocation4 + $0x43] sm:$0x1] %vm1592_vm14, %v1706_v50 }
 0x372   :  { %2807 = vst.msk [vmem:[#allocation4 + $0x95] sm:$0x1] %vm1592_vm14, %v2785_v22  ;;  %2722 = vrot.lane.b32.xlu0 %v4781_v58, %s3724_s2 }
 0x373   :  { %2244 = vrot.lane.b32.xlu1 %v4775_v44, %s3735_s20  ;;  %v6189_v44 = vrot.slane %v4791_v8, %v4558_v59 }
 0x374   :  { %v1734_v12 = vpop.permute.xlu0 %1733 }
 0x375   :  { %v1640_v43 = vpop.permute.xlu1 %1639  ;;  %1755 = vst.msk [vmem:[#allocation4 + $0x24] sm:$0x1] %vm1592_vm14, %v1734_v12 }
 0x376   :  { %1660 = vst.msk [vmem:[#allocation4 + $0x31] sm:$0x1] %vm1592_vm14, %v1640_v43  ;;  %2726 = vrot.lane.b32.xlu0 %v4785_v10, %s3724_s2 }
 0x377   :  { %2248 = vrot.lane.b32.xlu1 %v4799_v33, %s3735_s20  ;;  %v6190_v33 = vrot.slane %v4795_v51, %v4558_v59 }
 0x378   :  { %v1738_v11 = vpop.permute.xlu0 %1737 }
 0x379   :  { %1757 = vst.msk [vmem:[#allocation4 + $0x44] sm:$0x1] %vm1592_vm14, %v1738_v11  ;;  %v1644_v0 = vpop.permute.xlu1 %1643 }
 0x37a   :  { %1662 = vst.msk [vmem:[#allocation4 + $0x51] sm:$0x1] %vm1592_vm14, %v1644_v0  ;;  %2754 = vrot.lane.b32.xlu0 %v4781_v58, %s3725_s9 }
 0x37b   :  { %2391 = vrot.lane.b32.xlu1 %v6189_v44, %s3736_s22 }
 0x37c   :  { %v1766_v62 = vpop.permute.xlu0 %1765 }
 0x37d   :  { %1787 = vst.msk [vmem:[#allocation4 + $0x25] sm:$0x1] %vm1592_vm14, %v1766_v62  ;;  %v1672_v48 = vpop.permute.xlu1 %1671 }
 0x37e   :  { %1692 = vst.msk [vmem:[#allocation4 + $0x32] sm:$0x1] %vm1592_vm14, %v1672_v48  ;;  %2758 = vrot.lane.b32.xlu0 %v4785_v10, %s3725_s9 }
 0x37f   :  { %2395 = vrot.lane.b32.xlu1 %v6190_v33, %s3736_s22 }
 0x380   :  { %v1770_v18 = vpop.permute.xlu0 %1769 }
 0x381   :  { %1789 = vst.msk [vmem:[#allocation4 + $0x45] sm:$0x1] %vm1592_vm14, %v1770_v18  ;;  %v1676_v36 = vpop.permute.xlu1 %1675 }
 0x382   :  { %1694 = vst.msk [vmem:[#allocation4 + $0x52] sm:$0x1] %vm1592_vm14, %v1676_v36  ;;  %1645 = vrot.lane.b32.xlu0 %v4803_v31, %s3719_s5 }
 0x383   :  { %2407 = vrot.lane.b32.xlu1 %v6191_v56, %s3736_s22  ;;  %v6194_v56 = vrot.slane %v4734_v23, %v4533_v25 }
 0x384   :  { %v1798_v42 = vpop.permute.xlu0 %1797 }
 0x385   :  { %1819 = vst.msk [vmem:[#allocation4 + $0x26] sm:$0x1] %vm1592_vm14, %v1798_v42  ;;  %v1704_v45 = vpop.permute.xlu1 %1703 }
 0x386   :  { %1724 = vst.msk [vmem:[#allocation4 + $0x33] sm:$0x1] %vm1592_vm14, %v1704_v45  ;;  %1677 = vrot.lane.b32.xlu0 %v4803_v31, %s3720_s6  ;;  %v6195_v45 = vrot.slane %v4756_v2, %v4533_v25 }
 0x387   :  { %2411 = vrot.lane.b32.xlu1 %v6192_v19, %s3736_s22 }
 0x388   :  { %v1802_v14 = vpop.permute.xlu0 %1801 }
 0x389   :  { %1821 = vst.msk [vmem:[#allocation4 + $0x46] sm:$0x1] %vm1592_vm14, %v1802_v14  ;;  %v1708_v50 = vpop.permute.xlu1 %1707  ;;  %v6196_v14 = vrot.slane %v4749_v1, %v4533_v25 }
 0x38a   :  { %1726 = vst.msk [vmem:[#allocation4 + $0x53] sm:$0x1] %vm1592_vm14, %v1708_v50  ;;  %1709 = vrot.lane.b32.xlu0 %v4803_v31, %s3724_s2 }
 0x38b   :  { %2660 = vrot.lane.b32.xlu1 %v4823_v57, %s3719_s5 }
 0x38c   :  { %v2528_v22 = vpop.permute.xlu0 %2527 }
 0x38d   :  { %2549 = vst.msk [vmem:[#allocation4 + $0x2f] sm:$0x1] %vm1592_vm14, %v2528_v22  ;;  %v1736_v12 = vpop.permute.xlu1 %1735 }
 0x38e   :  { %1756 = vst.msk [vmem:[#allocation4 + $0x34] sm:$0x1] %vm1592_vm14, %v1736_v12  ;;  %1741 = vrot.lane.b32.xlu0 %v4803_v31, %s3725_s9 }
 0x38f   :  { %2664 = vrot.lane.b32.xlu1 %v4827_v26, %s3719_s5 }
 0x390   :  { %v2532_v43 = vpop.permute.xlu0 %2531 }
 0x391   :  { %2551 = vst.msk [vmem:[#allocation4 + $0x4f] sm:$0x1] %vm1592_vm14, %v2532_v43  ;;  %v1740_v11 = vpop.permute.xlu1 %1739 }
 0x392   :  { %1758 = vst.msk [vmem:[#allocation4 + $0x54] sm:$0x1] %vm1592_vm14, %v1740_v11  ;;  %1773 = vrot.lane.b32.xlu0 %v4803_v31, %s3726_s10 }
 0x393   :  { %2692 = vrot.lane.b32.xlu1 %v4823_v57, %s3720_s6 }
 0x394   :  { %v1941_v0 = vpop.permute.xlu0 %1940 }
 0x395   :  { %v1973_v44 = vsel %vm1972_vm15, %v1941_v0, %v5303_v55  ;;  %v1768_v62 = vpop.permute.xlu1 %1767 }
 0x396   :  { %1989 = vst.msk [vmem:[#allocation4 + $0x7] sm:$0x1] %vm1592_vm14, %v1973_v44  ;;  %1788 = vst.msk [vmem:[#allocation4 + $0x35] sm:$0x1] %vm1592_vm14, %v1768_v62  ;;  %1805 = vrot.lane.b32.xlu0 %v4803_v31, %s3727_s11 }
 0x397   :  { %2696 = vrot.lane.b32.xlu1 %v4827_v26, %s3720_s6 }
 0x398   :  { %v1957_v48 = vpop.permute.xlu0 %1956 }
 0x399   :  { %v1977_v33 = vsel %vm1972_vm15, %v1957_v48, %v5312_v9  ;;  %v1772_v18 = vpop.permute.xlu1 %1771  ;;  %v6193_v9 = vrot.slane %v4745_v47, %v4533_v25 }
 0x39a   :  { %1993 = vst.msk [vmem:[#allocation4 + $0x47] sm:$0x1] %vm1592_vm14, %v1977_v33  ;;  %1790 = vst.msk [vmem:[#allocation4 + $0x55] sm:$0x1] %vm1592_vm14, %v1772_v18  ;;  %2535 = vrot.lane.b32.xlu0 %v4848_v30, %s3728_s13 }
 0x39b   :  { %2724 = vrot.lane.b32.xlu1 %v4823_v57, %s3724_s2 }
 0x39c   :  { %v2083_v55 = vpop.permute.xlu0 %2082 }
 0x39d   :  { %2104 = vst.msk [vmem:[#allocation4 + $0x28] sm:$0x1] %vm1592_vm14, %v2083_v55  ;;  %v1800_v31 = vpop.permute.xlu1 %1799 }
 0x39e   :  { %1820 = vst.msk [vmem:[#allocation4 + $0x36] sm:$0x1] %vm1592_vm14, %v1800_v31  ;;  %1944 = vrot.lane.b32.xlu0 %v6193_v9, %s3732_s17  ;;  %v6198_v31 = vrot.slane %v4865_v5, %v4558_v59  ;;  %v6199_v9 = vrot.slane %v4795_v51, %v4533_v25  ;;  %v6201_v51 = vrot.slane %v4809_v13, %v4533_v25 }
 0x39f   :  { %2728 = vrot.lane.b32.xlu1 %v4827_v26, %s3724_s2 }
 0x3a0   :  { %v2087_v36 = vpop.permute.xlu0 %2086 }
 0x3a1   :  { %2106 = vst.msk [vmem:[#allocation4 + $0x48] sm:$0x1] %vm1592_vm14, %v2087_v36  ;;  %v1804_v30 = vpop.permute.xlu1 %1803 }
 0x3a2   :  { %1822 = vst.msk [vmem:[#allocation4 + $0x56] sm:$0x1] %vm1592_vm14, %v1804_v30  ;;  %1948 = vrot.lane.b32.xlu0 %v6194_v56, %s3732_s17 }
 0x3a3   :  { %2756 = vrot.lane.b32.xlu1 %v4823_v57, %s3725_s9 }
 0x3a4   :  { %v2115_v42 = vpop.permute.xlu0 %2114 }
 0x3a5   :  { %2136 = vst.msk [vmem:[#allocation4 + $0x29] sm:$0x1] %vm1592_vm14, %v2115_v42  ;;  %v2530_v47 = vpop.permute.xlu1 %2529 }
 0x3a6   :  { %2550 = vst.msk [vmem:[#allocation4 + $0x3f] sm:$0x1] %vm1592_vm14, %v2530_v47  ;;  %1960 = vrot.lane.b32.xlu0 %v6195_v45, %s3732_s17 }
 0x3a7   :  { %2760 = vrot.lane.b32.xlu1 %v4827_v26, %s3725_s9 }
 0x3a8   :  { %v2119_v19 = vpop.permute.xlu0 %2118 }
 0x3a9   :  { %2138 = vst.msk [vmem:[#allocation4 + $0x49] sm:$0x1] %vm1592_vm14, %v2119_v19  ;;  %v2534_v23 = vpop.permute.xlu1 %2533 }
 0x3aa   :  { %2552 = vst.msk [vmem:[#allocation4 + $0x5f] sm:$0x1] %vm1592_vm14, %v2534_v23  ;;  %1964 = vrot.lane.b32.xlu0 %v6196_v14, %s3732_s17 }
 0x3ab   :  { %1647 = vrot.lane.b32.xlu1 %v4860_v16, %s3719_s5 }
 0x3ac   :  { %v2147_v50 = vpop.permute.xlu0 %2146 }
 0x3ad   :  { %2168 = vst.msk [vmem:[#allocation4 + $0x2a] sm:$0x1] %vm1592_vm14, %v2147_v50  ;;  %v5513_v2 = vpop.permute.xlu1 %1946 }
 0x3ae   :  { %2090 = vrot.lane.b32.xlu0 %v4871_v20, %s3729_s14 }
 0x3af   :  { %1679 = vrot.lane.b32.xlu1 %v4860_v16, %s3720_s6 }
 0x3b0   :  { %v2151_v22 = vpop.permute.xlu0 %2150 }
 0x3b1   :  { %2170 = vst.msk [vmem:[#allocation4 + $0x4a] sm:$0x1] %vm1592_vm14, %v2151_v22  ;;  %v5520_v12 = vpop.permute.xlu1 %1950 }
 0x3b2   :  { %2122 = vrot.lane.b32.xlu0 %v4871_v20, %s3730_s15 }
 0x3b3   :  { %1711 = vrot.lane.b32.xlu1 %v4860_v16, %s3724_s2 }
 0x3b4   :  { %v2179_v1 = vpop.permute.xlu0 %2178 }
 0x3b5   :  { %2200 = vst.msk [vmem:[#allocation4 + $0x2b] sm:$0x1] %vm1592_vm14, %v2179_v1  ;;  %v5527_v43 = vpop.permute.xlu1 %1962 }
 0x3b6   :  { %2154 = vrot.lane.b32.xlu0 %v4871_v20, %s3731_s16 }
 0x3b7   :  { %1743 = vrot.lane.b32.xlu1 %v4860_v16, %s3725_s9 }
 0x3b8   :  { %v2183_v11 = vpop.permute.xlu0 %2182 }
 0x3b9   :  { %2202 = vst.msk [vmem:[#allocation4 + $0x4b] sm:$0x1] %vm1592_vm14, %v2183_v11  ;;  %v5534_v0 = vpop.permute.xlu1 %1966 }
 0x3ba   :  { %2186 = vrot.lane.b32.xlu0 %v4871_v20, %s3733_s18 }
 0x3bb   :  { %1775 = vrot.lane.b32.xlu1 %v4860_v16, %s3726_s10 }
 0x3bc   :  { %v2211_v44 = vpop.permute.xlu0 %2210 }
 0x3bd   :  { %2232 = vst.msk [vmem:[#allocation4 + $0x2c] sm:$0x1] %vm1592_vm14, %v2211_v44  ;;  %v2085_v62 = vpop.permute.xlu1 %2084  ;;  %v6203_v44 = vrot.slane %v4865_v5, %v4533_v25 }
 0x3be   :  { %2105 = vst.msk [vmem:[#allocation4 + $0x38] sm:$0x1] %vm1592_vm14, %v2085_v62  ;;  %2218 = vrot.lane.b32.xlu0 %v4871_v20, %s3734_s19  ;;  %v6204_v62 = vld [vmem:[#allocation7_spill] sm:$0xff] }
 0x3bf   :  { %1807 = vrot.lane.b32.xlu1 %v4860_v16, %s3727_s11  ;;  %v6197_v16 = vrot.slane %v4791_v8, %v4533_v25  ;;  %v6200_v8 = vrot.slane %v4878_v3, %v4558_v59 }
 0x3c0   :  { %v2215_v48 = vpop.permute.xlu0 %2214 }
 0x3c1   :  { %2234 = vst.msk [vmem:[#allocation4 + $0x4c] sm:$0x1] %vm1592_vm14, %v2215_v48  ;;  %v2089_v33 = vpop.permute.xlu1 %2088  ;;  %v6205_v48 = vrot.slane %v6204_v62, %v4558_v59 }
 0x3c2   :  { %2107 = vst.msk [vmem:[#allocation4 + $0x58] sm:$0x1] %vm1592_vm14, %v2089_v33  ;;  %2250 = vrot.lane.b32.xlu0 %v4871_v20, %s3735_s20 }
 0x3c3   :  { %2537 = vrot.lane.b32.xlu1 %v4874_v63, %s3728_s13 }
 0x3c4   :  { %v2243_v18 = vpop.permute.xlu0 %2242 }
 0x3c5   :  { %2264 = vst.msk [vmem:[#allocation4 + $0x2d] sm:$0x1] %vm1592_vm14, %v2243_v18  ;;  %v2117_v55 = vpop.permute.xlu1 %2116  ;;  %v6206_v18 = vrot.slane %v4878_v3, %v4533_v25 }
 0x3c6   :  { %2137 = vst.msk [vmem:[#allocation4 + $0x39] sm:$0x1] %vm1592_vm14, %v2117_v55  ;;  %2389 = vrot.lane.b32.xlu0 %v6197_v16, %s3736_s22  ;;  %v6207_v55 = vld [vmem:[#allocation8_spill] sm:$0xff] }
 0x3c7   :  { %1954 = vrot.lane.b32.xlu1 %v6198_v31, %s3732_s17  ;;  %v6208_v5 = vrot.slane %v6207_v55, %v4558_v59 }
 0x3c8   :  { %v2247_v20 = vpop.permute.xlu0 %2246 }
 0x3c9   :  { %2266 = vst.msk [vmem:[#allocation4 + $0x4d] sm:$0x1] %vm1592_vm14, %v2247_v20  ;;  %v2121_v63 = vpop.permute.xlu1 %2120  ;;  %v6209_v20 = vrot.slane %v6204_v62, %v4533_v25 }
 0x3ca   :  { %2139 = vst.msk [vmem:[#allocation4 + $0x59] sm:$0x1] %vm1592_vm14, %v2121_v63  ;;  %2393 = vrot.lane.b32.xlu0 %v6199_v9, %s3736_s22  ;;  %v6210_v63 = vld [vmem:[#allocation9_spill] sm:$0xff] }
 0x3cb   :  { %1970 = vrot.lane.b32.xlu1 %v6200_v8, %s3732_s17  ;;  %v6211_v8 = vrot.slane %v6207_v55, %v4533_v25 }
 0x3cc   :  { %v2386_v36 = vpop.permute.xlu0 %2385 }
 0x3cd   :  { %v2418_v30 = vsel %vm2417_vm0, %v2386_v36, %v5361_v29  ;;  %v2149_v56 = vpop.permute.xlu1 %2148  ;;  %v6202_v29 = vrot.slane %v4813_v17, %v4533_v25 }
 0x3ce   :  { %2434 = vst.msk [vmem:[#allocation4 + $0xe] sm:$0x1] %vm1592_vm14, %v2418_v30  ;;  %2169 = vst.msk [vmem:[#allocation4 + $0x3a] sm:$0x1] %vm1592_vm14, %v2149_v56  ;;  %2405 = vrot.lane.b32.xlu0 %v6201_v51, %s3736_s22 }
 0x3cf   :  { %2092 = vrot.lane.b32.xlu1 %v4900_v32, %s3729_s14 }
 0x3d0   :  { %v2402_v42 = vpop.permute.xlu0 %2401 }
 0x3d1   :  { %v2422_v47 = vsel %vm2417_vm0, %v2402_v42, %v5370_v46  ;;  %v2153_v45 = vpop.permute.xlu1 %2152 }
 0x3d2   :  { %2438 = vst.msk [vmem:[#allocation4 + $0x4e] sm:$0x1] %vm1592_vm14, %v2422_v47  ;;  %2171 = vst.msk [vmem:[#allocation4 + $0x5a] sm:$0x1] %vm1592_vm14, %v2153_v45  ;;  %2409 = vrot.lane.b32.xlu0 %v6202_v29, %s3736_s22 }
 0x3d3   :  { %2124 = vrot.lane.b32.xlu1 %v4900_v32, %s3730_s15 }
 0x3d4   :  { %v2659_v13 = vpop.permute.xlu0 %2658 }
 0x3d5   :  { %2680 = vst.msk [vmem:[#allocation4 + $0xa1] sm:$0x1] %vm1592_vm14, %v2659_v13  ;;  %v2181_v19 = vpop.permute.xlu1 %2180 }
 0x3d6   :  { %2201 = vst.msk [vmem:[#allocation4 + $0x3b] sm:$0x1] %vm1592_vm14, %v2181_v19  ;;  %2666 = vrot.lane.b32.xlu0 %v4892_v7, %s3719_s5 }
 0x3d7   :  { %2156 = vrot.lane.b32.xlu1 %v4900_v32, %s3731_s16 }
 0x3d8   :  { %v2663_v46 = vpop.permute.xlu0 %2662 }
 0x3d9   :  { %2682 = vst.msk [vmem:[#allocation4 + $0xc1] sm:$0x1] %vm1592_vm14, %v2663_v46  ;;  %v2185_v17 = vpop.permute.xlu1 %2184 }
 0x3da   :  { %2203 = vst.msk [vmem:[#allocation4 + $0x5b] sm:$0x1] %vm1592_vm14, %v2185_v17  ;;  %2698 = vrot.lane.b32.xlu0 %v4892_v7, %s3720_s6 }
 0x3db   :  { %2188 = vrot.lane.b32.xlu1 %v4900_v32, %s3733_s18 }
 0x3dc   :  { %v2691_v23 = vpop.permute.xlu0 %2690 }
 0x3dd   :  { %2712 = vst.msk [vmem:[#allocation4 + $0xa2] sm:$0x1] %vm1592_vm14, %v2691_v23  ;;  %v2213_v14 = vpop.permute.xlu1 %2212 }
 0x3de   :  { %2233 = vst.msk [vmem:[#allocation4 + $0x3c] sm:$0x1] %vm1592_vm14, %v2213_v14  ;;  %2730 = vrot.lane.b32.xlu0 %v4892_v7, %s3724_s2 }
 0x3df   :  { %2220 = vrot.lane.b32.xlu1 %v4900_v32, %s3734_s19 }
 0x3e0   :  { %v2695_v50 = vpop.permute.xlu0 %2694 }
 0x3e1   :  { %2714 = vst.msk [vmem:[#allocation4 + $0xc2] sm:$0x1] %vm1592_vm14, %v2695_v50  ;;  %v2217_v22 = vpop.permute.xlu1 %2216 }
 0x3e2   :  { %2235 = vst.msk [vmem:[#allocation4 + $0x5c] sm:$0x1] %vm1592_vm14, %v2217_v22  ;;  %2762 = vrot.lane.b32.xlu0 %v4892_v7, %s3725_s9 }
 0x3e3   :  { %2252 = vrot.lane.b32.xlu1 %v4900_v32, %s3735_s20 }
 0x3e4   :  { %v2723_v1 = vpop.permute.xlu0 %2722 }
 0x3e5   :  { %2744 = vst.msk [vmem:[#allocation4 + $0xa3] sm:$0x1] %vm1592_vm14, %v2723_v1  ;;  %v2245_v11 = vpop.permute.xlu1 %2244 }
 0x3e6   :  { %2265 = vst.msk [vmem:[#allocation4 + $0x3d] sm:$0x1] %vm1592_vm14, %v2245_v11  ;;  %1952 = vrot.lane.b32.xlu0 %v6203_v44, %s3732_s17 }
 0x3e7   :  { %2399 = vrot.lane.b32.xlu1 %v6205_v48, %s3736_s22 }
 0x3e8   :  { %v2727_v33 = vpop.permute.xlu0 %2726 }
 0x3e9   :  { %2746 = vst.msk [vmem:[#allocation4 + $0xc3] sm:$0x1] %vm1592_vm14, %v2727_v33  ;;  %v2249_v32 = vpop.permute.xlu1 %2248  ;;  %v6217_v33 = vrot.slane %v5025_v49, %v4533_v25 }
 0x3ea   :  { %2267 = vst.msk [vmem:[#allocation4 + $0x5d] sm:$0x1] %vm1592_vm14, %v2249_v32  ;;  %1968 = vrot.lane.b32.xlu0 %v6206_v18, %s3732_s17  ;;  %v6218_v32 = vrot.slane %v4998_v15, %v4558_v59 }
 0x3eb   :  { %2415 = vrot.lane.b32.xlu1 %v6208_v5, %s3736_s22 }
 0x3ec   :  { %v2755_v16 = vpop.permute.xlu0 %2754 }
 0x3ed   :  { %2776 = vst.msk [vmem:[#allocation4 + $0xa4] sm:$0x1] %vm1592_vm14, %v2755_v16  ;;  %v5637_v31 = vpop.permute.xlu1 %2391  ;;  %v6221_v16 = vrot.slane %v5002_v39, %v4558_v59 }
 0x3ee   :  { %2397 = vrot.lane.b32.xlu0 %v6209_v20, %s3736_s22 }
 0x3ef   :  { %2668 = vrot.lane.b32.xlu1 %v6210_v63, %s3719_s5 }
 0x3f0   :  { %v2759_v3 = vpop.permute.xlu0 %2758 }
 0x3f1   :  { %2778 = vst.msk [vmem:[#allocation4 + $0xc4] sm:$0x1] %vm1592_vm14, %v2759_v3  ;;  %v5646_v9 = vpop.permute.xlu1 %2395  ;;  %v6223_v3 = vrot.slane %v5025_v49, %v4558_v59 }
 0x3f2   :  { %2413 = vrot.lane.b32.xlu0 %v6211_v8, %s3736_s22 }
 0x3f3   :  { %2700 = vrot.lane.b32.xlu1 %v6210_v63, %s3720_s6 }
 0x3f4   :  { %v1646_v36 = vpop.permute.xlu0 %1645 }
 0x3f5   :  { %1663 = vst.msk [vmem:[#allocation4 + $0x61] sm:$0x1] %vm1592_vm14, %v1646_v36  ;;  %v5655_v30 = vpop.permute.xlu1 %2407  ;;  %v6224_v36 = vld [vmem:[#allocation17_spill] sm:$0xff] }
 0x3f6   :  { %2786 = vrot.lane.b32.xlu0 %v4781_v58, %s3726_s10 }
 0x3f7   :  { %2732 = vrot.lane.b32.xlu1 %v6210_v63, %s3724_s2 }
 0x3f8   :  { %v1678_v56 = vpop.permute.xlu0 %1677 }
 0x3f9   :  { %1695 = vst.msk [vmem:[#allocation4 + $0x62] sm:$0x1] %vm1592_vm14, %v1678_v56  ;;  %v5662_v51 = vpop.permute.xlu1 %2411  ;;  %v6225_v56 = vrot.slane %v6224_v36, %v4533_v25 }
 0x3fa   :  { %2790 = vrot.lane.b32.xlu0 %v4785_v10, %s3726_s10 }
 0x3fb   :  { %2764 = vrot.lane.b32.xlu1 %v6210_v63, %s3725_s9 }
 0x3fc   :  { %v1710_v42 = vpop.permute.xlu0 %1709 }
 0x3fd   :  { %1727 = vst.msk [vmem:[#allocation4 + $0x63] sm:$0x1] %vm1592_vm14, %v1710_v42  ;;  %v2661_v47 = vpop.permute.xlu1 %2660 }
 0x3fe   :  { %2681 = vst.msk [vmem:[#allocation4 + $0xb1] sm:$0x1] %vm1592_vm14, %v2661_v47  ;;  %2794 = vrot.lane.b32.xlu0 %v4892_v7, %s3726_s10 }
 0x3ff   :  { %2788 = vrot.lane.b32.xlu1 %v4823_v57, %s3726_s10 }
 0x400   :  { %v1742_v45 = vpop.permute.xlu0 %1741 }
 0x401   :  { %1759 = vst.msk [vmem:[#allocation4 + $0x64] sm:$0x1] %vm1592_vm14, %v1742_v45  ;;  %v2665_v29 = vpop.permute.xlu1 %2664  ;;  %v6227_v45 = vrot.slane %v5037_v38, %v4533_v25 }
 0x402   :  { %2683 = vst.msk [vmem:[#allocation4 + $0xd1] sm:$0x1] %vm1592_vm14, %v2665_v29  ;;  %2814 = vrot.lane.b32.xlu0 %v4647_v35, %s3727_s11  ;;  %v6228_v29 = vrot.slane %v5011_v54, %v4558_v59 }
 0x403   :  { %2792 = vrot.lane.b32.xlu1 %v4827_v26, %s3726_s10 }
 0x404   :  { %v1774_v13 = vpop.permute.xlu0 %1773 }
 0x405   :  { %1791 = vst.msk [vmem:[#allocation4 + $0x65] sm:$0x1] %vm1592_vm14, %v1774_v13  ;;  %v2693_v19 = vpop.permute.xlu1 %2692 }
 0x406   :  { %2713 = vst.msk [vmem:[#allocation4 + $0xb2] sm:$0x1] %vm1592_vm14, %v2693_v19  ;;  %2818 = vrot.lane.b32.xlu0 %v4781_v58, %s3727_s11 }
 0x407   :  { %2796 = vrot.lane.b32.xlu1 %v6210_v63, %s3726_s10 }
 0x408   :  { %v1806_v46 = vpop.permute.xlu0 %1805 }
 0x409   :  { %1823 = vst.msk [vmem:[#allocation4 + $0x66] sm:$0x1] %vm1592_vm14, %v1806_v46  ;;  %v2697_v17 = vpop.permute.xlu1 %2696  ;;  %v6229_v46 = vld [vmem:[#allocation10_spill] sm:$0xff] }
 0x40a   :  { %2715 = vst.msk [vmem:[#allocation4 + $0xd2] sm:$0x1] %vm1592_vm14, %v2697_v17  ;;  %2822 = vrot.lane.b32.xlu0 %v4785_v10, %s3727_s11  ;;  %v6230_v17 = vrot.slane %v6224_v36, %v4558_v59 }
 0x40b   :  { %2816 = vrot.lane.b32.xlu1 %v4679_v24, %s3727_s11  ;;  %v6212_v24 = vld [vmem:[#allocation12_spill] sm:$0xff] }
 0x40c   :  { %v2536_v35 = vpop.permute.xlu0 %2535  ;;  %v6213_v50 = vrot.slane %v6212_v24, %v4533_v25  ;;  %v6216_v44 = vrot.slane %v6212_v24, %v4558_v59 }
 0x40d   :  { %2553 = vst.msk [vmem:[#allocation4 + $0x6f] sm:$0x1] %vm1592_vm14, %v2536_v35  ;;  %v2725_v23 = vpop.permute.xlu1 %2724 }
 0x40e   :  { %2745 = vst.msk [vmem:[#allocation4 + $0xb3] sm:$0x1] %vm1592_vm14, %v2725_v23  ;;  %2826 = vrot.lane.b32.xlu0 %v4892_v7, %s3727_s11 }
 0x40f   :  { %2820 = vrot.lane.b32.xlu1 %v4823_v57, %s3727_s11 }
 0x410   :  { %v1945_v58 = vpop.permute.xlu0 %1944 }
 0x411   :  { %v1974_v14 = vsel %vm1972_vm15, %v1945_v58, %v5513_v2  ;;  %v2729_v10 = vpop.permute.xlu1 %2728  ;;  %v6214_v2 = vrot.slane %v4998_v15, %v4533_v25  ;;  %v6232_v58 = vrot.slane %v5037_v38, %v4558_v59  ;;  %v6235_v38 = vld [vmem:[#allocation18_spill] sm:$0xff] }
 0x412   :  { %1990 = vst.msk [vmem:[#allocation4 + $0x17] sm:$0x1] %vm1592_vm14, %v1974_v14  ;;  %2747 = vst.msk [vmem:[#allocation4 + $0xd3] sm:$0x1] %vm1592_vm14, %v2729_v10  ;;  %2961 = vrot.lane.b32.xlu0 %v6213_v50, %s3732_s17  ;;  %v6233_v50 = vld [vmem:[#allocation15_spill] sm:$0xff] }
 0x413   :  { %2824 = vrot.lane.b32.xlu1 %v4827_v26, %s3727_s11 }
 0x414   :  { %v1949_v7 = vpop.permute.xlu0 %1948 }
 0x415   :  { %v1975_v57 = vsel %vm1972_vm15, %v1949_v7, %v5520_v12  ;;  %v2757_v22 = vpop.permute.xlu1 %2756  ;;  %v6215_v12 = vrot.slane %v5002_v39, %v4533_v25  ;;  %v6234_v7 = vld [vmem:[#allocation16_spill] sm:$0xff] }
 0x416   :  { %1991 = vst.msk [vmem:[#allocation4 + $0x27] sm:$0x1] %vm1592_vm14, %v1975_v57  ;;  %2777 = vst.msk [vmem:[#allocation4 + $0xb4] sm:$0x1] %vm1592_vm14, %v2757_v22  ;;  %2965 = vrot.lane.b32.xlu0 %v6214_v2, %s3732_s17 }
 0x417   :  { %2828 = vrot.lane.b32.xlu1 %v6210_v63, %s3727_s11  ;;  %v6222_v63 = vrot.slane %v5011_v54, %v4533_v25  ;;  %v6231_v54 = vld [vmem:[#allocation14_spill] sm:$0xff] }
 0x418   :  { %v1961_v1 = vpop.permute.xlu0 %1960 }
 0x419   :  { %v1978_v26 = vsel %vm1972_vm15, %v1961_v1, %v5527_v43  ;;  %v2761_v11 = vpop.permute.xlu1 %2760 }
 0x41a   :  { %1994 = vst.msk [vmem:[#allocation4 + $0x57] sm:$0x1] %vm1592_vm14, %v1978_v26  ;;  %2779 = vst.msk [vmem:[#allocation4 + $0xd4] sm:$0x1] %vm1592_vm14, %v2761_v11  ;;  %2969 = vrot.lane.b32.xlu0 %v6215_v12, %s3732_s17 }
 0x41b   :  { %2963 = vrot.lane.b32.xlu1 %v6216_v44, %s3732_s17 }
 0x41c   :  { %v1965_v62 = vpop.permute.xlu0 %1964 }
 0x41d   :  { %v1979_v48 = vsel %vm1972_vm15, %v1965_v62, %v5534_v0  ;;  %v1648_v43 = vpop.permute.xlu1 %1647  ;;  %v6219_v0 = vld [vmem:[#allocation13_spill] sm:$0xff] }
 0x41e   :  { %1995 = vst.msk [vmem:[#allocation4 + $0x67] sm:$0x1] %vm1592_vm14, %v1979_v48  ;;  %1664 = vst.msk [vmem:[#allocation4 + $0x71] sm:$0x1] %vm1592_vm14, %v1648_v43  ;;  %2973 = vrot.lane.b32.xlu0 %v6217_v33, %s3732_s17  ;;  %v6220_v5 = vrot.slane %v6219_v0, %v4533_v25  ;;  %v6226_v42 = vrot.slane %v6219_v0, %v4558_v59 }
 0x41f   :  { %2967 = vrot.lane.b32.xlu1 %v6218_v32, %s3732_s17 }
 0x420   :  { %v2091_v18 = vpop.permute.xlu0 %2090 }
 0x421   :  { %2108 = vst.msk [vmem:[#allocation4 + $0x68] sm:$0x1] %vm1592_vm14, %v2091_v18  ;;  %v1680_v55 = vpop.permute.xlu1 %1679 }
 0x422   :  { %1696 = vst.msk [vmem:[#allocation4 + $0x72] sm:$0x1] %vm1592_vm14, %v1680_v55  ;;  %2977 = vrot.lane.b32.xlu0 %v6220_v5, %s3732_s17 }
 0x423   :  { %2971 = vrot.lane.b32.xlu1 %v6221_v16, %s3732_s17 }
 0x424   :  { %v2123_v20 = vpop.permute.xlu0 %2122 }
 0x425   :  { %2140 = vst.msk [vmem:[#allocation4 + $0x69] sm:$0x1] %vm1592_vm14, %v2123_v20  ;;  %v1712_v15 = vpop.permute.xlu1 %1711 }
 0x426   :  { %1728 = vst.msk [vmem:[#allocation4 + $0x73] sm:$0x1] %vm1592_vm14, %v1712_v15  ;;  %2981 = vrot.lane.b32.xlu0 %v6222_v63, %s3732_s17 }
 0x427   :  { %2975 = vrot.lane.b32.xlu1 %v6223_v3, %s3732_s17 }
 0x428   :  { %v2155_v8 = vpop.permute.xlu0 %2154 }
 0x429   :  { %2172 = vst.msk [vmem:[#allocation4 + $0x6a] sm:$0x1] %vm1592_vm14, %v2155_v8  ;;  %v1744_v39 = vpop.permute.xlu1 %1743 }
 0x42a   :  { %1760 = vst.msk [vmem:[#allocation4 + $0x74] sm:$0x1] %vm1592_vm14, %v1744_v39  ;;  %2985 = vrot.lane.b32.xlu0 %v6225_v56, %s3732_s17 }
 0x42b   :  { %2979 = vrot.lane.b32.xlu1 %v6226_v42, %s3732_s17 }
 0x42c   :  { %v2187_v47 = vpop.permute.xlu0 %2186 }
 0x42d   :  { %2204 = vst.msk [vmem:[#allocation4 + $0x6b] sm:$0x1] %vm1592_vm14, %v2187_v47  ;;  %v1776_v49 = vpop.permute.xlu1 %1775 }
 0x42e   :  { %1792 = vst.msk [vmem:[#allocation4 + $0x75] sm:$0x1] %vm1592_vm14, %v1776_v49  ;;  %2989 = vrot.lane.b32.xlu0 %v6227_v45, %s3732_s17 }
 0x42f   :  { %2983 = vrot.lane.b32.xlu1 %v6228_v29, %s3732_s17 }
 0x430   :  { %v2219_v13 = vpop.permute.xlu0 %2218 }
 0x431   :  { %2236 = vst.msk [vmem:[#allocation4 + $0x6c] sm:$0x1] %vm1592_vm14, %v2219_v13  ;;  %v1808_v19 = vpop.permute.xlu1 %1807 }
 0x432   :  { %1824 = vst.msk [vmem:[#allocation4 + $0x76] sm:$0x1] %vm1592_vm14, %v1808_v19  ;;  %3098 = vrot.lane.b32.xlu0 %v6229_v46, %s3729_s14 }
 0x433   :  { %2987 = vrot.lane.b32.xlu1 %v6230_v17, %s3732_s17 }
 0x434   :  { %v2251_v35 = vpop.permute.xlu0 %2250 }
 0x435   :  { %2268 = vst.msk [vmem:[#allocation4 + $0x6d] sm:$0x1] %vm1592_vm14, %v2251_v35  ;;  %v2538_v23 = vpop.permute.xlu1 %2537 }
 0x436   :  { %2554 = vst.msk [vmem:[#allocation4 + $0x7f] sm:$0x1] %vm1592_vm14, %v2538_v23  ;;  %3102 = vrot.lane.b32.xlu0 %v6231_v54, %s3729_s14 }
 0x437   :  { %2991 = vrot.lane.b32.xlu1 %v6232_v58, %s3732_s17 }
 0x438   :  { %v2390_v14 = vpop.permute.xlu0 %2389 }
 0x439   :  { %v2419_v10 = vsel %vm2417_vm0, %v2390_v14, %v5637_v31  ;;  %v1955_v24 = vpop.permute.xlu1 %1954 }
 0x43a   :  { %2435 = vst.msk [vmem:[#allocation4 + $0x1e] sm:$0x1] %vm1592_vm14, %v2419_v10  ;;  %3106 = vrot.lane.b32.xlu0 %v6233_v50, %s3729_s14 }
 0x43b   :  { %3100 = vrot.lane.b32.xlu1 %v6234_v7, %s3729_s14 }
 0x43c   :  { %v2394_v57 = vpop.permute.xlu0 %2393 }
 0x43d   :  { %v2420_v22 = vsel %vm2417_vm0, %v2394_v57, %v5646_v9  ;;  %v1971_v2 = vpop.permute.xlu1 %1970  ;;  %v6236_v9 = vld [vmem:[#allocation21_spill] sm:$0xff] }
 0x43e   :  { %2436 = vst.msk [vmem:[#allocation4 + $0x2e] sm:$0x1] %vm1592_vm14, %v2420_v22  ;;  %3110 = vrot.lane.b32.xlu0 %v5056_v27, %s3729_s14 }
 0x43f   :  { %3104 = vrot.lane.b32.xlu1 %v6235_v38, %s3729_s14 }
 0x440   :  { %v2406_v31 = vpop.permute.xlu0 %2405 }
 0x441   :  { %v2423_v1 = vsel %vm2417_vm0, %v2406_v31, %v5655_v30  ;;  %v2093_v26 = vpop.permute.xlu1 %2092 }
 0x442   :  { %2439 = vst.msk [vmem:[#allocation4 + $0x5e] sm:$0x1] %vm1592_vm14, %v2423_v1  ;;  %2109 = vst.msk [vmem:[#allocation4 + $0x78] sm:$0x1] %vm1592_vm14, %v2093_v26  ;;  %3130 = vrot.lane.b32.xlu0 %v6229_v46, %s3730_s15 }
 0x443   :  { %3108 = vrot.lane.b32.xlu1 %v6236_v9, %s3729_s14 }
 0x444   :  { %v2410_v11 = vpop.permute.xlu0 %2409 }
 0x445   :  { %v2424_v12 = vsel %vm2417_vm0, %v2410_v11, %v5662_v51  ;;  %v2125_v44 = vpop.permute.xlu1 %2124 }
 0x446   :  { %2440 = vst.msk [vmem:[#allocation4 + $0x6e] sm:$0x1] %vm1592_vm14, %v2424_v12  ;;  %2141 = vst.msk [vmem:[#allocation4 + $0x79] sm:$0x1] %vm1592_vm14, %v2125_v44  ;;  %3134 = vrot.lane.b32.xlu0 %v6231_v54, %s3730_s15 }
 0x447   :  { %3112 = vrot.lane.b32.xlu1 %v5105_v4, %s3729_s14 }
 0x448   :  { %v2667_v30 = vpop.permute.xlu0 %2666 }
 0x449   :  { %2684 = vst.msk [vmem:[#allocation4 + $0xe1] sm:$0x1] %vm1592_vm14, %v2667_v30  ;;  %v2157_v62 = vpop.permute.xlu1 %2156  ;;  %v6240_v30 = vrot.slane %v5066_v53, %v4533_v25 }
 0x44a   :  { %2173 = vst.msk [vmem:[#allocation4 + $0x7a] sm:$0x1] %vm1592_vm14, %v2157_v62  ;;  %3138 = vrot.lane.b32.xlu0 %v6233_v50, %s3730_s15 }
 0x44b   :  { %3132 = vrot.lane.b32.xlu1 %v6234_v7, %s3730_s15 }
 0x44c   :  { %v2699_v51 = vpop.permute.xlu0 %2698 }
 0x44d   :  { %2716 = vst.msk [vmem:[#allocation4 + $0xe2] sm:$0x1] %vm1592_vm14, %v2699_v51  ;;  %v2189_v48 = vpop.permute.xlu1 %2188 }
 0x44e   :  { %2205 = vst.msk [vmem:[#allocation4 + $0x7b] sm:$0x1] %vm1592_vm14, %v2189_v48  ;;  %3142 = vrot.lane.b32.xlu0 %v5056_v27, %s3730_s15 }
 0x44f   :  { %3136 = vrot.lane.b32.xlu1 %v6235_v38, %s3730_s15 }
 0x450   :  { %v2731_v43 = vpop.permute.xlu0 %2730 }
 0x451   :  { %2748 = vst.msk [vmem:[#allocation4 + $0xe3] sm:$0x1] %vm1592_vm14, %v2731_v43  ;;  %v2221_v33 = vpop.permute.xlu1 %2220  ;;  %v6242_v43 = vld [vmem:[#allocation22_spill] sm:$0xff] }
 0x452   :  { %2237 = vst.msk [vmem:[#allocation4 + $0x7c] sm:$0x1] %vm1592_vm14, %v2221_v33  ;;  %3162 = vrot.lane.b32.xlu0 %v6229_v46, %s3731_s16  ;;  %v6243_v33 = vrot.slane %v6242_v43, %v4533_v25 }
 0x453   :  { %3140 = vrot.lane.b32.xlu1 %v6236_v9, %s3730_s15 }
 0x454   :  { %v2763_v32 = vpop.permute.xlu0 %2762 }
 0x455   :  { %2780 = vst.msk [vmem:[#allocation4 + $0xe4] sm:$0x1] %vm1592_vm14, %v2763_v32  ;;  %v2253_v18 = vpop.permute.xlu1 %2252  ;;  %v6244_v32 = vrot.slane %v5062_v6, %v4558_v59 }
 0x456   :  { %2269 = vst.msk [vmem:[#allocation4 + $0x7d] sm:$0x1] %vm1592_vm14, %v2253_v18  ;;  %3166 = vrot.lane.b32.xlu0 %v6231_v54, %s3731_s16 }
 0x457   :  { %3144 = vrot.lane.b32.xlu1 %v5105_v4, %s3730_s15 }
 0x458   :  { %v1953_v55 = vpop.permute.xlu0 %1952 }
 0x459   :  { %v1976_v0 = vsel %vm1972_vm15, %v1953_v55, %v1955_v24  ;;  %v2400_v5 = vpop.permute.xlu1 %2399 }
 0x45a   :  { %1992 = vst.msk [vmem:[#allocation4 + $0x37] sm:$0x1] %vm1592_vm14, %v1976_v0  ;;  %3170 = vrot.lane.b32.xlu0 %v6233_v50, %s3731_s16 }
 0x45b   :  { %3164 = vrot.lane.b32.xlu1 %v6234_v7, %s3731_s16 }
 0x45c   :  { %v1969_v16 = vpop.permute.xlu0 %1968 }
 0x45d   :  { %v1980_v20 = vsel %vm1972_vm15, %v1969_v16, %v1971_v2  ;;  %v2416_v15 = vpop.permute.xlu1 %2415  ;;  %v6237_v2 = vld [vmem:[#allocation11_spill] sm:$0xff] }
 0x45e   :  { %1996 = vst.msk [vmem:[#allocation4 + $0x77] sm:$0x1] %vm1592_vm14, %v1980_v20  ;;  %3174 = vrot.lane.b32.xlu0 %v5056_v27, %s3731_s16  ;;  %v6238_v31 = vrot.slane %v6237_v2, %v4533_v25  ;;  %v6241_v62 = vrot.slane %v6237_v2, %v4558_v59  ;;  %v6247_v20 = vrot.slane %v5066_v53, %v4558_v59 }
 0x45f   :  { %3168 = vrot.lane.b32.xlu1 %v6235_v38, %s3731_s16 }
 0x460   :  { %v2398_v63 = vpop.permute.xlu0 %2397 }
 0x461   :  { %v2421_v3 = vsel %vm2417_vm0, %v2398_v63, %v2400_v5  ;;  %v2669_v8 = vpop.permute.xlu1 %2668  ;;  %v6245_v5 = vld [vmem:[#allocation19_spill] sm:$0xff] }
 0x462   :  { %2437 = vst.msk [vmem:[#allocation4 + $0x3e] sm:$0x1] %vm1592_vm14, %v2421_v3  ;;  %2685 = vst.msk [vmem:[#allocation4 + $0xf1] sm:$0x1] %vm1592_vm14, %v2669_v8  ;;  %3194 = vrot.lane.b32.xlu0 %v6229_v46, %s3733_s18  ;;  %v6246_v16 = vrot.slane %v6245_v5, %v4533_v25  ;;  %v6248_v3 = vld [vmem:[#allocation20_spill] sm:$0xff] }
 0x463   :  { %3172 = vrot.lane.b32.xlu1 %v6236_v9, %s3731_s16  ;;  %v6249_v8 = vrot.slane %v6248_v3, %v4533_v25 }
 0x464   :  { %v2414_v39 = vpop.permute.xlu0 %2413 }
 0x465   :  { %v2425_v36 = vsel %vm2417_vm0, %v2414_v39, %v2416_v15  ;;  %v2701_v56 = vpop.permute.xlu1 %2700  ;;  %v6250_v39 = vrot.slane %v6242_v43, %v4558_v59 }
 0x466   :  { %2441 = vst.msk [vmem:[#allocation4 + $0x7e] sm:$0x1] %vm1592_vm14, %v2425_v36  ;;  %2717 = vst.msk [vmem:[#allocation4 + $0xf2] sm:$0x1] %vm1592_vm14, %v2701_v56  ;;  %3198 = vrot.lane.b32.xlu0 %v6231_v54, %s3733_s18 }
 0x467   :  { %3176 = vrot.lane.b32.xlu1 %v5105_v4, %s3731_s16 }
 0x468   :  { %v2787_v42 = vpop.permute.xlu0 %2786 }
 0x469   :  { %2808 = vst.msk [vmem:[#allocation4 + $0xa5] sm:$0x1] %vm1592_vm14, %v2787_v42  ;;  %v2733_v47 = vpop.permute.xlu1 %2732  ;;  %v6251_v42 = vld [vmem:[#allocation23_spill] sm:$0xff] }
 0x46a   :  { %2749 = vst.msk [vmem:[#allocation4 + $0xf3] sm:$0x1] %vm1592_vm14, %v2733_v47  ;;  %3202 = vrot.lane.b32.xlu0 %v6233_v50, %s3733_s18  ;;  %v6252_v47 = vrot.slane %v6251_v42, %v4533_v25 }
 0x46b   :  { %3196 = vrot.lane.b32.xlu1 %v6234_v7, %s3733_s18 }
 0x46c   :  { %v2791_v49 = vpop.permute.xlu0 %2790 }
 0x46d   :  { %2810 = vst.msk [vmem:[#allocation4 + $0xc5] sm:$0x1] %vm1592_vm14, %v2791_v49  ;;  %v2765_v45 = vpop.permute.xlu1 %2764  ;;  %v6253_v49 = vrot.slane %v6245_v5, %v4558_v59 }
 0x46e   :  { %2781 = vst.msk [vmem:[#allocation4 + $0xf4] sm:$0x1] %vm1592_vm14, %v2765_v45  ;;  %3206 = vrot.lane.b32.xlu0 %v5056_v27, %s3733_s18 }
 0x46f   :  { %3200 = vrot.lane.b32.xlu1 %v6235_v38, %s3733_s18 }
 0x470   :  { %v2795_v29 = vpop.permute.xlu0 %2794 }
 0x471   :  { %2812 = vst.msk [vmem:[#allocation4 + $0xe5] sm:$0x1] %vm1592_vm14, %v2795_v29  ;;  %v2789_v13 = vpop.permute.xlu1 %2788 }
 0x472   :  { %2809 = vst.msk [vmem:[#allocation4 + $0xb5] sm:$0x1] %vm1592_vm14, %v2789_v13  ;;  %3226 = vrot.lane.b32.xlu0 %v6229_v46, %s3734_s19 }
 0x473   :  { %3204 = vrot.lane.b32.xlu1 %v6236_v9, %s3733_s18 }
 0x474   :  { %v2815_v19 = vpop.permute.xlu0 %2814 }
 0x475   :  { %2838 = vst.msk [vmem:[#allocation4 + $0x86] sm:$0x1] %vm1592_vm14, %v2815_v19  ;;  %v2793_v17 = vpop.permute.xlu1 %2792  ;;  %v6254_v19 = vrot.slane %v5121_v37, %v4533_v25 }
 0x476   :  { %2811 = vst.msk [vmem:[#allocation4 + $0xd5] sm:$0x1] %vm1592_vm14, %v2793_v17  ;;  %3230 = vrot.lane.b32.xlu0 %v6231_v54, %s3734_s19  ;;  %v6255_v17 = vrot.slane %v6248_v3, %v4558_v59 }
 0x477   :  { %3208 = vrot.lane.b32.xlu1 %v5105_v4, %s3733_s18 }
 0x478   :  { %v2819_v35 = vpop.permute.xlu0 %2818 }
 0x479   :  { %2840 = vst.msk [vmem:[#allocation4 + $0xa6] sm:$0x1] %vm1592_vm14, %v2819_v35  ;;  %v2797_v23 = vpop.permute.xlu1 %2796 }
 0x47a   :  { %2813 = vst.msk [vmem:[#allocation4 + $0xf5] sm:$0x1] %vm1592_vm14, %v2797_v23  ;;  %3234 = vrot.lane.b32.xlu0 %v6233_v50, %s3734_s19 }
 0x47b   :  { %3228 = vrot.lane.b32.xlu1 %v6234_v7, %s3734_s19 }
 0x47c   :  { %v2823_v58 = vpop.permute.xlu0 %2822 }
 0x47d   :  { %2842 = vst.msk [vmem:[#allocation4 + $0xc6] sm:$0x1] %vm1592_vm14, %v2823_v58  ;;  %v2817_v14 = vpop.permute.xlu1 %2816 }
 0x47e   :  { %2839 = vst.msk [vmem:[#allocation4 + $0x96] sm:$0x1] %vm1592_vm14, %v2817_v14  ;;  %3238 = vrot.lane.b32.xlu0 %v5056_v27, %s3734_s19  ;;  %v6256_v14 = vrot.slane %v6251_v42, %v4558_v59 }
 0x47f   :  { %3232 = vrot.lane.b32.xlu1 %v6235_v38, %s3734_s19 }
 0x480   :  { %v2827_v10 = vpop.permute.xlu0 %2826 }
 0x481   :  { %2844 = vst.msk [vmem:[#allocation4 + $0xe6] sm:$0x1] %vm1592_vm14, %v2827_v10  ;;  %v2821_v24 = vpop.permute.xlu1 %2820 }
 0x482   :  { %2841 = vst.msk [vmem:[#allocation4 + $0xb6] sm:$0x1] %vm1592_vm14, %v2821_v24  ;;  %3258 = vrot.lane.b32.xlu0 %v6229_v46, %s3735_s20  ;;  %v6239_v46 = vrot.slane %v5062_v6, %v4533_v25 }
 0x483   :  { %3236 = vrot.lane.b32.xlu1 %v6236_v9, %s3734_s19 }
 0x484   :  { %v2962_v57 = vpop.permute.xlu0 %2961 }
 0x485   :  { %v2825_v22 = vpop.permute.xlu1 %2824 }
 0x486   :  { %2843 = vst.msk [vmem:[#allocation4 + $0xd6] sm:$0x1] %vm1592_vm14, %v2825_v22  ;;  %3405 = vrot.lane.b32.xlu0 %v6238_v31, %s3736_s22 }
 0x487   :  { %3240 = vrot.lane.b32.xlu1 %v5105_v4, %s3734_s19 }
 0x488   :  { %v2966_v1 = vpop.permute.xlu0 %2965 }
 0x489   :  { %v2829_v26 = vpop.permute.xlu1 %2828 }
 0x48a   :  { %2845 = vst.msk [vmem:[#allocation4 + $0xf6] sm:$0x1] %vm1592_vm14, %v2829_v26  ;;  %3409 = vrot.lane.b32.xlu0 %v6239_v46, %s3736_s22 }
 0x48b   :  { %3260 = vrot.lane.b32.xlu1 %v6234_v7, %s3735_s20 }
 0x48c   :  { %v2970_v11 = vpop.permute.xlu0 %2969 }
 0x48d   :  { %v2964_v12 = vpop.permute.xlu1 %2963 }
 0x48e   :  { %v2993_v44 = vsel %vm1972_vm15, %v2962_v57, %v2964_v12  ;;  %3413 = vrot.lane.b32.xlu0 %v6240_v30, %s3736_s22 }
 0x48f   :  { %3009 = vst.msk [vmem:[#allocation4 + $0x87] sm:$0x1] %vm1592_vm14, %v2993_v44  ;;  %3407 = vrot.lane.b32.xlu1 %v6241_v62, %s3736_s22 }
 0x490   :  { %v2974_v51 = vpop.permute.xlu0 %2973 }
 0x491   :  { %v2968_v48 = vpop.permute.xlu1 %2967 }
 0x492   :  { %v2994_v7 = vsel %vm1972_vm15, %v2966_v1, %v2968_v48  ;;  %3417 = vrot.lane.b32.xlu0 %v6243_v33, %s3736_s22  ;;  %v6260_v1 = vld [vmem:[#allocation24_spill] sm:$0xff] }
 0x493   :  { %3010 = vst.msk [vmem:[#allocation4 + $0x97] sm:$0x1] %vm1592_vm14, %v2994_v7  ;;  %3411 = vrot.lane.b32.xlu1 %v6244_v32, %s3736_s22  ;;  %v6261_v26 = vrot.slane %v6260_v1, %v4533_v25 }
 0x494   :  { %v2978_v18 = vpop.permute.xlu0 %2977 }
 0x495   :  { %v2972_v55 = vpop.permute.xlu1 %2971 }
 0x496   :  { %v2995_v0 = vsel %vm1972_vm15, %v2970_v11, %v2972_v55  ;;  %3421 = vrot.lane.b32.xlu0 %v6246_v16, %s3736_s22 }
 0x497   :  { %3011 = vst.msk [vmem:[#allocation4 + $0xa7] sm:$0x1] %vm1592_vm14, %v2995_v0  ;;  %3415 = vrot.lane.b32.xlu1 %v6247_v20, %s3736_s22 }
 0x498   :  { %v2982_v15 = vpop.permute.xlu0 %2981 }
 0x499   :  { %v2976_v63 = vpop.permute.xlu1 %2975 }
 0x49a   :  { %v2996_v6 = vsel %vm1972_vm15, %v2974_v51, %v2976_v63  ;;  %3425 = vrot.lane.b32.xlu0 %v6249_v8, %s3736_s22 }
 0x49b   :  { %3012 = vst.msk [vmem:[#allocation4 + $0xb7] sm:$0x1] %vm1592_vm14, %v2996_v6  ;;  %3419 = vrot.lane.b32.xlu1 %v6250_v39, %s3736_s22 }
 0x49c   :  { %v2986_v36 = vpop.permute.xlu0 %2985 }
 0x49d   :  { %v2980_v56 = vpop.permute.xlu1 %2979 }
 0x49e   :  { %v2997_v53 = vsel %vm1972_vm15, %v2978_v18, %v2980_v56  ;;  %3429 = vrot.lane.b32.xlu0 %v6252_v47, %s3736_s22 }
 0x49f   :  { %3013 = vst.msk [vmem:[#allocation4 + $0xc7] sm:$0x1] %vm1592_vm14, %v2997_v53  ;;  %3423 = vrot.lane.b32.xlu1 %v6253_v49, %s3736_s22 }
 0x4a0   :  { %v2990_v45 = vpop.permute.xlu0 %2989 }
 0x4a1   :  { %v2984_v29 = vpop.permute.xlu1 %2983 }
 0x4a2   :  { %v2998_v13 = vsel %vm1972_vm15, %v2982_v15, %v2984_v29  ;;  %3433 = vrot.lane.b32.xlu0 %v6254_v19, %s3736_s22 }
 0x4a3   :  { %3014 = vst.msk [vmem:[#allocation4 + $0xd7] sm:$0x1] %vm1592_vm14, %v2998_v13  ;;  %3427 = vrot.lane.b32.xlu1 %v6255_v17, %s3736_s22 }
 0x4a4   :  { %v3099_v35 = vpop.permute.xlu0 %3098 }
 0x4a5   :  { %3122 = vst.msk [vmem:[#allocation4 + $0x88] sm:$0x1] %vm1592_vm14, %v3099_v35  ;;  %v2988_v23 = vpop.permute.xlu1 %2987 }
 0x4a6   :  { %v2999_v58 = vsel %vm1972_vm15, %v2986_v36, %v2988_v23  ;;  %3262 = vrot.lane.b32.xlu0 %v6231_v54, %s3735_s20  ;;  %v6257_v54 = vrot.slane %v5121_v37, %v4558_v59  ;;  %v6258_v59 = vrot.slane %v5133_v21, %v4533_v25 }
 0x4a7   :  { %3015 = vst.msk [vmem:[#allocation4 + $0xe7] sm:$0x1] %vm1592_vm14, %v2999_v58  ;;  %3431 = vrot.lane.b32.xlu1 %v6256_v14, %s3736_s22 }
 0x4a8   :  { %v3103_v10 = vpop.permute.xlu0 %3102 }
 0x4a9   :  { %3124 = vst.msk [vmem:[#allocation4 + $0xa8] sm:$0x1] %vm1592_vm14, %v3103_v10  ;;  %v2992_v24 = vpop.permute.xlu1 %2991 }
 0x4aa   :  { %v3000_v57 = vsel %vm1972_vm15, %v2990_v45, %v2992_v24  ;;  %3266 = vrot.lane.b32.xlu0 %v6233_v50, %s3735_s20 }
 0x4ab   :  { %3016 = vst.msk [vmem:[#allocation4 + $0xf7] sm:$0x1] %vm1592_vm14, %v3000_v57  ;;  %3435 = vrot.lane.b32.xlu1 %v6257_v54, %s3736_s22 }
 0x4ac   :  { %v3107_v22 = vpop.permute.xlu0 %3106 }
 0x4ad   :  { %3126 = vst.msk [vmem:[#allocation4 + $0xc8] sm:$0x1] %vm1592_vm14, %v3107_v22  ;;  %v3101_v2 = vpop.permute.xlu1 %3100 }
 0x4ae   :  { %3123 = vst.msk [vmem:[#allocation4 + $0x98] sm:$0x1] %vm1592_vm14, %v3101_v2  ;;  %3270 = vrot.lane.b32.xlu0 %v5056_v27, %s3735_s20 }
 0x4af   :  { %3264 = vrot.lane.b32.xlu1 %v6235_v38, %s3735_s20 }
 0x4b0   :  { %v3111_v50 = vpop.permute.xlu0 %3110 }
 0x4b1   :  { %3128 = vst.msk [vmem:[#allocation4 + $0xe8] sm:$0x1] %vm1592_vm14, %v3111_v50  ;;  %v3105_v31 = vpop.permute.xlu1 %3104 }
 0x4b2   :  { %3125 = vst.msk [vmem:[#allocation4 + $0xb8] sm:$0x1] %vm1592_vm14, %v3105_v31  ;;  %3542 = vrot.lane.b32.xlu0 %v6258_v59, %s3728_s13 }
 0x4b3   :  { %3268 = vrot.lane.b32.xlu1 %v6236_v9, %s3735_s20  ;;  %v6259_v9 = vrot.slane %v5137_v41, %v4533_v25 }
 0x4b4   :  { %v3131_v37 = vpop.permute.xlu0 %3130 }
 0x4b5   :  { %3154 = vst.msk [vmem:[#allocation4 + $0x89] sm:$0x1] %vm1592_vm14, %v3131_v37  ;;  %v3109_v27 = vpop.permute.xlu1 %3108 }
 0x4b6   :  { %3127 = vst.msk [vmem:[#allocation4 + $0xd8] sm:$0x1] %vm1592_vm14, %v3109_v27  ;;  %3546 = vrot.lane.b32.xlu0 %v5171_v34, %s3728_s13 }
 0x4b7   :  { %3272 = vrot.lane.b32.xlu1 %v5105_v4, %s3735_s20 }
 0x4b8   :  { %v3135_v38 = vpop.permute.xlu0 %3134 }
 0x4b9   :  { %3156 = vst.msk [vmem:[#allocation4 + $0xa9] sm:$0x1] %vm1592_vm14, %v3135_v38  ;;  %v3113_v21 = vpop.permute.xlu1 %3112 }
 0x4ba   :  { %3129 = vst.msk [vmem:[#allocation4 + $0xf8] sm:$0x1] %vm1592_vm14, %v3113_v21  ;;  %3550 = vrot.lane.b32.xlu0 %v6259_v9, %s3728_s13 }
 0x4bb   :  { %3544 = vrot.lane.b32.xlu1 %v6261_v26, %s3728_s13 }
 0x4bc   :  { %v3139_v34 = vpop.permute.xlu0 %3138 }
 0x4bd   :  { %3158 = vst.msk [vmem:[#allocation4 + $0xc9] sm:$0x1] %vm1592_vm14, %v3139_v34  ;;  %v3133_v4 = vpop.permute.xlu1 %3132 }
 0x4be   :  { %3155 = vst.msk [vmem:[#allocation4 + $0x99] sm:$0x1] %vm1592_vm14, %v3133_v4  ;;  %3554 = vrot.lane.b32.xlu0 %v5174_v61, %s3728_s13 }
 0x4bf   :  { %3548 = vrot.lane.b32.xlu1 %v5179_v40, %s3728_s13 }
 0x4c0   :  { %v3143_v46 = vpop.permute.xlu0 %3142 }
 0x4c1   :  { %3160 = vst.msk [vmem:[#allocation4 + $0xe9] sm:$0x1] %vm1592_vm14, %v3143_v46  ;;  %v3137_v41 = vpop.permute.xlu1 %3136 }
 0x4c2   :  { %3157 = vst.msk [vmem:[#allocation4 + $0xb9] sm:$0x1] %vm1592_vm14, %v3137_v41 }
 0x4c3   :  { %3552 = vrot.lane.b32.xlu1 %v3533_v28, %s3728_s13 }
 0x4c4   :  { %v3163_v11 = vpop.permute.xlu0 %3162 }
 0x4c5   :  { %3186 = vst.msk [vmem:[#allocation4 + $0x8a] sm:$0x1] %vm1592_vm14, %v3163_v11  ;;  %v3141_v12 = vpop.permute.xlu1 %3140 }
 0x4c6   :  { %3159 = vst.msk [vmem:[#allocation4 + $0xd9] sm:$0x1] %vm1592_vm14, %v3141_v12 }
 0x4c7   :  { %3556 = vrot.lane.b32.xlu1 %v5186_v52, %s3728_s13 }
 0x4c8   :  { %v3167_v61 = vpop.permute.xlu0 %3166 }
 0x4c9   :  { %3188 = vst.msk [vmem:[#allocation4 + $0xaa] sm:$0x1] %vm1592_vm14, %v3167_v61  ;;  %v3145_v40 = vpop.permute.xlu1 %3144 }
 0x4ca   :  { %3161 = vst.msk [vmem:[#allocation4 + $0xf9] sm:$0x1] %vm1592_vm14, %v3145_v40 }
 0x4cc   :  { %v3171_v44 = vpop.permute.xlu0 %3170 }
 0x4cd   :  { %3190 = vst.msk [vmem:[#allocation4 + $0xca] sm:$0x1] %vm1592_vm14, %v3171_v44  ;;  %v3165_v25 = vpop.permute.xlu1 %3164 }
 0x4ce   :  { %3187 = vst.msk [vmem:[#allocation4 + $0x9a] sm:$0x1] %vm1592_vm14, %v3165_v25 }
 0x4d0   :  { %v3175_v28 = vpop.permute.xlu0 %3174 }
 0x4d1   :  { %3192 = vst.msk [vmem:[#allocation4 + $0xea] sm:$0x1] %vm1592_vm14, %v3175_v28  ;;  %v3169_v60 = vpop.permute.xlu1 %3168 }
 0x4d2   :  { %3189 = vst.msk [vmem:[#allocation4 + $0xba] sm:$0x1] %vm1592_vm14, %v3169_v60 }
 0x4d4   :  { %v3195_v30 = vpop.permute.xlu0 %3194 }
 0x4d5   :  { %3218 = vst.msk [vmem:[#allocation4 + $0x8b] sm:$0x1] %vm1592_vm14, %v3195_v30  ;;  %v3173_v52 = vpop.permute.xlu1 %3172 }
 0x4d6   :  { %3191 = vst.msk [vmem:[#allocation4 + $0xda] sm:$0x1] %vm1592_vm14, %v3173_v52 }
 0x4d8   :  { %v3199_v62 = vpop.permute.xlu0 %3198 }
 0x4d9   :  { %3220 = vst.msk [vmem:[#allocation4 + $0xab] sm:$0x1] %vm1592_vm14, %v3199_v62  ;;  %v3177_v51 = vpop.permute.xlu1 %3176 }
 0x4da   :  { %3193 = vst.msk [vmem:[#allocation4 + $0xfa] sm:$0x1] %vm1592_vm14, %v3177_v51 }
 0x4dc   :  { %v3203_v48 = vpop.permute.xlu0 %3202 }
 0x4dd   :  { %3222 = vst.msk [vmem:[#allocation4 + $0xcb] sm:$0x1] %vm1592_vm14, %v3203_v48  ;;  %v3197_v7 = vpop.permute.xlu1 %3196 }
 0x4de   :  { %3219 = vst.msk [vmem:[#allocation4 + $0x9b] sm:$0x1] %vm1592_vm14, %v3197_v7 }
 0x4e0   :  { %v3207_v43 = vpop.permute.xlu0 %3206 }
 0x4e1   :  { %3224 = vst.msk [vmem:[#allocation4 + $0xeb] sm:$0x1] %vm1592_vm14, %v3207_v43  ;;  %v3201_v33 = vpop.permute.xlu1 %3200 }
 0x4e2   :  { %3221 = vst.msk [vmem:[#allocation4 + $0xbb] sm:$0x1] %vm1592_vm14, %v3201_v33 }
 0x4e4   :  { %v3227_v32 = vpop.permute.xlu0 %3226 }
 0x4e5   :  { %3250 = vst.msk [vmem:[#allocation4 + $0x8c] sm:$0x1] %vm1592_vm14, %v3227_v32  ;;  %v3205_v18 = vpop.permute.xlu1 %3204 }
 0x4e6   :  { %3223 = vst.msk [vmem:[#allocation4 + $0xdb] sm:$0x1] %vm1592_vm14, %v3205_v18 }
 0x4e8   :  { %v3231_v55 = vpop.permute.xlu0 %3230 }
 0x4e9   :  { %3252 = vst.msk [vmem:[#allocation4 + $0xac] sm:$0x1] %vm1592_vm14, %v3231_v55  ;;  %v3209_v0 = vpop.permute.xlu1 %3208 }
 0x4ea   :  { %3225 = vst.msk [vmem:[#allocation4 + $0xfb] sm:$0x1] %vm1592_vm14, %v3209_v0 }
 0x4ec   :  { %v3235_v5 = vpop.permute.xlu0 %3234 }
 0x4ed   :  { %3254 = vst.msk [vmem:[#allocation4 + $0xcc] sm:$0x1] %vm1592_vm14, %v3235_v5  ;;  %v3229_v16 = vpop.permute.xlu1 %3228 }
 0x4ee   :  { %3251 = vst.msk [vmem:[#allocation4 + $0x9c] sm:$0x1] %vm1592_vm14, %v3229_v16 }
 0x4f0   :  { %v3239_v20 = vpop.permute.xlu0 %3238 }
 0x4f1   :  { %3256 = vst.msk [vmem:[#allocation4 + $0xec] sm:$0x1] %vm1592_vm14, %v3239_v20  ;;  %v3233_v15 = vpop.permute.xlu1 %3232 }
 0x4f2   :  { %3253 = vst.msk [vmem:[#allocation4 + $0xbc] sm:$0x1] %vm1592_vm14, %v3233_v15 }
 0x4f4   :  { %v3259_v63 = vpop.permute.xlu0 %3258 }
 0x4f5   :  { %3282 = vst.msk [vmem:[#allocation4 + $0x8d] sm:$0x1] %vm1592_vm14, %v3259_v63  ;;  %v3237_v6 = vpop.permute.xlu1 %3236 }
 0x4f6   :  { %3255 = vst.msk [vmem:[#allocation4 + $0xdc] sm:$0x1] %vm1592_vm14, %v3237_v6 }
 0x4f8   :  { %v3406_v3 = vpop.permute.xlu0 %3405 }
 0x4f9   :  { %v3241_v8 = vpop.permute.xlu1 %3240 }
 0x4fa   :  { %3257 = vst.msk [vmem:[#allocation4 + $0xfc] sm:$0x1] %vm1592_vm14, %v3241_v8 }
 0x4fc   :  { %v3410_v39 = vpop.permute.xlu0 %3409 }
 0x4fd   :  { %v3261_v36 = vpop.permute.xlu1 %3260 }
 0x4fe   :  { %3283 = vst.msk [vmem:[#allocation4 + $0x9d] sm:$0x1] %vm1592_vm14, %v3261_v36 }
 0x500   :  { %v3414_v56 = vpop.permute.xlu0 %3413 }
 0x501   :  { %v3408_v53 = vpop.permute.xlu1 %3407 }
 0x502   :  { %v3437_v42 = vsel %vm2417_vm0, %v3406_v3, %v3408_v53 }
 0x503   :  { %3453 = vst.msk [vmem:[#allocation4 + $0x8e] sm:$0x1] %vm1592_vm14, %v3437_v42 }
 0x504   :  { %v3418_v47 = vpop.permute.xlu0 %3417 }
 0x505   :  { %v3412_v49 = vpop.permute.xlu1 %3411 }
 0x506   :  { %v3438_v45 = vsel %vm2417_vm0, %v3410_v39, %v3412_v49 }
 0x507   :  { %3454 = vst.msk [vmem:[#allocation4 + $0x9e] sm:$0x1] %vm1592_vm14, %v3438_v45 }
 0x508   :  { %v3422_v29 = vpop.permute.xlu0 %3421 }
 0x509   :  { %v3416_v13 = vpop.permute.xlu1 %3415 }
 0x50a   :  { %v3439_v19 = vsel %vm2417_vm0, %v3414_v56, %v3416_v13 }
 0x50b   :  { %3455 = vst.msk [vmem:[#allocation4 + $0xae] sm:$0x1] %vm1592_vm14, %v3439_v19 }
 0x50c   :  { %v3426_v17 = vpop.permute.xlu0 %3425 }
 0x50d   :  { %v3420_v35 = vpop.permute.xlu1 %3419 }
 0x50e   :  { %v3440_v23 = vsel %vm2417_vm0, %v3418_v47, %v3420_v35 }
 0x50f   :  { %3456 = vst.msk [vmem:[#allocation4 + $0xbe] sm:$0x1] %vm1592_vm14, %v3440_v23 }
 0x510   :  { %v3430_v58 = vpop.permute.xlu0 %3429 }
 0x511   :  { %v3424_v14 = vpop.permute.xlu1 %3423 }
 0x512   :  { %v3441_v10 = vsel %vm2417_vm0, %v3422_v29, %v3424_v14 }
 0x513   :  { %3457 = vst.msk [vmem:[#allocation4 + $0xce] sm:$0x1] %vm1592_vm14, %v3441_v10 }
 0x514   :  { %v3434_v24 = vpop.permute.xlu0 %3433 }
 0x515   :  { %v3428_v57 = vpop.permute.xlu1 %3427 }
 0x516   :  { %v3442_v54 = vsel %vm2417_vm0, %v3426_v17, %v3428_v57 }
 0x517   :  { %3458 = vst.msk [vmem:[#allocation4 + $0xde] sm:$0x1] %vm1592_vm14, %v3442_v54 }
 0x518   :  { %v3263_v22 = vpop.permute.xlu0 %3262 }
 0x519   :  { %3284 = vst.msk [vmem:[#allocation4 + $0xad] sm:$0x1] %vm1592_vm14, %v3263_v22  ;;  %v3432_v2 = vpop.permute.xlu1 %3431 }
 0x51a   :  { %v3443_v50 = vsel %vm2417_vm0, %v3430_v58, %v3432_v2 }
 0x51b   :  { %3459 = vst.msk [vmem:[#allocation4 + $0xee] sm:$0x1] %vm1592_vm14, %v3443_v50 }
 0x51c   :  { %v3267_v31 = vpop.permute.xlu0 %3266 }
 0x51d   :  { %3286 = vst.msk [vmem:[#allocation4 + $0xcd] sm:$0x1] %vm1592_vm14, %v3267_v31  ;;  %v3436_v59 = vpop.permute.xlu1 %3435 }
 0x51e   :  { %v3444_v37 = vsel %vm2417_vm0, %v3434_v24, %v3436_v59 }
 0x51f   :  { %3460 = vst.msk [vmem:[#allocation4 + $0xfe] sm:$0x1] %vm1592_vm14, %v3444_v37 }
 0x520   :  { %v3271_v27 = vpop.permute.xlu0 %3270 }
 0x521   :  { %3288 = vst.msk [vmem:[#allocation4 + $0xed] sm:$0x1] %vm1592_vm14, %v3271_v27  ;;  %v3265_v38 = vpop.permute.xlu1 %3264 }
 0x522   :  { %3285 = vst.msk [vmem:[#allocation4 + $0xbd] sm:$0x1] %vm1592_vm14, %v3265_v38 }
 0x524   :  { %v3543_v21 = vpop.permute.xlu0 %3542 }
 0x525   :  { %3566 = vst.msk [vmem:[#allocation4 + $0x8f] sm:$0x1] %vm1592_vm14, %v3543_v21  ;;  %v3269_v9 = vpop.permute.xlu1 %3268 }
 0x526   :  { %3287 = vst.msk [vmem:[#allocation4 + $0xdd] sm:$0x1] %vm1592_vm14, %v3269_v9 }
 0x528   :  { %v3547_v1 = vpop.permute.xlu0 %3546 }
 0x529   :  { %3568 = vst.msk [vmem:[#allocation4 + $0xaf] sm:$0x1] %vm1592_vm14, %v3547_v1  ;;  %v3273_v26 = vpop.permute.xlu1 %3272 }
 0x52a   :  { %3289 = vst.msk [vmem:[#allocation4 + $0xfd] sm:$0x1] %vm1592_vm14, %v3273_v26 }
 0x52c   :  { %v3551_v34 = vpop.permute.xlu0 %3550 }
 0x52d   :  { %3570 = vst.msk [vmem:[#allocation4 + $0xcf] sm:$0x1] %vm1592_vm14, %v3551_v34  ;;  %v3545_v4 = vpop.permute.xlu1 %3544 }
 0x52e   :  { %3567 = vst.msk [vmem:[#allocation4 + $0x9f] sm:$0x1] %vm1592_vm14, %v3545_v4 }
 0x530   :  { %v3555_v46 = vpop.permute.xlu0 %3554 }
 0x531   :  { %3572 = vst.msk [vmem:[#allocation4 + $0xef] sm:$0x1] %vm1592_vm14, %v3555_v46  ;;  %v3549_v41 = vpop.permute.xlu1 %3548 }
 0x532   :  { %3569 = vst.msk [vmem:[#allocation4 + $0xbf] sm:$0x1] %vm1592_vm14, %v3549_v41 }
 0x535   :  { %v3553_v11 = vpop.permute.xlu1 %3552 }
 0x536   :  { %3571 = vst.msk [vmem:[#allocation4 + $0xdf] sm:$0x1] %vm1592_vm14, %v3553_v11 }
 0x539   :  { %v3557_v12 = vpop.permute.xlu1 %3556 }
 0x53a   :  { %3573 = vst.msk [vmem:[#allocation4 + $0xff] sm:$0x1] %vm1592_vm14, %v3557_v12 }
 0x53b   :  { %3688 = shalt.err (!%p3685_p4)
}
 0x53c   :  { %s3689_s28 = scalar_lea.hbm %s6129_s3, 4096 }
 0x53d   :  { %p3690_p5 = scmp.ne.s32.totalorder %s6129_s3, %s3689_s28  ;;  %p3693_p6 = scmp.lt.u32.totalorder %s3689_s28, %s6129_s3 }
 0x53f   :  { %p3695_p7 = pnand %p3693_p6, %p3690_p5 }
 0x541   :  { %3698 = shalt.err (!%p3695_p7)
}
 0x542   :  { %s3738_s6 = smov 128   ;;  %s3739_s7 = smov 8  }
 0x543   :  { %3585 = dma.vmem_to_hbm [thread:$0]  %s3580_s24, 4096, %s6129_s3, [#allocation5], %s3738_s6, %s3738_s6, %s3739_s7  }
 0x544   :  { %3699 = dma.done.wait [#allocation5], 4096  }
 0x545   :  { %3700 = vsyncadd [#allocation5], 4294963200 }
 0x546   :  { %3589 = vsyncpa [#allocation5], 1 }

</bundles_post_ra>
